<compile_context>
chip_gen: v7x
topology: tpu7x:2x2x1
jax: 0.10.0
libtpu: 0.0.40
codegen_flags: <defaults>
</compile_context>

<pallas_src>
import functools

import jax
import jax.numpy as jnp
from jax.experimental import pallas as pl
from jax.experimental.pallas import tpu as pltpu


# ----------------------------- helpers ------------------------------

def _full_specs(*shapes):
    """Whole-array VMEM BlockSpecs for a degenerate grid=(1,)."""
    return [pl.BlockSpec(tuple(s), lambda i, n=len(s): (0,) * n) for s in shapes]


# ----------------------------- Pallas kernels ------------------------------

def _conv_relu_pool_kernel(p0_ref, p1_ref, p2_ref, p3_ref, w_ref, b_ref, o_ref,
                           *, spatial_lanes):
    """Fused Conv2d(3, stride=2, pad=1) + bias + ReLU + MaxPool2d(2, 2).

    The four 2x2 pool phases arrive as four pre-gathered im2col patch matrices.
    Each is matmul'ed on the MXU, bias+ReLU'ed on the VPU, and the pool is the
    elementwise max of the four results — everything stays in VMEM/vregs.
    """
    w = w_ref[...]
    b = b_ref[...]

    def conv(p_ref):
        p = p_ref[...]
        if spatial_lanes:      # (Cout, K) @ (K, R): spatial dim R lane-dense
            y = jnp.dot(w, p, preferred_element_type=jnp.float32)
        else:                  # (R, K) @ (K, Cout)
            y = jnp.dot(p, w, preferred_element_type=jnp.float32)
        return jnp.maximum(y + b, 0.0)

    o_ref[...] = jnp.maximum(jnp.maximum(conv(p0_ref), conv(p1_ref)),
                             jnp.maximum(conv(p2_ref), conv(p3_ref)))


def _bilstm_head_kernel(x_ref, wih_ref, bih_ref, whhf_ref, whhb_ref,
                        w1_ref, b1_ref, w2_ref, b2_ref,
                        lstm_ref, l1_ref, l2_ref, prob_ref,
                        xproj_ref):
    """Bidirectional LSTM (seq_len=T, batch=1) + linear1 + linear2 + softmax, fused."""
    T = x_ref.shape[0]
    H = whhf_ref.shape[0]

    # Hoisted input projection for BOTH directions; PyTorch bias = b_ih + b_hh folded in.
    # One (T, H) @ (H, 8H) MXU matmul instead of 2*T (1, H) @ (H, 4H) matmuls in the loop.
    xproj_ref[...] = (jnp.dot(x_ref[...], wih_ref[...],
                              preferred_element_type=jnp.float32) + bih_ref[...])

    whh_f = whhf_ref[...]
    whh_b = whhb_ref[...]

    def cell(xp, h, c, whh):
        gates = xp + jnp.dot(h, whh, preferred_element_type=jnp.float32)
        i_g = jax.nn.sigmoid(gates[:, 0:H])            # PyTorch gate order: i, f, g, o
        f_g = jax.nn.sigmoid(gates[:, H:2 * H])
        g_g = jnp.tanh(gates[:, 2 * H:3 * H])
        o_g = jax.nn.sigmoid(gates[:, 3 * H:4 * H])
        c_new = f_g * c + i_g * g_g
        h_new = o_g * jnp.tanh(c_new)
        return h_new, c_new

    zero = jnp.zeros((1, H), jnp.float32)
    hf, cf, hb, cb = zero, zero, zero, zero
    # Static, fully unrolled recurrence (T = conv-stack batch, small). h/c stay in
    # vregs; per-step hidden states are written straight into the (T, 2H) lstm_out
    # ref at 128-aligned lane offsets (fwd -> [0:H], bwd -> [H:2H]).
    for t in range(T):
        xrow_f = xproj_ref[pl.ds(t, 1), :]             # (1, 8H)
        hf, cf = cell(xrow_f[:, 0:4 * H], hf, cf, whh_f)
        lstm_ref[pl.ds(t, 1), 0:H] = hf

        s = T - 1 - t                                  # backward direction timestep
        xrow_b = xproj_ref[pl.ds(s, 1), :]
        hb, cb = cell(xrow_b[:, 4 * H:8 * H], hb, cb, whh_b)
        lstm_ref[pl.ds(s, 1), H:2 * H] = hb

    lstm_cat = lstm_ref[...]                           # (T, 2H), fully written above

    # Head: linear1 (+ identity dropout) + linear2 + softmax, all in-VMEM.
    l1 = jnp.dot(lstm_cat, w1_ref[...], preferred_element_type=jnp.float32) + b1_ref[...]
    l1_ref[...] = l1
    l2 = jnp.dot(l1, w2_ref[...], preferred_element_type=jnp.float32) + b2_ref[...]
    l2_ref[...] = l2
    z = l2 - jnp.max(l2, axis=-1, keepdims=True)
    e = jnp.exp(z)
    prob_ref[...] = e / jnp.sum(e, axis=-1, keepdims=True)


# ------------------------------- wrappers ----------------------------------

def conv_relu_pool(x, w, b, *, spatial_lanes=False):
    """Conv2d(kernel=3, stride=2, padding=1) + ReLU + MaxPool2d(2,2) on NCHW input.

    im2col patches are gathered in XLA glue, pre-grouped by the four 2x2 pool phases;
    one fused Pallas kernel does the matmul, bias, ReLU and the pool max.
    x: (B, Cin, H, W), w: (Cout, Cin, 3, 3), b: (Cout,). Returns pooled NCHW.
    """
    B, Cin, H, W = x.shape
    Cout = w.shape[0]
    OH = (H + 2 - 3) // 2 + 1
    OW = (W + 2 - 3) // 2 + 1
    PH, PW = OH // 2, OW // 2          # MaxPool2d(2,2) floor-truncates odd edges
    K = Cin * 9
    R = B * PH * PW

    xp = jnp.pad(x, ((0, 0), (0, 0), (1, 1), (1, 1)))
    # 3x3 taps; K index = ci*9 + ki*3 + kj, matching w.reshape(Cout, Cin*9).
    taps = [xp[:, :, ki:ki + 2 * OH - 1:2, kj:kj + 2 * OW - 1:2]
            for ki in range(3) for kj in range(3)]
    pmat = jnp.stack(taps, axis=2).reshape(B, K, OH, OW)

    phases = []
    for di in (0, 1):
        for dj in (0, 1):
            q = pmat[:, :, di:2 * PH:2, dj:2 * PW:2]    # (B, K, PH, PW)
            if spatial_lanes:
                q = q.transpose(1, 0, 2, 3).reshape(K, R)
            else:
                q = q.transpose(0, 2, 3, 1).reshape(R, K)
            phases.append(q)

    wmat = w.reshape(Cout, K)
    if spatial_lanes:
        wk, bk = wmat, b.reshape(Cout, 1)
        out_shape = (Cout, R)
    else:
        wk, bk = wmat.T, b.reshape(1, Cout)
        out_shape = (R, Cout)

    y = pl.pallas_call(
        functools.partial(_conv_relu_pool_kernel, spatial_lanes=spatial_lanes),
        out_shape=jax.ShapeDtypeStruct(out_shape, jnp.float32),
        grid=(1,),
        in_specs=_full_specs(*(p.shape for p in phases), wk.shape, bk.shape),
        out_specs=_full_specs(out_shape)[0],
    )(*phases, wk, bk)

    if spatial_lanes:
        return y.reshape(Cout, B, PH, PW).transpose(1, 0, 2, 3)
    return y.reshape(B, PH, PW, Cout).transpose(0, 3, 1, 2)


def bilstm_head(fl, p):
    """Fused biLSTM (seq_len = fl.shape[0], batch = 1) + linear1 + linear2 + softmax.

    Reproduces lstm_layer(fl.unsqueeze(1)) with batch_first=False followed by
    [:, -1, :] (which squeezes the batch=1 axis), then the classification head.
    """
    T = fl.shape[0]
    H = p["lstm_w_hh_f"].shape[0]

    wih = jnp.concatenate([p["lstm_w_ih_f"], p["lstm_w_ih_b"]], axis=1)       # (H, 8H)
    bih = jnp.concatenate([p["lstm_b_f"], p["lstm_b_b"]]).reshape(1, 8 * H)   # (1, 8H)
    w1 = p["lin1_w"].T                                                        # (2H, 32)
    b1 = p["lin1_b"].reshape(1, -1)
    w2 = p["lin2_w"].T                                                        # (32, 4)
    b2 = p["lin2_b"].reshape(1, -1)

    ins = (fl, wih, bih, p["lstm_w_hh_f"], p["lstm_w_hh_b"], w1, b1, w2, b2)
    out_shapes = (jax.ShapeDtypeStruct((T, 2 * H), jnp.float32),
                  jax.ShapeDtypeStruct((T, w1.shape[1]), jnp.float32),
                  jax.ShapeDtypeStruct((T, w2.shape[1]), jnp.float32),
                  jax.ShapeDtypeStruct((T, w2.shape[1]), jnp.float32))

    lstm_out, l1_out, l2_out, probs = pl.pallas_call(
        _bilstm_head_kernel,
        out_shape=out_shapes,
        grid=(1,),
        in_specs=_full_specs(*(a.shape for a in ins)),
        out_specs=tuple(_full_specs(*(s.shape for s in out_shapes))),
        scratch_shapes=[pltpu.VMEM((T, 8 * H), jnp.float32)],   # hoisted x-projection
    )(*ins)
    return lstm_out, l1_out, l2_out, probs


def forward(params, input_logits):
    cnn1_out = conv_relu_pool(input_logits, params["conv1_w"], params["conv1_b"],
                              spatial_lanes=True)   # lane-dense spatial output
    cnn2_out = conv_relu_pool(cnn1_out, params["conv2_w"], params["conv2_b"])
    cnn3_out = conv_relu_pool(cnn2_out, params["conv3_w"], params["conv3_b"])
    fl = cnn3_out.reshape(cnn3_out.shape[0], -1)                      # (B, 128)
    lstm_out, l1_out, l2_out, output = bilstm_head(fl, params)
    dr_out = l1_out  # TODO(synk): nn.Dropout(0.5) is identity at inference; training-mode RNG mask not replicated.
    return (cnn1_out, cnn2_out, cnn3_out, fl, lstm_out, l1_out, dr_out, l2_out, output)


def init_params(key):
    """Deterministic synthetic parameters with the module's exact shapes."""
    shapes = {
        "conv1_w": (16, 1, 3, 3), "conv1_b": (16,),
        "conv2_w": (32, 16, 3, 3), "conv2_b": (32,),
        "conv3_w": (64, 32, 3, 3), "conv3_b": (64,),
        # LSTM weights stored pre-transposed as (in, 4*hidden); bias = b_ih + b_hh.
        "lstm_w_ih_f": (128, 512), "lstm_w_hh_f": (128, 512), "lstm_b_f": (512,),
        "lstm_w_ih_b": (128, 512), "lstm_w_hh_b": (128, 512), "lstm_b_b": (512,),
        "lin1_w": (32, 256), "lin1_b": (32,),
        "lin2_w": (4, 32), "lin2_b": (4,),
    }
    keys = jax.random.split(key, len(shapes))
    return {name: 0.05 * jax.random.normal(k, shp, jnp.float32)
            for (name, shp), k in zip(shapes.items(), keys)}


if __name__ == "__main__":
    root = jax.random.PRNGKey(0)
    pkey, xkey = jax.random.split(root)
    params = init_params(pkey)

    # Input (B=2, C=1, H=48, W=112): the smallest batch-2 MFCC-like map whose
    # CNN stack flattens to exactly 128 features (= nn.LSTM input size).
    x = jax.random.normal(xkey, (2, 1, 48, 112), jnp.float32)

    outs = jax.jit(functools.partial(forward, params))(x)
    outs = jax.block_until_ready(outs)

    (cnn1_out, cnn2_out, cnn3_out, fl, lstm_out, l1_out, dr_out, l2_out, output) = outs
    assert cnn1_out.shape == (2, 16, 12, 28)
    assert cnn2_out.shape == (2, 32, 3, 7)
    assert cnn3_out.shape == (2, 64, 1, 2)
    assert fl.shape == (2, 128)
    assert lstm_out.shape == (2, 256)
    assert l1_out.shape == (2, 32) and dr_out.shape == (2, 32)
    assert l2_out.shape == (2, 4) and output.shape == (2, 4)
    assert bool(jnp.all(jnp.isfinite(output)))
    assert bool(jnp.allclose(jnp.sum(output, axis=1), 1.0, atol=1e-5))
    print("KERNEL_OK")
</pallas_src>

<mosaic_0001>
module attributes {stable_mosaic.version = 11 : i64} {
  func.func @_conv_relu_pool_kernel(%arg0: i32, %arg1: memref<9x672xf32, #tpu.memory_space<vmem>>, %arg2: memref<9x672xf32, #tpu.memory_space<vmem>>, %arg3: memref<9x672xf32, #tpu.memory_space<vmem>>, %arg4: memref<9x672xf32, #tpu.memory_space<vmem>>, %arg5: memref<16x9xf32, #tpu.memory_space<vmem>>, %arg6: memref<16x1xf32, #tpu.memory_space<vmem>>, %arg7: memref<16x672xf32, #tpu.memory_space<vmem>>) attributes {dimension_semantics = [#tpu.dimension_semantics<arbitrary>], iteration_bounds = array<i64: 1>, scalar_prefetch = 0 : i64, scratch_operands = 0 : i64, tpu.core_type = #tpu.core_type<tc>, window_params = [{pipeline_mode = #tpu.pipeline_mode<synchronous>, transform_indices = @transform_0, window_bounds = array<i64: 9, 672>}, {pipeline_mode = #tpu.pipeline_mode<synchronous>, transform_indices = @transform_1, window_bounds = array<i64: 9, 672>}, {pipeline_mode = #tpu.pipeline_mode<synchronous>, transform_indices = @transform_2, window_bounds = array<i64: 9, 672>}, {pipeline_mode = #tpu.pipeline_mode<synchronous>, transform_indices = @transform_3, window_bounds = array<i64: 9, 672>}, {pipeline_mode = #tpu.pipeline_mode<synchronous>, transform_indices = @transform_4, window_bounds = array<i64: 16, 9>}, {pipeline_mode = #tpu.pipeline_mode<synchronous>, transform_indices = @transform_5, window_bounds = array<i64: 16, 1>}, {pipeline_mode = #tpu.pipeline_mode<synchronous>, transform_indices = @transform_6, window_bounds = array<i64: 16, 672>}]} {
    %c0 = arith.constant 0 : index
    %c0_0 = arith.constant 0 : index
    %0 = vector.load %arg5[%c0, %c0_0] : memref<16x9xf32, #tpu.memory_space<vmem>>, vector<16x9xf32>
    %c0_1 = arith.constant 0 : index
    %c0_2 = arith.constant 0 : index
    %1 = vector.load %arg6[%c0_1, %c0_2] : memref<16x1xf32, #tpu.memory_space<vmem>>, vector<16x1xf32>
    %c0_3 = arith.constant 0 : index
    %c0_4 = arith.constant 0 : index
    %2 = vector.load %arg1[%c0_3, %c0_4] : memref<9x672xf32, #tpu.memory_space<vmem>>, vector<9x672xf32>
    %cst = arith.constant dense<0.000000e+00> : vector<16x672xf32>
    %3 = tpu.matmul %0, %2, %cst {dimension_numbers = #tpu.dot_dimension_numbers<[1], [0], [0], [1], [0, 0, 1, 1], [], []>} : vector<16x9xf32>, vector<9x672xf32>, vector<16x672xf32> -> vector<16x672xf32>
    %4 = vector.broadcast %1 : vector<16x1xf32> to vector<16x672xf32>
    %5 = arith.addf %3, %4 : vector<16x672xf32>
    %cst_5 = arith.constant 0.000000e+00 : f32
    %6 = vector.broadcast %cst_5 : f32 to vector<16x672xf32>
    %7 = arith.maximumf %5, %6 : vector<16x672xf32>
    %c0_6 = arith.constant 0 : index
    %c0_7 = arith.constant 0 : index
    %8 = vector.load %arg2[%c0_6, %c0_7] : memref<9x672xf32, #tpu.memory_space<vmem>>, vector<9x672xf32>
    %cst_8 = arith.constant dense<0.000000e+00> : vector<16x672xf32>
    %9 = tpu.matmul %0, %8, %cst_8 {dimension_numbers = #tpu.dot_dimension_numbers<[1], [0], [0], [1], [0, 0, 1, 1], [], []>} : vector<16x9xf32>, vector<9x672xf32>, vector<16x672xf32> -> vector<16x672xf32>
    %10 = vector.broadcast %1 : vector<16x1xf32> to vector<16x672xf32>
    %11 = arith.addf %9, %10 : vector<16x672xf32>
    %cst_9 = arith.constant 0.000000e+00 : f32
    %12 = vector.broadcast %cst_9 : f32 to vector<16x672xf32>
    %13 = arith.maximumf %11, %12 : vector<16x672xf32>
    %14 = arith.maximumf %7, %13 : vector<16x672xf32>
    %c0_10 = arith.constant 0 : index
    %c0_11 = arith.constant 0 : index
    %15 = vector.load %arg3[%c0_10, %c0_11] : memref<9x672xf32, #tpu.memory_space<vmem>>, vector<9x672xf32>
    %cst_12 = arith.constant dense<0.000000e+00> : vector<16x672xf32>
    %16 = tpu.matmul %0, %15, %cst_12 {dimension_numbers = #tpu.dot_dimension_numbers<[1], [0], [0], [1], [0, 0, 1, 1], [], []>} : vector<16x9xf32>, vector<9x672xf32>, vector<16x672xf32> -> vector<16x672xf32>
    %17 = vector.broadcast %1 : vector<16x1xf32> to vector<16x672xf32>
    %18 = arith.addf %16, %17 : vector<16x672xf32>
    %cst_13 = arith.constant 0.000000e+00 : f32
    %19 = vector.broadcast %cst_13 : f32 to vector<16x672xf32>
    %20 = arith.maximumf %18, %19 : vector<16x672xf32>
    %c0_14 = arith.constant 0 : index
    %c0_15 = arith.constant 0 : index
    %21 = vector.load %arg4[%c0_14, %c0_15] : memref<9x672xf32, #tpu.memory_space<vmem>>, vector<9x672xf32>
    %cst_16 = arith.constant dense<0.000000e+00> : vector<16x672xf32>
    %22 = tpu.matmul %0, %21, %cst_16 {dimension_numbers = #tpu.dot_dimension_numbers<[1], [0], [0], [1], [0, 0, 1, 1], [], []>} : vector<16x9xf32>, vector<9x672xf32>, vector<16x672xf32> -> vector<16x672xf32>
    %23 = vector.broadcast %1 : vector<16x1xf32> to vector<16x672xf32>
    %24 = arith.addf %22, %23 : vector<16x672xf32>
    %cst_17 = arith.constant 0.000000e+00 : f32
    %25 = vector.broadcast %cst_17 : f32 to vector<16x672xf32>
    %26 = arith.maximumf %24, %25 : vector<16x672xf32>
    %27 = arith.maximumf %20, %26 : vector<16x672xf32>
    %28 = arith.maximumf %14, %27 : vector<16x672xf32>
    %c0_18 = arith.constant 0 : index
    %c0_19 = arith.constant 0 : index
    %29 = vector.load %arg7[%c0_18, %c0_19] : memref<16x672xf32, #tpu.memory_space<vmem>>, vector<16x672xf32>
    tpu.vector_store %arg7[%c0_18, %c0_19], %28 {strides = array<i32>} : memref<16x672xf32, #tpu.memory_space<vmem>>, vector<16x672xf32>,
    return
  }
  func.func @transform_0(%arg0: i32) -> (i32, i32) {
    %c0_i32 = arith.constant 0 : i32
    %c0_i32_0 = arith.constant 0 : i32
    %c0_i32_1 = arith.constant 0 : i32
    return %c0_i32, %c0_i32_0 : i32, i32
  }
  func.func @transform_1(%arg0: i32) -> (i32, i32) {
    %c0_i32 = arith.constant 0 : i32
    %c0_i32_0 = arith.constant 0 : i32
    %c0_i32_1 = arith.constant 0 : i32
    return %c0_i32, %c0_i32_0 : i32, i32
  }
  func.func @transform_2(%arg0: i32) -> (i32, i32) {
    %c0_i32 = arith.constant 0 : i32
    %c0_i32_0 = arith.constant 0 : i32
    %c0_i32_1 = arith.constant 0 : i32
    return %c0_i32, %c0_i32_0 : i32, i32
  }
  func.func @transform_3(%arg0: i32) -> (i32, i32) {
    %c0_i32 = arith.constant 0 : i32
    %c0_i32_0 = arith.constant 0 : i32
    %c0_i32_1 = arith.constant 0 : i32
    return %c0_i32, %c0_i32_0 : i32, i32
  }
  func.func @transform_4(%arg0: i32) -> (i32, i32) {
    %c0_i32 = arith.constant 0 : i32
    %c0_i32_0 = arith.constant 0 : i32
    %c0_i32_1 = arith.constant 0 : i32
    return %c0_i32, %c0_i32_0 : i32, i32
  }
  func.func @transform_5(%arg0: i32) -> (i32, i32) {
    %c0_i32 = arith.constant 0 : i32
    %c0_i32_0 = arith.constant 0 : i32
    %c0_i32_1 = arith.constant 0 : i32
    return %c0_i32, %c0_i32_0 : i32, i32
  }
  func.func @transform_6(%arg0: i32) -> (i32, i32) {
    %c0_i32 = arith.constant 0 : i32
    %c0_i32_0 = arith.constant 0 : i32
    %c0_i32_1 = arith.constant 0 : i32
    return %c0_i32, %c0_i32_0 : i32, i32
  }
}

module attributes {stable_mosaic.version = 11 : i64} {
  func.func @_conv_relu_pool_kernel(%arg0: i32, %arg1: memref<42x144xf32, #tpu.memory_space<vmem>>, %arg2: memref<42x144xf32, #tpu.memory_space<vmem>>, %arg3: memref<42x144xf32, #tpu.memory_space<vmem>>, %arg4: memref<42x144xf32, #tpu.memory_space<vmem>>, %arg5: memref<144x32xf32, #tpu.memory_space<vmem>>, %arg6: memref<1x32xf32, #tpu.memory_space<vmem>>, %arg7: memref<42x32xf32, #tpu.memory_space<vmem>>) attributes {dimension_semantics = [#tpu.dimension_semantics<arbitrary>], iteration_bounds = array<i64: 1>, scalar_prefetch = 0 : i64, scratch_operands = 0 : i64, tpu.core_type = #tpu.core_type<tc>, window_params = [{pipeline_mode = #tpu.pipeline_mode<synchronous>, transform_indices = @transform_0, window_bounds = array<i64: 42, 144>}, {pipeline_mode = #tpu.pipeline_mode<synchronous>, transform_indices = @transform_1, window_bounds = array<i64: 42, 144>}, {pipeline_mode = #tpu.pipeline_mode<synchronous>, transform_indices = @transform_2, window_bounds = array<i64: 42, 144>}, {pipeline_mode = #tpu.pipeline_mode<synchronous>, transform_indices = @transform_3, window_bounds = array<i64: 42, 144>}, {pipeline_mode = #tpu.pipeline_mode<synchronous>, transform_indices = @transform_4, window_bounds = array<i64: 144, 32>}, {pipeline_mode = #tpu.pipeline_mode<synchronous>, transform_indices = @transform_5, window_bounds = array<i64: 1, 32>}, {pipeline_mode = #tpu.pipeline_mode<synchronous>, transform_indices = @transform_6, window_bounds = array<i64: 42, 32>}]} {
    %c0 = arith.constant 0 : index
    %c0_0 = arith.constant 0 : index
    %0 = vector.load %arg5[%c0, %c0_0] : memref<144x32xf32, #tpu.memory_space<vmem>>, vector<144x32xf32>
    %c0_1 = arith.constant 0 : index
    %c0_2 = arith.constant 0 : index
    %1 = vector.load %arg6[%c0_1, %c0_2] : memref<1x32xf32, #tpu.memory_space<vmem>>, vector<1x32xf32>
    %c0_3 = arith.constant 0 : index
    %c0_4 = arith.constant 0 : index
    %2 = vector.load %arg1[%c0_3, %c0_4] : memref<42x144xf32, #tpu.memory_space<vmem>>, vector<42x144xf32>
    %cst = arith.constant dense<0.000000e+00> : vector<42x32xf32>
    %3 = tpu.matmul %2, %0, %cst {dimension_numbers = #tpu.dot_dimension_numbers<[1], [0], [0], [1], [0, 0, 1, 1], [], []>} : vector<42x144xf32>, vector<144x32xf32>, vector<42x32xf32> -> vector<42x32xf32>
    %4 = vector.broadcast %1 : vector<1x32xf32> to vector<42x32xf32>
    %5 = arith.addf %3, %4 : vector<42x32xf32>
    %cst_5 = arith.constant 0.000000e+00 : f32
    %6 = vector.broadcast %cst_5 : f32 to vector<42x32xf32>
    %7 = arith.maximumf %5, %6 : vector<42x32xf32>
    %c0_6 = arith.constant 0 : index
    %c0_7 = arith.constant 0 : index
    %8 = vector.load %arg2[%c0_6, %c0_7] : memref<42x144xf32, #tpu.memory_space<vmem>>, vector<42x144xf32>
    %cst_8 = arith.constant dense<0.000000e+00> : vector<42x32xf32>
    %9 = tpu.matmul %8, %0, %cst_8 {dimension_numbers = #tpu.dot_dimension_numbers<[1], [0], [0], [1], [0, 0, 1, 1], [], []>} : vector<42x144xf32>, vector<144x32xf32>, vector<42x32xf32> -> vector<42x32xf32>
    %10 = vector.broadcast %1 : vector<1x32xf32> to vector<42x32xf32>
    %11 = arith.addf %9, %10 : vector<42x32xf32>
    %cst_9 = arith.constant 0.000000e+00 : f32
    %12 = vector.broadcast %cst_9 : f32 to vector<42x32xf32>
    %13 = arith.maximumf %11, %12 : vector<42x32xf32>
    %14 = arith.maximumf %7, %13 : vector<42x32xf32>
    %c0_10 = arith.constant 0 : index
    %c0_11 = arith.constant 0 : index
    %15 = vector.load %arg3[%c0_10, %c0_11] : memref<42x144xf32, #tpu.memory_space<vmem>>, vector<42x144xf32>
    %cst_12 = arith.constant dense<0.000000e+00> : vector<42x32xf32>
    %16 = tpu.matmul %15, %0, %cst_12 {dimension_numbers = #tpu.dot_dimension_numbers<[1], [0], [0], [1], [0, 0, 1, 1], [], []>} : vector<42x144xf32>, vector<144x32xf32>, vector<42x32xf32> -> vector<42x32xf32>
    %17 = vector.broadcast %1 : vector<1x32xf32> to vector<42x32xf32>
    %18 = arith.addf %16, %17 : vector<42x32xf32>
    %cst_13 = arith.constant 0.000000e+00 : f32
    %19 = vector.broadcast %cst_13 : f32 to vector<42x32xf32>
    %20 = arith.maximumf %18, %19 : vector<42x32xf32>
    %c0_14 = arith.constant 0 : index
    %c0_15 = arith.constant 0 : index
    %21 = vector.load %arg4[%c0_14, %c0_15] : memref<42x144xf32, #tpu.memory_space<vmem>>, vector<42x144xf32>
    %cst_16 = arith.constant dense<0.000000e+00> : vector<42x32xf32>
    %22 = tpu.matmul %21, %0, %cst_16 {dimension_numbers = #tpu.dot_dimension_numbers<[1], [0], [0], [1], [0, 0, 1, 1], [], []>} : vector<42x144xf32>, vector<144x32xf32>, vector<42x32xf32> -> vector<42x32xf32>
    %23 = vector.broadcast %1 : vector<1x32xf32> to vector<42x32xf32>
    %24 = arith.addf %22, %23 : vector<42x32xf32>
    %cst_17 = arith.constant 0.000000e+00 : f32
    %25 = vector.broadcast %cst_17 : f32 to vector<42x32xf32>
    %26 = arith.maximumf %24, %25 : vector<42x32xf32>
    %27 = arith.maximumf %20, %26 : vector<42x32xf32>
    %28 = arith.maximumf %14, %27 : vector<42x32xf32>
    %c0_18 = arith.constant 0 : index
    %c0_19 = arith.constant 0 : index
    %29 = vector.load %arg7[%c0_18, %c0_19] : memref<42x32xf32, #tpu.memory_space<vmem>>, vector<42x32xf32>
    tpu.vector_store %arg7[%c0_18, %c0_19], %28 {strides = array<i32>} : memref<42x32xf32, #tpu.memory_space<vmem>>, vector<42x32xf32>,
    return
  }
  func.func @transform_0(%arg0: i32) -> (i32, i32) {
    %c0_i32 = arith.constant 0 : i32
    %c0_i32_0 = arith.constant 0 : i32
    %c0_i32_1 = arith.constant 0 : i32
    return %c0_i32, %c0_i32_0 : i32, i32
  }
  func.func @transform_1(%arg0: i32) -> (i32, i32) {
    %c0_i32 = arith.constant 0 : i32
    %c0_i32_0 = arith.constant 0 : i32
    %c0_i32_1 = arith.constant 0 : i32
    return %c0_i32, %c0_i32_0 : i32, i32
  }
  func.func @transform_2(%arg0: i32) -> (i32, i32) {
    %c0_i32 = arith.constant 0 : i32
    %c0_i32_0 = arith.constant 0 : i32
    %c0_i32_1 = arith.constant 0 : i32
    return %c0_i32, %c0_i32_0 : i32, i32
  }
  func.func @transform_3(%arg0: i32) -> (i32, i32) {
    %c0_i32 = arith.constant 0 : i32
    %c0_i32_0 = arith.constant 0 : i32
    %c0_i32_1 = arith.constant 0 : i32
    return %c0_i32, %c0_i32_0 : i32, i32
  }
  func.func @transform_4(%arg0: i32) -> (i32, i32) {
    %c0_i32 = arith.constant 0 : i32
    %c0_i32_0 = arith.constant 0 : i32
    %c0_i32_1 = arith.constant 0 : i32
    return %c0_i32, %c0_i32_0 : i32, i32
  }
  func.func @transform_5(%arg0: i32) -> (i32, i32) {
    %c0_i32 = arith.constant 0 : i32
    %c0_i32_0 = arith.constant 0 : i32
    %c0_i32_1 = arith.constant 0 : i32
    return %c0_i32, %c0_i32_0 : i32, i32
  }
  func.func @transform_6(%arg0: i32) -> (i32, i32) {
    %c0_i32 = arith.constant 0 : i32
    %c0_i32_0 = arith.constant 0 : i32
    %c0_i32_1 = arith.constant 0 : i32
    return %c0_i32, %c0_i32_0 : i32, i32
  }
}

module attributes {stable_mosaic.version = 11 : i64} {
  func.func @_conv_relu_pool_kernel(%arg0: i32, %arg1: memref<4x288xf32, #tpu.memory_space<vmem>>, %arg2: memref<4x288xf32, #tpu.memory_space<vmem>>, %arg3: memref<4x288xf32, #tpu.memory_space<vmem>>, %arg4: memref<4x288xf32, #tpu.memory_space<vmem>>, %arg5: memref<288x64xf32, #tpu.memory_space<vmem>>, %arg6: memref<1x64xf32, #tpu.memory_space<vmem>>, %arg7: memref<4x64xf32, #tpu.memory_space<vmem>>) attributes {dimension_semantics = [#tpu.dimension_semantics<arbitrary>], iteration_bounds = array<i64: 1>, scalar_prefetch = 0 : i64, scratch_operands = 0 : i64, tpu.core_type = #tpu.core_type<tc>, window_params = [{pipeline_mode = #tpu.pipeline_mode<synchronous>, transform_indices = @transform_0, window_bounds = array<i64: 4, 288>}, {pipeline_mode = #tpu.pipeline_mode<synchronous>, transform_indices = @transform_1, window_bounds = array<i64: 4, 288>}, {pipeline_mode = #tpu.pipeline_mode<synchronous>, transform_indices = @transform_2, window_bounds = array<i64: 4, 288>}, {pipeline_mode = #tpu.pipeline_mode<synchronous>, transform_indices = @transform_3, window_bounds = array<i64: 4, 288>}, {pipeline_mode = #tpu.pipeline_mode<synchronous>, transform_indices = @transform_4, window_bounds = array<i64: 288, 64>}, {pipeline_mode = #tpu.pipeline_mode<synchronous>, transform_indices = @transform_5, window_bounds = array<i64: 1, 64>}, {pipeline_mode = #tpu.pipeline_mode<synchronous>, transform_indices = @transform_6, window_bounds = array<i64: 4, 64>}]} {
    %c0 = arith.constant 0 : index
    %c0_0 = arith.constant 0 : index
    %0 = vector.load %arg5[%c0, %c0_0] : memref<288x64xf32, #tpu.memory_space<vmem>>, vector<288x64xf32>
    %c0_1 = arith.constant 0 : index
    %c0_2 = arith.constant 0 : index
    %1 = vector.load %arg6[%c0_1, %c0_2] : memref<1x64xf32, #tpu.memory_space<vmem>>, vector<1x64xf32>
    %c0_3 = arith.constant 0 : index
    %c0_4 = arith.constant 0 : index
    %2 = vector.load %arg1[%c0_3, %c0_4] : memref<4x288xf32, #tpu.memory_space<vmem>>, vector<4x288xf32>
    %cst = arith.constant dense<0.000000e+00> : vector<4x64xf32>
    %3 = tpu.matmul %2, %0, %cst {dimension_numbers = #tpu.dot_dimension_numbers<[1], [0], [0], [1], [0, 0, 1, 1], [], []>} : vector<4x288xf32>, vector<288x64xf32>, vector<4x64xf32> -> vector<4x64xf32>
    %4 = vector.broadcast %1 : vector<1x64xf32> to vector<4x64xf32>
    %5 = arith.addf %3, %4 : vector<4x64xf32>
    %cst_5 = arith.constant 0.000000e+00 : f32
    %6 = vector.broadcast %cst_5 : f32 to vector<4x64xf32>
    %7 = arith.maximumf %5, %6 : vector<4x64xf32>
    %c0_6 = arith.constant 0 : index
    %c0_7 = arith.constant 0 : index
    %8 = vector.load %arg2[%c0_6, %c0_7] : memref<4x288xf32, #tpu.memory_space<vmem>>, vector<4x288xf32>
    %cst_8 = arith.constant dense<0.000000e+00> : vector<4x64xf32>
    %9 = tpu.matmul %8, %0, %cst_8 {dimension_numbers = #tpu.dot_dimension_numbers<[1], [0], [0], [1], [0, 0, 1, 1], [], []>} : vector<4x288xf32>, vector<288x64xf32>, vector<4x64xf32> -> vector<4x64xf32>
    %10 = vector.broadcast %1 : vector<1x64xf32> to vector<4x64xf32>
    %11 = arith.addf %9, %10 : vector<4x64xf32>
    %cst_9 = arith.constant 0.000000e+00 : f32
    %12 = vector.broadcast %cst_9 : f32 to vector<4x64xf32>
    %13 = arith.maximumf %11, %12 : vector<4x64xf32>
    %14 = arith.maximumf %7, %13 : vector<4x64xf32>
    %c0_10 = arith.constant 0 : index
    %c0_11 = arith.constant 0 : index
    %15 = vector.load %arg3[%c0_10, %c0_11] : memref<4x288xf32, #tpu.memory_space<vmem>>, vector<4x288xf32>
    %cst_12 = arith.constant dense<0.000000e+00> : vector<4x64xf32>
    %16 = tpu.matmul %15, %0, %cst_12 {dimension_numbers = #tpu.dot_dimension_numbers<[1], [0], [0], [1], [0, 0, 1, 1], [], []>} : vector<4x288xf32>, vector<288x64xf32>, vector<4x64xf32> -> vector<4x64xf32>
    %17 = vector.broadcast %1 : vector<1x64xf32> to vector<4x64xf32>
    %18 = arith.addf %16, %17 : vector<4x64xf32>
    %cst_13 = arith.constant 0.000000e+00 : f32
    %19 = vector.broadcast %cst_13 : f32 to vector<4x64xf32>
    %20 = arith.maximumf %18, %19 : vector<4x64xf32>
    %c0_14 = arith.constant 0 : index
    %c0_15 = arith.constant 0 : index
    %21 = vector.load %arg4[%c0_14, %c0_15] : memref<4x288xf32, #tpu.memory_space<vmem>>, vector<4x288xf32>
    %cst_16 = arith.constant dense<0.000000e+00> : vector<4x64xf32>
    %22 = tpu.matmul %21, %0, %cst_16 {dimension_numbers = #tpu.dot_dimension_numbers<[1], [0], [0], [1], [0, 0, 1, 1], [], []>} : vector<4x288xf32>, vector<288x64xf32>, vector<4x64xf32> -> vector<4x64xf32>
    %23 = vector.broadcast %1 : vector<1x64xf32> to vector<4x64xf32>
    %24 = arith.addf %22, %23 : vector<4x64xf32>
    %cst_17 = arith.constant 0.000000e+00 : f32
    %25 = vector.broadcast %cst_17 : f32 to vector<4x64xf32>
    %26 = arith.maximumf %24, %25 : vector<4x64xf32>
    %27 = arith.maximumf %20, %26 : vector<4x64xf32>
    %28 = arith.maximumf %14, %27 : vector<4x64xf32>
    %c0_18 = arith.constant 0 : index
    %c0_19 = arith.constant 0 : index
    %29 = vector.load %arg7[%c0_18, %c0_19] : memref<4x64xf32, #tpu.memory_space<vmem>>, vector<4x64xf32>
    tpu.vector_store %arg7[%c0_18, %c0_19], %28 {strides = array<i32>} : memref<4x64xf32, #tpu.memory_space<vmem>>, vector<4x64xf32>,
    return
  }
  func.func @transform_0(%arg0: i32) -> (i32, i32) {
    %c0_i32 = arith.constant 0 : i32
    %c0_i32_0 = arith.constant 0 : i32
    %c0_i32_1 = arith.constant 0 : i32
    return %c0_i32, %c0_i32_0 : i32, i32
  }
  func.func @transform_1(%arg0: i32) -> (i32, i32) {
    %c0_i32 = arith.constant 0 : i32
    %c0_i32_0 = arith.constant 0 : i32
    %c0_i32_1 = arith.constant 0 : i32
    return %c0_i32, %c0_i32_0 : i32, i32
  }
  func.func @transform_2(%arg0: i32) -> (i32, i32) {
    %c0_i32 = arith.constant 0 : i32
    %c0_i32_0 = arith.constant 0 : i32
    %c0_i32_1 = arith.constant 0 : i32
    return %c0_i32, %c0_i32_0 : i32, i32
  }
  func.func @transform_3(%arg0: i32) -> (i32, i32) {
    %c0_i32 = arith.constant 0 : i32
    %c0_i32_0 = arith.constant 0 : i32
    %c0_i32_1 = arith.constant 0 : i32
    return %c0_i32, %c0_i32_0 : i32, i32
  }
  func.func @transform_4(%arg0: i32) -> (i32, i32) {
    %c0_i32 = arith.constant 0 : i32
    %c0_i32_0 = arith.constant 0 : i32
    %c0_i32_1 = arith.constant 0 : i32
    return %c0_i32, %c0_i32_0 : i32, i32
  }
  func.func @transform_5(%arg0: i32) -> (i32, i32) {
    %c0_i32 = arith.constant 0 : i32
    %c0_i32_0 = arith.constant 0 : i32
    %c0_i32_1 = arith.constant 0 : i32
    return %c0_i32, %c0_i32_0 : i32, i32
  }
  func.func @transform_6(%arg0: i32) -> (i32, i32) {
    %c0_i32 = arith.constant 0 : i32
    %c0_i32_0 = arith.constant 0 : i32
    %c0_i32_1 = arith.constant 0 : i32
    return %c0_i32, %c0_i32_0 : i32, i32
  }
}

module attributes {stable_mosaic.version = 11 : i64} {
  func.func @_bilstm_head_kernel(%arg0: i32, %arg1: memref<2x128xf32, #tpu.memory_space<vmem>>, %arg2: memref<128x1024xf32, #tpu.memory_space<vmem>>, %arg3: memref<1x1024xf32, #tpu.memory_space<vmem>>, %arg4: memref<128x512xf32, #tpu.memory_space<vmem>>, %arg5: memref<128x512xf32, #tpu.memory_space<vmem>>, %arg6: memref<256x32xf32, #tpu.memory_space<vmem>>, %arg7: memref<1x32xf32, #tpu.memory_space<vmem>>, %arg8: memref<32x4xf32, #tpu.memory_space<vmem>>, %arg9: memref<1x4xf32, #tpu.memory_space<vmem>>, %arg10: memref<2x256xf32, #tpu.memory_space<vmem>>, %arg11: memref<2x32xf32, #tpu.memory_space<vmem>>, %arg12: memref<2x4xf32, #tpu.memory_space<vmem>>, %arg13: memref<2x4xf32, #tpu.memory_space<vmem>>, %arg14: memref<2x1024xf32, #tpu.memory_space<vmem>>) attributes {dimension_semantics = [#tpu.dimension_semantics<arbitrary>], iteration_bounds = array<i64: 1>, scalar_prefetch = 0 : i64, scratch_operands = 1 : i64, tpu.core_type = #tpu.core_type<tc>, window_params = [{pipeline_mode = #tpu.pipeline_mode<synchronous>, transform_indices = @transform_0, window_bounds = array<i64: 2, 128>}, {pipeline_mode = #tpu.pipeline_mode<synchronous>, transform_indices = @transform_1, window_bounds = array<i64: 128, 1024>}, {pipeline_mode = #tpu.pipeline_mode<synchronous>, transform_indices = @transform_2, window_bounds = array<i64: 1, 1024>}, {pipeline_mode = #tpu.pipeline_mode<synchronous>, transform_indices = @transform_3, window_bounds = array<i64: 128, 512>}, {pipeline_mode = #tpu.pipeline_mode<synchronous>, transform_indices = @transform_4, window_bounds = array<i64: 128, 512>}, {pipeline_mode = #tpu.pipeline_mode<synchronous>, transform_indices = @transform_5, window_bounds = array<i64: 256, 32>}, {pipeline_mode = #tpu.pipeline_mode<synchronous>, transform_indices = @transform_6, window_bounds = array<i64: 1, 32>}, {pipeline_mode = #tpu.pipeline_mode<synchronous>, transform_indices = @transform_7, window_bounds = array<i64: 32, 4>}, {pipeline_mode = #tpu.pipeline_mode<synchronous>, transform_indices = @transform_8, window_bounds = array<i64: 1, 4>}, {pipeline_mode = #tpu.pipeline_mode<synchronous>, transform_indices = @transform_9, window_bounds = array<i64: 2, 256>}, {pipeline_mode = #tpu.pipeline_mode<synchronous>, transform_indices = @transform_10, window_bounds = array<i64: 2, 32>}, {pipeline_mode = #tpu.pipeline_mode<synchronous>, transform_indices = @transform_11, window_bounds = array<i64: 2, 4>}, {pipeline_mode = #tpu.pipeline_mode<synchronous>, transform_indices = @transform_12, window_bounds = array<i64: 2, 4>}]} {
    %c0 = arith.constant 0 : index
    %c0_0 = arith.constant 0 : index
    %0 = vector.load %arg1[%c0, %c0_0] : memref<2x128xf32, #tpu.memory_space<vmem>>, vector<2x128xf32>
    %c0_1 = arith.constant 0 : index
    %c0_2 = arith.constant 0 : index
    %1 = vector.load %arg2[%c0_1, %c0_2] : memref<128x1024xf32, #tpu.memory_space<vmem>>, vector<128x1024xf32>
    %cst = arith.constant dense<0.000000e+00> : vector<2x1024xf32>
    %2 = tpu.matmul %0, %1, %cst {dimension_numbers = #tpu.dot_dimension_numbers<[1], [0], [0], [1], [0, 0, 1, 1], [], []>} : vector<2x128xf32>, vector<128x1024xf32>, vector<2x1024xf32> -> vector<2x1024xf32>
    %c0_3 = arith.constant 0 : index
    %c0_4 = arith.constant 0 : index
    %3 = vector.load %arg3[%c0_3, %c0_4] : memref<1x1024xf32, #tpu.memory_space<vmem>>, vector<1x1024xf32>
    %4 = vector.broadcast %3 : vector<1x1024xf32> to vector<2x1024xf32>
    %5 = arith.addf %2, %4 : vector<2x1024xf32>
    %c0_5 = arith.constant 0 : index
    %c0_6 = arith.constant 0 : index
    %6 = vector.load %arg14[%c0_5, %c0_6] : memref<2x1024xf32, #tpu.memory_space<vmem>>, vector<2x1024xf32>
    tpu.vector_store %arg14[%c0_5, %c0_6], %5 {strides = array<i32>} : memref<2x1024xf32, #tpu.memory_space<vmem>>, vector<2x1024xf32>,
    %c0_7 = arith.constant 0 : index
    %c0_8 = arith.constant 0 : index
    %7 = vector.load %arg4[%c0_7, %c0_8] : memref<128x512xf32, #tpu.memory_space<vmem>>, vector<128x512xf32>
    %c0_9 = arith.constant 0 : index
    %c0_10 = arith.constant 0 : index
    %8 = vector.load %arg5[%c0_9, %c0_10] : memref<128x512xf32, #tpu.memory_space<vmem>>, vector<128x512xf32>
    %cst_11 = arith.constant 0.000000e+00 : f32
    %9 = vector.broadcast %cst_11 : f32 to vector<1x128xf32>
    %c0_12 = arith.constant 0 : index
    %c0_13 = arith.constant 0 : index
    %10 = vector.load %arg14[%c0_12, %c0_13] : memref<2x1024xf32, #tpu.memory_space<vmem>>, vector<1x1024xf32>
    %11 = vector.extract_strided_slice %10 {offsets = [0, 0], sizes = [1, 512], strides = [1, 1]} : vector<1x1024xf32> to vector<1x512xf32>
    %cst_14 = arith.constant dense<0.000000e+00> : vector<1x512xf32>
    %12 = tpu.matmul %9, %7, %cst_14 {dimension_numbers = #tpu.dot_dimension_numbers<[1], [0], [0], [1], [0, 0, 1, 1], [], []>} : vector<1x128xf32>, vector<128x512xf32>, vector<1x512xf32> -> vector<1x512xf32>
    %13 = arith.addf %11, %12 : vector<1x512xf32>
    %14 = vector.extract_strided_slice %13 {offsets = [0, 0], sizes = [1, 128], strides = [1, 1]} : vector<1x512xf32> to vector<1x128xf32>
    %15 = arith.negf %14 : vector<1x128xf32>
    %16 = math.exp %15 : vector<1x128xf32>
    %cst_15 = arith.constant 1.000000e+00 : f32
    %17 = vector.broadcast %cst_15 : f32 to vector<1x128xf32>
    %18 = arith.addf %17, %16 : vector<1x128xf32>
    %19 = arith.divf %17, %18 : vector<1x128xf32>
    %20 = vector.extract_strided_slice %13 {offsets = [0, 128], sizes = [1, 128], strides = [1, 1]} : vector<1x512xf32> to vector<1x128xf32>
    %21 = arith.negf %20 : vector<1x128xf32>
    %22 = math.exp %21 : vector<1x128xf32>
    %cst_16 = arith.constant 1.000000e+00 : f32
    %23 = vector.broadcast %cst_16 : f32 to vector<1x128xf32>
    %24 = arith.addf %23, %22 : vector<1x128xf32>
    %25 = arith.divf %23, %24 : vector<1x128xf32>
    %26 = vector.extract_strided_slice %13 {offsets = [0, 256], sizes = [1, 128], strides = [1, 1]} : vector<1x512xf32> to vector<1x128xf32>
    %27 = math.tanh %26 : vector<1x128xf32>
    %28 = vector.extract_strided_slice %13 {offsets = [0, 384], sizes = [1, 128], strides = [1, 1]} : vector<1x512xf32> to vector<1x128xf32>
    %29 = arith.negf %28 : vector<1x128xf32>
    %30 = math.exp %29 : vector<1x128xf32>
    %cst_17 = arith.constant 1.000000e+00 : f32
    %31 = vector.broadcast %cst_17 : f32 to vector<1x128xf32>
    %32 = arith.addf %31, %30 : vector<1x128xf32>
    %33 = arith.divf %31, %32 : vector<1x128xf32>
    %34 = arith.mulf %25, %9 : vector<1x128xf32>
    %35 = arith.mulf %19, %27 : vector<1x128xf32>
    %36 = arith.addf %34, %35 : vector<1x128xf32>
    %37 = math.tanh %36 : vector<1x128xf32>
    %38 = arith.mulf %33, %37 : vector<1x128xf32>
    %c0_18 = arith.constant 0 : index
    %c0_19 = arith.constant 0 : index
    %39 = vector.load %arg10[%c0_18, %c0_19] : memref<2x256xf32, #tpu.memory_space<vmem>>, vector<1x128xf32>
    tpu.vector_store %arg10[%c0_18, %c0_19], %38 {strides = array<i32>} : memref<2x256xf32, #tpu.memory_space<vmem>>, vector<1x128xf32>,
    %c1 = arith.constant 1 : index
    %c0_20 = arith.constant 0 : index
    %40 = vector.load %arg14[%c1, %c0_20] : memref<2x1024xf32, #tpu.memory_space<vmem>>, vector<1x1024xf32>
    %41 = vector.extract_strided_slice %40 {offsets = [0, 512], sizes = [1, 512], strides = [1, 1]} : vector<1x1024xf32> to vector<1x512xf32>
    %cst_21 = arith.constant dense<0.000000e+00> : vector<1x512xf32>
    %42 = tpu.matmul %9, %8, %cst_21 {dimension_numbers = #tpu.dot_dimension_numbers<[1], [0], [0], [1], [0, 0, 1, 1], [], []>} : vector<1x128xf32>, vector<128x512xf32>, vector<1x512xf32> -> vector<1x512xf32>
    %43 = arith.addf %41, %42 : vector<1x512xf32>
    %44 = vector.extract_strided_slice %43 {offsets = [0, 0], sizes = [1, 128], strides = [1, 1]} : vector<1x512xf32> to vector<1x128xf32>
    %45 = arith.negf %44 : vector<1x128xf32>
    %46 = math.exp %45 : vector<1x128xf32>
    %cst_22 = arith.constant 1.000000e+00 : f32
    %47 = vector.broadcast %cst_22 : f32 to vector<1x128xf32>
    %48 = arith.addf %47, %46 : vector<1x128xf32>
    %49 = arith.divf %47, %48 : vector<1x128xf32>
    %50 = vector.extract_strided_slice %43 {offsets = [0, 128], sizes = [1, 128], strides = [1, 1]} : vector<1x512xf32> to vector<1x128xf32>
    %51 = arith.negf %50 : vector<1x128xf32>
    %52 = math.exp %51 : vector<1x128xf32>
    %cst_23 = arith.constant 1.000000e+00 : f32
    %53 = vector.broadcast %cst_23 : f32 to vector<1x128xf32>
    %54 = arith.addf %53, %52 : vector<1x128xf32>
    %55 = arith.divf %53, %54 : vector<1x128xf32>
    %56 = vector.extract_strided_slice %43 {offsets = [0, 256], sizes = [1, 128], strides = [1, 1]} : vector<1x512xf32> to vector<1x128xf32>
    %57 = math.tanh %56 : vector<1x128xf32>
    %58 = vector.extract_strided_slice %43 {offsets = [0, 384], sizes = [1, 128], strides = [1, 1]} : vector<1x512xf32> to vector<1x128xf32>
    %59 = arith.negf %58 : vector<1x128xf32>
    %60 = math.exp %59 : vector<1x128xf32>
    %cst_24 = arith.constant 1.000000e+00 : f32
    %61 = vector.broadcast %cst_24 : f32 to vector<1x128xf32>
    %62 = arith.addf %61, %60 : vector<1x128xf32>
    %63 = arith.divf %61, %62 : vector<1x128xf32>
    %64 = arith.mulf %55, %9 : vector<1x128xf32>
    %65 = arith.mulf %49, %57 : vector<1x128xf32>
    %66 = arith.addf %64, %65 : vector<1x128xf32>
    %67 = math.tanh %66 : vector<1x128xf32>
    %68 = arith.mulf %63, %67 : vector<1x128xf32>
    %c1_25 = arith.constant 1 : index
    %c128 = arith.constant 128 : index
    %69 = vector.load %arg10[%c1_25, %c128] : memref<2x256xf32, #tpu.memory_space<vmem>>, vector<1x128xf32>
    tpu.vector_store %arg10[%c1_25, %c128], %68 {strides = array<i32>} : memref<2x256xf32, #tpu.memory_space<vmem>>, vector<1x128xf32>,
    %c1_26 = arith.constant 1 : index
    %c0_27 = arith.constant 0 : index
    %70 = vector.load %arg14[%c1_26, %c0_27] : memref<2x1024xf32, #tpu.memory_space<vmem>>, vector<1x1024xf32>
    %71 = vector.extract_strided_slice %70 {offsets = [0, 0], sizes = [1, 512], strides = [1, 1]} : vector<1x1024xf32> to vector<1x512xf32>
    %cst_28 = arith.constant dense<0.000000e+00> : vector<1x512xf32>
    %72 = tpu.matmul %38, %7, %cst_28 {dimension_numbers = #tpu.dot_dimension_numbers<[1], [0], [0], [1], [0, 0, 1, 1], [], []>} : vector<1x128xf32>, vector<128x512xf32>, vector<1x512xf32> -> vector<1x512xf32>
    %73 = arith.addf %71, %72 : vector<1x512xf32>
    %74 = vector.extract_strided_slice %73 {offsets = [0, 0], sizes = [1, 128], strides = [1, 1]} : vector<1x512xf32> to vector<1x128xf32>
    %75 = arith.negf %74 : vector<1x128xf32>
    %76 = math.exp %75 : vector<1x128xf32>
    %cst_29 = arith.constant 1.000000e+00 : f32
    %77 = vector.broadcast %cst_29 : f32 to vector<1x128xf32>
    %78 = arith.addf %77, %76 : vector<1x128xf32>
    %79 = arith.divf %77, %78 : vector<1x128xf32>
    %80 = vector.extract_strided_slice %73 {offsets = [0, 128], sizes = [1, 128], strides = [1, 1]} : vector<1x512xf32> to vector<1x128xf32>
    %81 = arith.negf %80 : vector<1x128xf32>
    %82 = math.exp %81 : vector<1x128xf32>
    %cst_30 = arith.constant 1.000000e+00 : f32
    %83 = vector.broadcast %cst_30 : f32 to vector<1x128xf32>
    %84 = arith.addf %83, %82 : vector<1x128xf32>
    %85 = arith.divf %83, %84 : vector<1x128xf32>
    %86 = vector.extract_strided_slice %73 {offsets = [0, 256], sizes = [1, 128], strides = [1, 1]} : vector<1x512xf32> to vector<1x128xf32>
    %87 = math.tanh %86 : vector<1x128xf32>
    %88 = vector.extract_strided_slice %73 {offsets = [0, 384], sizes = [1, 128], strides = [1, 1]} : vector<1x512xf32> to vector<1x128xf32>
    %89 = arith.negf %88 : vector<1x128xf32>
    %90 = math.exp %89 : vector<1x128xf32>
    %cst_31 = arith.constant 1.000000e+00 : f32
    %91 = vector.broadcast %cst_31 : f32 to vector<1x128xf32>
    %92 = arith.addf %91, %90 : vector<1x128xf32>
    %93 = arith.divf %91, %92 : vector<1x128xf32>
    %94 = arith.mulf %85, %36 : vector<1x128xf32>
    %95 = arith.mulf %79, %87 : vector<1x128xf32>
    %96 = arith.addf %94, %95 : vector<1x128xf32>
    %97 = math.tanh %96 : vector<1x128xf32>
    %98 = arith.mulf %93, %97 : vector<1x128xf32>
    %c1_32 = arith.constant 1 : index
    %c0_33 = arith.constant 0 : index
    %99 = vector.load %arg10[%c1_32, %c0_33] : memref<2x256xf32, #tpu.memory_space<vmem>>, vector<1x128xf32>
    tpu.vector_store %arg10[%c1_32, %c0_33], %98 {strides = array<i32>} : memref<2x256xf32, #tpu.memory_space<vmem>>, vector<1x128xf32>,
    %c0_34 = arith.constant 0 : index
    %c0_35 = arith.constant 0 : index
    %100 = vector.load %arg14[%c0_34, %c0_35] : memref<2x1024xf32, #tpu.memory_space<vmem>>, vector<1x1024xf32>
    %101 = vector.extract_strided_slice %100 {offsets = [0, 512], sizes = [1, 512], strides = [1, 1]} : vector<1x1024xf32> to vector<1x512xf32>
    %cst_36 = arith.constant dense<0.000000e+00> : vector<1x512xf32>
    %102 = tpu.matmul %68, %8, %cst_36 {dimension_numbers = #tpu.dot_dimension_numbers<[1], [0], [0], [1], [0, 0, 1, 1], [], []>} : vector<1x128xf32>, vector<128x512xf32>, vector<1x512xf32> -> vector<1x512xf32>
    %103 = arith.addf %101, %102 : vector<1x512xf32>
    %104 = vector.extract_strided_slice %103 {offsets = [0, 0], sizes = [1, 128], strides = [1, 1]} : vector<1x512xf32> to vector<1x128xf32>
    %105 = arith.negf %104 : vector<1x128xf32>
    %106 = math.exp %105 : vector<1x128xf32>
    %cst_37 = arith.constant 1.000000e+00 : f32
    %107 = vector.broadcast %cst_37 : f32 to vector<1x128xf32>
    %108 = arith.addf %107, %106 : vector<1x128xf32>
    %109 = arith.divf %107, %108 : vector<1x128xf32>
    %110 = vector.extract_strided_slice %103 {offsets = [0, 128], sizes = [1, 128], strides = [1, 1]} : vector<1x512xf32> to vector<1x128xf32>
    %111 = arith.negf %110 : vector<1x128xf32>
    %112 = math.exp %111 : vector<1x128xf32>
    %cst_38 = arith.constant 1.000000e+00 : f32
    %113 = vector.broadcast %cst_38 : f32 to vector<1x128xf32>
    %114 = arith.addf %113, %112 : vector<1x128xf32>
    %115 = arith.divf %113, %114 : vector<1x128xf32>
    %116 = vector.extract_strided_slice %103 {offsets = [0, 256], sizes = [1, 128], strides = [1, 1]} : vector<1x512xf32> to vector<1x128xf32>
    %117 = math.tanh %116 : vector<1x128xf32>
    %118 = vector.extract_strided_slice %103 {offsets = [0, 384], sizes = [1, 128], strides = [1, 1]} : vector<1x512xf32> to vector<1x128xf32>
    %119 = arith.negf %118 : vector<1x128xf32>
    %120 = math.exp %119 : vector<1x128xf32>
    %cst_39 = arith.constant 1.000000e+00 : f32
    %121 = vector.broadcast %cst_39 : f32 to vector<1x128xf32>
    %122 = arith.addf %121, %120 : vector<1x128xf32>
    %123 = arith.divf %121, %122 : vector<1x128xf32>
    %124 = arith.mulf %115, %66 : vector<1x128xf32>
    %125 = arith.mulf %109, %117 : vector<1x128xf32>
    %126 = arith.addf %124, %125 : vector<1x128xf32>
    %127 = math.tanh %126 : vector<1x128xf32>
    %128 = arith.mulf %123, %127 : vector<1x128xf32>
    %c0_40 = arith.constant 0 : index
    %c128_41 = arith.constant 128 : index
    %129 = vector.load %arg10[%c0_40, %c128_41] : memref<2x256xf32, #tpu.memory_space<vmem>>, vector<1x128xf32>
    tpu.vector_store %arg10[%c0_40, %c128_41], %128 {strides = array<i32>} : memref<2x256xf32, #tpu.memory_space<vmem>>, vector<1x128xf32>,
    %c0_42 = arith.constant 0 : index
    %c0_43 = arith.constant 0 : index
    %130 = vector.load %arg10[%c0_42, %c0_43] : memref<2x256xf32, #tpu.memory_space<vmem>>, vector<2x256xf32>
    %c0_44 = arith.constant 0 : index
    %c0_45 = arith.constant 0 : index
    %131 = vector.load %arg6[%c0_44, %c0_45] : memref<256x32xf32, #tpu.memory_space<vmem>>, vector<256x32xf32>
    %cst_46 = arith.constant dense<0.000000e+00> : vector<2x32xf32>
    %132 = tpu.matmul %130, %131, %cst_46 {dimension_numbers = #tpu.dot_dimension_numbers<[1], [0], [0], [1], [0, 0, 1, 1], [], []>} : vector<2x256xf32>, vector<256x32xf32>, vector<2x32xf32> -> vector<2x32xf32>
    %c0_47 = arith.constant 0 : index
    %c0_48 = arith.constant 0 : index
    %133 = vector.load %arg7[%c0_47, %c0_48] : memref<1x32xf32, #tpu.memory_space<vmem>>, vector<1x32xf32>
    %134 = vector.broadcast %133 : vector<1x32xf32> to vector<2x32xf32>
    %135 = arith.addf %132, %134 : vector<2x32xf32>
    %c0_49 = arith.constant 0 : index
    %c0_50 = arith.constant 0 : index
    %136 = vector.load %arg11[%c0_49, %c0_50] : memref<2x32xf32, #tpu.memory_space<vmem>>, vector<2x32xf32>
    tpu.vector_store %arg11[%c0_49, %c0_50], %135 {strides = array<i32>} : memref<2x32xf32, #tpu.memory_space<vmem>>, vector<2x32xf32>,
    %c0_51 = arith.constant 0 : index
    %c0_52 = arith.constant 0 : index
    %137 = vector.load %arg8[%c0_51, %c0_52] : memref<32x4xf32, #tpu.memory_space<vmem>>, vector<32x4xf32>
    %cst_53 = arith.constant dense<0.000000e+00> : vector<2x4xf32>
    %138 = tpu.matmul %135, %137, %cst_53 {dimension_numbers = #tpu.dot_dimension_numbers<[1], [0], [0], [1], [0, 0, 1, 1], [], []>} : vector<2x32xf32>, vector<32x4xf32>, vector<2x4xf32> -> vector<2x4xf32>
    %c0_54 = arith.constant 0 : index
    %c0_55 = arith.constant 0 : index
    %139 = vector.load %arg9[%c0_54, %c0_55] : memref<1x4xf32, #tpu.memory_space<vmem>>, vector<1x4xf32>
    %140 = vector.broadcast %139 : vector<1x4xf32> to vector<2x4xf32>
    %141 = arith.addf %138, %140 : vector<2x4xf32>
    %c0_56 = arith.constant 0 : index
    %c0_57 = arith.constant 0 : index
    %142 = vector.load %arg12[%c0_56, %c0_57] : memref<2x4xf32, #tpu.memory_space<vmem>>, vector<2x4xf32>
    tpu.vector_store %arg12[%c0_56, %c0_57], %141 {strides = array<i32>} : memref<2x4xf32, #tpu.memory_space<vmem>>, vector<2x4xf32>,
    %cst_58 = arith.constant dense<0xFF800000> : vector<2xf32>
    %143 = vector.multi_reduction <maximumf>, %141, %cst_58 [1] : vector<2x4xf32> to vector<2xf32>
    %144 = vector.shape_cast %143 : vector<2xf32> to vector<2x1xf32>
    %145 = vector.broadcast %144 : vector<2x1xf32> to vector<2x4xf32>
    %146 = arith.subf %141, %145 : vector<2x4xf32>
    %147 = math.exp %146 : vector<2x4xf32>
    %cst_59 = arith.constant dense<0.000000e+00> : vector<2xf32>
    %148 = vector.multi_reduction <add>, %147, %cst_59 [1] : vector<2x4xf32> to vector<2xf32>
    %149 = vector.shape_cast %148 : vector<2xf32> to vector<2x1xf32>
    %150 = vector.broadcast %149 : vector<2x1xf32> to vector<2x4xf32>
    %151 = arith.divf %147, %150 : vector<2x4xf32>
    %c0_60 = arith.constant 0 : index
    %c0_61 = arith.constant 0 : index
    %152 = vector.load %arg13[%c0_60, %c0_61] : memref<2x4xf32, #tpu.memory_space<vmem>>, vector<2x4xf32>
    tpu.vector_store %arg13[%c0_60, %c0_61], %151 {strides = array<i32>} : memref<2x4xf32, #tpu.memory_space<vmem>>, vector<2x4xf32>,
    return
  }
  func.func @transform_0(%arg0: i32) -> (i32, i32) {
    %c0_i32 = arith.constant 0 : i32
    %c0_i32_0 = arith.constant 0 : i32
    %c0_i32_1 = arith.constant 0 : i32
    return %c0_i32, %c0_i32_0 : i32, i32
  }
  func.func @transform_1(%arg0: i32) -> (i32, i32) {
    %c0_i32 = arith.constant 0 : i32
    %c0_i32_0 = arith.constant 0 : i32
    %c0_i32_1 = arith.constant 0 : i32
    return %c0_i32, %c0_i32_0 : i32, i32
  }
  func.func @transform_2(%arg0: i32) -> (i32, i32) {
    %c0_i32 = arith.constant 0 : i32
    %c0_i32_0 = arith.constant 0 : i32
    %c0_i32_1 = arith.constant 0 : i32
    return %c0_i32, %c0_i32_0 : i32, i32
  }
  func.func @transform_3(%arg0: i32) -> (i32, i32) {
    %c0_i32 = arith.constant 0 : i32
    %c0_i32_0 = arith.constant 0 : i32
    %c0_i32_1 = arith.constant 0 : i32
    return %c0_i32, %c0_i32_0 : i32, i32
  }
  func.func @transform_4(%arg0: i32) -> (i32, i32) {
    %c0_i32 = arith.constant 0 : i32
    %c0_i32_0 = arith.constant 0 : i32
    %c0_i32_1 = arith.constant 0 : i32
    return %c0_i32, %c0_i32_0 : i32, i32
  }
  func.func @transform_5(%arg0: i32) -> (i32, i32) {
    %c0_i32 = arith.constant 0 : i32
    %c0_i32_0 = arith.constant 0 : i32
    %c0_i32_1 = arith.constant 0 : i32
    return %c0_i32, %c0_i32_0 : i32, i32
  }
  func.func @transform_6(%arg0: i32) -> (i32, i32) {
    %c0_i32 = arith.constant 0 : i32
    %c0_i32_0 = arith.constant 0 : i32
    %c0_i32_1 = arith.constant 0 : i32
    return %c0_i32, %c0_i32_0 : i32, i32
  }
  func.func @transform_7(%arg0: i32) -> (i32, i32) {
    %c0_i32 = arith.constant 0 : i32
    %c0_i32_0 = arith.constant 0 : i32
    %c0_i32_1 = arith.constant 0 : i32
    return %c0_i32, %c0_i32_0 : i32, i32
  }
  func.func @transform_8(%arg0: i32) -> (i32, i32) {
    %c0_i32 = arith.constant 0 : i32
    %c0_i32_0 = arith.constant 0 : i32
    %c0_i32_1 = arith.constant 0 : i32
    return %c0_i32, %c0_i32_0 : i32, i32
  }
  func.func @transform_9(%arg0: i32) -> (i32, i32) {
    %c0_i32 = arith.constant 0 : i32
    %c0_i32_0 = arith.constant 0 : i32
    %c0_i32_1 = arith.constant 0 : i32
    return %c0_i32, %c0_i32_0 : i32, i32
  }
  func.func @transform_10(%arg0: i32) -> (i32, i32) {
    %c0_i32 = arith.constant 0 : i32
    %c0_i32_0 = arith.constant 0 : i32
    %c0_i32_1 = arith.constant 0 : i32
    return %c0_i32, %c0_i32_0 : i32, i32
  }
  func.func @transform_11(%arg0: i32) -> (i32, i32) {
    %c0_i32 = arith.constant 0 : i32
    %c0_i32_0 = arith.constant 0 : i32
    %c0_i32_1 = arith.constant 0 : i32
    return %c0_i32, %c0_i32_0 : i32, i32
  }
  func.func @transform_12(%arg0: i32) -> (i32, i32) {
    %c0_i32 = arith.constant 0 : i32
    %c0_i32_0 = arith.constant 0 : i32
    %c0_i32_1 = arith.constant 0 : i32
    return %c0_i32, %c0_i32_0 : i32, i32
  }
}

</mosaic_0001>

<bundles_post_ra>
// kernel: forward.4
= control target key start
LH: loop header
LB: loop body
LE: loop exit
PB: predicated region body
PF: predicated region fallthrough
CT: control target
= control target key end

     0   :  { %vm56_vm0 = vcmask 1040384   ;;  %vm1314_vm1 = vmmov 1   ;;  %v1315_v3 = vmov 0.0   ;;  %v1316_v8 = vmov 0   ;;  %s1774_s0 = inlined_call_operand.vmem [shape: f32[9,672], index: 0, kind: input, shape index: {}]   ;;  %s1775_s4 = inlined_call_operand.vmem [shape: f32[16,9], index: 4, kind: input, shape index: {}]   ;;  %s1776_s1 = inlined_call_operand.vmem [shape: f32[9,672], index: 1, kind: input, shape index: {}]   ;;  %s1777_s2 = inlined_call_operand.vmem [shape: f32[9,672], index: 2, kind: input, shape index: {}]   ;;  %s1778_s5 = inlined_call_operand.vmem [shape: f32[16,1], index: 5, kind: input, shape index: {}]   ;;  %s1779_s3 = inlined_call_operand.vmem [shape: f32[9,672], index: 3, kind: input, shape index: {}]   ;;  %s1780_s6 = inlined_call_operand.vmem [shape: f32[16,672], index: 6, kind: output, shape index: {}]  }
   0x1   :  { %v28_v0 = vld [vmem:[%s1774_s0 + $0x8] sm:$0xff]  ;;  %v34_v1 = vld [vmem:[%s1774_s0 + $0x38] sm:$0x1]  ;;  %vm1358_vm2 = vmpackc.low %vm56_vm0, %vm1314_vm1  ;;  %139 = vmatprep.mubr.f32.mxu0 %v1315_v3  ;;  %216 = vmatprep.mubr.f32.mxu1 %v1315_v3  ;;  %vm49_vm3 = vcmask 72704   ;;  %vm1178_vm4 = vcmask 261120  }
   0x2   :  { %v1238_v4 = vpack.c.bf16 %v34_v1, %v28_v0  ;;  %v30_v5 = vld [vmem:[%s1774_s0 + $0x18] sm:$0xff]  ;;  %v36_v6 = vld [vmem:[%s1774_s0 + $0x48] sm:$0x1]  ;;  %v27_v7 = vld [vmem:[%s1774_s0] sm:$0xff]  ;;  %1313 = vset.pattern.permute.xlu0 %v1316_v8 }
   0x3   :  { %v1244_v9 = vpack.c.bf16 %v36_v6, %v30_v5  ;;  %v33_v10 = vld [vmem:[%s1774_s0 + $0x30] sm:$0x1]  ;;  %v35_v12 = vld [vmem:[%s1774_s0 + $0x40] sm:$0x1]  ;;  %v32_v16 = vld [vmem:[%s1774_s0 + $0x28] sm:$0xff] }
   0x4   :  { %v29_v11 = vld [vmem:[%s1774_s0 + $0x10] sm:$0xff]  ;;  %1240 = vmatprep.subr.msk.bf16.mxu0 %vm1358_vm2, %v1238_v4  ;;  %v1241_v13 = vpack.c.bf16 %v33_v10, %v27_v7  ;;  %v1387_v15 = vld [vmem:[%s1775_s4] sm:$0xff]  ;;  %v38_v17 = vld [vmem:[%s1774_s0 + $0x58] sm:$0x1] }
   0x5   :  { %v1247_v14 = vpack.c.bf16 %v35_v12, %v29_v11  ;;  %1246 = vmatprep.subr.msk.bf16.mxu1 %vm1358_vm2, %v1244_v9  ;;  %v1250_v18 = vpack.c.bf16 %v38_v17, %v32_v16  ;;  %v319_v19 = vld [vmem:[%s1776_s1 + $0x8] sm:$0xff]  ;;  %v325_v20 = vld [vmem:[%s1776_s1 + $0x38] sm:$0x1]  ;;  %v31_v21 = vld [vmem:[%s1774_s0 + $0x20] sm:$0xff] }
   0x6   :  { %1243 = vmatpush1.bf16.msk.msra.mxu0 %vm1358_vm2, %v1241_v13  ;;  %v1256_v22 = vpack.c.bf16 %v325_v20, %v319_v19  ;;  %v37_v23 = vld [vmem:[%s1774_s0 + $0x50] sm:$0x1]  ;;  %v318_v24 = vld [vmem:[%s1776_s1] sm:$0xff]  ;;  %v321_v28 = vld [vmem:[%s1776_s1 + $0x18] sm:$0xff] }
   0x7   :  { %1249 = vmatpush1.bf16.msk.msra.mxu1 %vm1358_vm2, %v1247_v14  ;;  %v324_v25 = vld [vmem:[%s1776_s1 + $0x30] sm:$0x1]  ;;  %1252 = vmatprep.subr.msk.bf16.mxu0 %vm1358_vm2, %v1250_v18  ;;  %v1253_v26 = vpack.c.bf16 %v37_v23, %v31_v21  ;;  %v327_v29 = vld [vmem:[%s1776_s1 + $0x48] sm:$0x1]  ;;  %v329_v32 = vld [vmem:[%s1776_s1 + $0x58] sm:$0x1] }
   0x8   :  { %v1259_v27 = vpack.c.bf16 %v324_v25, %v318_v24  ;;  %1258 = vmatprep.subr.msk.bf16.mxu1 %vm1358_vm2, %v1256_v22  ;;  %v1262_v30 = vpack.c.bf16 %v327_v29, %v321_v28  ;;  %v323_v31 = vld [vmem:[%s1776_s1 + $0x28] sm:$0xff]  ;;  %v320_v35 = vld [vmem:[%s1776_s1 + $0x10] sm:$0xff]  ;;  %v326_v36 = vld [vmem:[%s1776_s1 + $0x40] sm:$0x1] }
   0x9   :  { %1192 = vmatmul.mubr.msk.f32.vlgmr.msra.gmra.mrb[0].mxu0 %vm49_vm3, %v1387_v15  ;;  %v1268_v33 = vpack.c.bf16 %v329_v32, %v323_v31  ;;  %v1446_v34 = vld [vmem:[%s1775_s4 + $0x8] sm:$0xff]  ;;  %v322_v37 = vld [vmem:[%s1776_s1 + $0x20] sm:$0xff]  ;;  %v328_v38 = vld [vmem:[%s1776_s1 + $0x50] sm:$0x1]  ;;  %v1265_v43 = vpack.c.bf16 %v326_v36, %v320_v35 }
   0xa   :  { %1196 = vmatmul.mubr.msk.f32.vlgmr.msra.gmra.mrb[0].mxu1 %vm49_vm3, %v1387_v15  ;;  %1255 = vmatpush1.bf16.msk.msra.mxu0 %vm1358_vm2, %v1253_v26  ;;  %v604_v39 = vld [vmem:[%s1777_s2 + $0x8] sm:$0xff]  ;;  %v610_v40 = vld [vmem:[%s1777_s2 + $0x38] sm:$0x1]  ;;  %v1271_v44 = vpack.c.bf16 %v328_v38, %v322_v37  ;;  %v603_v47 = vld [vmem:[%s1777_s2] sm:$0xff] }
   0xb   :  { %1261 = vmatpush1.bf16.msk.msra.mxu1 %vm1358_vm2, %v1259_v27  ;;  %145 = vmatprep.mubr.f32.mxu0 %v1315_v3  ;;  %v606_v41 = vld [vmem:[%s1777_s2 + $0x18] sm:$0xff]  ;;  %v612_v42 = vld [vmem:[%s1777_s2 + $0x48] sm:$0x1]  ;;  %v1274_v45 = vpack.c.bf16 %v610_v40, %v604_v39  ;;  %v609_v48 = vld [vmem:[%s1777_s2 + $0x30] sm:$0x1] }
   0xc   :  { %222 = vmatprep.mubr.f32.mxu1 %v1315_v3  ;;  %1264 = vmatprep.subr.msk.bf16.mxu0 %vm1358_vm2, %v1262_v30  ;;  %v1280_v46 = vpack.c.bf16 %v612_v42, %v606_v41  ;;  %v605_v49 = vld [vmem:[%s1777_s2 + $0x10] sm:$0xff]  ;;  %v611_v50 = vld [vmem:[%s1777_s2 + $0x40] sm:$0x1]  ;;  %v608_v51 = vld [vmem:[%s1777_s2 + $0x28] sm:$0xff]  ;;  %v1277_v56 = vpack.c.bf16 %v609_v48, %v603_v47 }
   0xd   :  { %1270 = vmatprep.subr.msk.bf16.mxu1 %vm1358_vm2, %v1268_v33  ;;  %1193 = vmatmul.mubr.msk.f32.gmra.mrb[2].mxu0 %vm49_vm3, %v1446_v34  ;;  %v25_v52 = vld [vmem:[%s1778_s5] sm:$0xff]  ;;  %v614_v53 = vld [vmem:[%s1777_s2 + $0x58] sm:$0x1]  ;;  %v877_v54 = vld [vmem:[%s1779_s3 + $0x8] sm:$0xff]  ;;  %v1283_v57 = vpack.c.bf16 %v611_v50, %v605_v49 }
   0xe   :  { %1197 = vmatmul.mubr.msk.f32.gmra.mrb[2].mxu1 %vm49_vm3, %v1446_v34  ;;  %293 = vmatprep.mubr.f32.mxu0 %v1315_v3  ;;  %v883_v55 = vld [vmem:[%s1779_s3 + $0x38] sm:$0x1]  ;;  %v1286_v58 = vpack.c.bf16 %v614_v53, %v608_v51  ;;  %v607_v60 = vld [vmem:[%s1777_s2 + $0x20] sm:$0xff]  ;;  %v613_v61 = vld [vmem:[%s1777_s2 + $0x50] sm:$0x1] }
   0xf   :  { %412 = vmatprep.mubr.f32.mxu1 %v1315_v3  ;;  %41 = vperm.xlu0 %1313, %v25_v52   ;;  %v1292_v59 = vpack.c.bf16 %v883_v55, %v877_v54  ;;  %v876_v62 = vld [vmem:[%s1779_s3] sm:$0xff]  ;;  %v882_v63 = vld [vmem:[%s1779_s3 + $0x30] sm:$0x1]  ;;  %v879_v0 = vld [vmem:[%s1779_s3 + $0x18] sm:$0xff]  ;;  %v1289_v7 = vpack.c.bf16 %v613_v61, %v607_v60 }
  0x10   :  { %v26_v1 = vld [vmem:[%s1778_s5 + $0x8] sm:$0xff]  ;;  %v887_v6 = vld [vmem:[%s1779_s3 + $0x58] sm:$0x1]  ;;  %v1295_v8 = vpack.c.bf16 %v882_v63, %v876_v62  ;;  %v878_v11 = vld [vmem:[%s1779_s3 + $0x10] sm:$0xff] }
  0x11   :  { %1200 = vmatmul.mubr.msk.f32.vlgmr.msra.gmra.mrb[4].mxu0 %vm49_vm3, %v1387_v15  ;;  %v885_v4 = vld [vmem:[%s1779_s3 + $0x48] sm:$0x1]  ;;  %v884_v12 = vld [vmem:[%s1779_s3 + $0x40] sm:$0x1]  ;;  %v886_v14 = vld [vmem:[%s1779_s3 + $0x50] sm:$0x1] }
  0x12   :  { %1204 = vmatmul.mubr.msk.f32.vlgmr.msra.gmra.mrb[4].mxu1 %vm49_vm3, %v1387_v15  ;;  %1267 = vmatpush1.bf16.msk.msra.mxu0 %vm1358_vm2, %v1265_v43  ;;  %v881_v5 = vld [vmem:[%s1779_s3 + $0x28] sm:$0xff]  ;;  %v1298_v9 = vpack.c.bf16 %v885_v4, %v879_v0  ;;  %v880_v13 = vld [vmem:[%s1779_s3 + $0x20] sm:$0xff]  ;;  %v1301_v16 = vpack.c.bf16 %v884_v12, %v878_v11 }
  0x13   :  { %1273 = vmatpush1.bf16.msk.msra.mxu1 %vm1358_vm2, %v1271_v44  ;;  %299 = vmatprep.mubr.f32.mxu0 %v1315_v3  ;;  %v1304_v10 = vpack.c.bf16 %v887_v6, %v881_v5  ;;  %v1307_v17 = vpack.c.bf16 %v886_v14, %v880_v13 }
  0x14   :  { %418 = vmatprep.mubr.f32.mxu1 %v1315_v3  ;;  %1276 = vmatprep.subr.msk.bf16.mxu0 %vm1358_vm2, %v1274_v45 }
  0x15   :  { %1282 = vmatprep.subr.msk.bf16.mxu1 %vm1358_vm2, %v1280_v46  ;;  %1201 = vmatmul.mubr.msk.f32.gmra.mrb[6].mxu0 %vm49_vm3, %v1446_v34 }
  0x16   :  { %1205 = vmatmul.mubr.msk.f32.gmra.mrb[6].mxu1 %vm49_vm3, %v1446_v34  ;;  %489 = vmatprep.mubr.f32.mxu0 %v1315_v3 }
  0x17   :  { %566 = vmatprep.mubr.f32.mxu1 %v1315_v3  ;;  %46 = vperm.xlu0 %1313, %v26_v1  }
  0x19   :  { %1208 = vmatmul.mubr.msk.f32.vlgmr.msra.gmra.mrb[8].mxu0 %vm49_vm3, %v1387_v15 }
  0x1a   :  { %1212 = vmatmul.mubr.msk.f32.vlgmr.msra.gmra.mrb[8].mxu1 %vm49_vm3, %v1387_v15  ;;  %1279 = vmatpush1.bf16.msk.msra.mxu0 %vm1358_vm2, %v1277_v56 }
  0x1b   :  { %1285 = vmatpush1.bf16.msk.msra.mxu1 %vm1358_vm2, %v1283_v57  ;;  %495 = vmatprep.mubr.f32.mxu0 %v1315_v3 }
  0x1c   :  { %572 = vmatprep.mubr.f32.mxu1 %v1315_v3  ;;  %1288 = vmatprep.subr.msk.bf16.mxu0 %vm1358_vm2, %v1286_v58 }
  0x1d   :  { %1294 = vmatprep.subr.msk.bf16.mxu1 %vm1358_vm2, %v1292_v59  ;;  %1209 = vmatmul.mubr.msk.f32.gmra.mrb[10].mxu0 %vm49_vm3, %v1446_v34 }
  0x1e   :  { %1213 = vmatmul.mubr.msk.f32.gmra.mrb[10].mxu1 %vm49_vm3, %v1446_v34  ;;  %697 = vmatprep.mubr.f32.mxu0 %v1315_v3 }
  0x1f   :  { %774 = vmatprep.mubr.f32.mxu1 %v1315_v3 }
  0x21   :  { %1216 = vmatmul.mubr.msk.f32.vlgmr.msra.gmra.mrb[12].mxu0 %vm49_vm3, %v1387_v15 }
  0x22   :  { %1220 = vmatmul.mubr.msk.f32.vlgmr.msra.gmra.mrb[12].mxu1 %vm49_vm3, %v1387_v15  ;;  %1291 = vmatpush1.bf16.msk.msra.mxu0 %vm1358_vm2, %v1289_v7 }
  0x23   :  { %1297 = vmatpush1.bf16.msk.msra.mxu1 %vm1358_vm2, %v1295_v8  ;;  %703 = vmatprep.mubr.f32.mxu0 %v1315_v3 }
  0x24   :  { %780 = vmatprep.mubr.f32.mxu1 %v1315_v3  ;;  %1300 = vmatprep.subr.msk.bf16.mxu0 %vm1358_vm2, %v1298_v9 }
  0x25   :  { %1306 = vmatprep.subr.msk.bf16.mxu1 %vm1358_vm2, %v1304_v10  ;;  %1217 = vmatmul.mubr.msk.f32.gmra.mrb[14].mxu0 %vm49_vm3, %v1446_v34 }
  0x26   :  { %1221 = vmatmul.mubr.msk.f32.gmra.mrb[14].mxu1 %vm49_vm3, %v1446_v34  ;;  %851 = vmatprep.mubr.f32.mxu0 %v1315_v3 }
  0x27   :  { %970 = vmatprep.mubr.f32.mxu1 %v1315_v3 }
  0x29   :  { %1224 = vmatmul.mubr.msk.f32.vlgmr.msra.gmra.mrb[16].mxu0 %vm49_vm3, %v1387_v15 }
  0x2a   :  { %1228 = vmatmul.mubr.msk.f32.vlgmr.msra.gmra.mrb[16].mxu1 %vm49_vm3, %v1387_v15  ;;  %1303 = vmatpush1.bf16.msk.msra.mxu0 %vm1358_vm2, %v1301_v16 }
  0x2b   :  { %1309 = vmatpush1.bf16.msk.msra.mxu1 %vm1358_vm2, %v1307_v17  ;;  %857 = vmatprep.mubr.f32.mxu0 %v1315_v3 }
  0x2c   :  { %976 = vmatprep.mubr.f32.mxu1 %v1315_v3 }
  0x2d   :  { %1225 = vmatmul.mubr.msk.f32.gmra.mrb[18].mxu0 %vm49_vm3, %v1446_v34 }
  0x2e   :  { %1229 = vmatmul.mubr.msk.f32.gmra.mrb[18].mxu1 %vm49_vm3, %v1446_v34  ;;  %1047 = vmatprep.mubr.f32.mxu0 %v1315_v3 }
  0x2f   :  { %1124 = vmatprep.mubr.f32.mxu1 %v1315_v3 }
  0x31   :  { %1232 = vmatmul.mubr.msk.f32.vlgmr.msra.gmra.mrb[20].mxu0 %vm49_vm3, %v1387_v15 }
  0x32   :  { %1236 = vmatmul.mubr.msk.f32.vlgmr.msra.gmra.mrb[20].mxu1 %vm49_vm3, %v1387_v15  ;;  %1053 = vmatprep.mubr.f32.mxu0 %v1315_v3 }
  0x33   :  { %1130 = vmatprep.mubr.f32.mxu1 %v1315_v3 }
  0x35   :  { %1233 = vmatmul.mubr.msk.f32.gmra.mrb[22].mxu0 %vm49_vm3, %v1446_v34 }
  0x36   :  { %1237 = vmatmul.mubr.msk.f32.gmra.mrb[22].mxu1 %vm49_vm3, %v1446_v34 }
  0x8e   :  { %v1636_v2 = vpop.permute.xlu0 %41 }
  0x96   :  { %v1638_v25 = vpop.permute.xlu0 %46 }
  0xdc   :  { %v141_v18 = vpop.f32.mrb[0].mxu0 }
  0xdd   :  { %v218_v19 = vpop.f32.mrb[0].mxu1  ;;  %v143_v20 = vpop.f32.mrb[1].mxu0  ;;  %v142_v3 = vadd.f32 %v141_v18, %v1636_v2 }
  0xde   :  { %v220_v21 = vpop.f32.mrb[1].mxu1  ;;  %v144_v26 = vadd.f32 %v143_v20, %v1636_v2  ;;  %v219_v36 = vadd.f32 %v218_v19, %v1636_v2 }
  0xdf   :  { %v306_v33 = vmax.f32 %v142_v3, 0.0  ;;  %v221_v38 = vadd.f32 %v220_v21, %v1636_v2 }
  0xe0   :  { %v147_v22 = vpop.f32.mrb[2].mxu0  ;;  %v307_v37 = vmax.f32 %v144_v26, 0.0  ;;  %v308_v52 = vmax.f32 %v219_v36, 0.0 }
  0xe1   :  { %v224_v23 = vpop.f32.mrb[2].mxu1  ;;  %v149_v24 = vpop.f32.mrb[3].mxu0  ;;  %v148_v35 = vadd.f32 %v147_v22, %v1638_v25  ;;  %v309_v53 = vmax.f32 %v221_v38, 0.0 }
  0xe2   :  { %v226_v15 = vpop.f32.mrb[3].mxu1  ;;  %v150_v39 = vadd.f32 %v149_v24, %v1638_v25  ;;  %v225_v0 = vadd.f32 %v224_v23, %v1638_v25 }
  0xe3   :  { %v312_v50 = vmax.f32 %v148_v35, 0.0  ;;  %v227_v1 = vadd.f32 %v226_v15, %v1638_v25 }
  0xe4   :  { %v295_v27 = vpop.f32.mrb[4].mxu0  ;;  %v313_v54 = vmax.f32 %v150_v39, 0.0 }
  0xe5   :  { %v414_v28 = vpop.f32.mrb[4].mxu1  ;;  %v297_v30 = vpop.f32.mrb[5].mxu0  ;;  %v296_v49 = vadd.f32 %v295_v27, %v1636_v2 }
  0xe6   :  { %v415_v29 = vadd.f32 %v414_v28, %v1636_v2  ;;  %v416_v31 = vpop.f32.mrb[5].mxu1  ;;  %v298_v55 = vadd.f32 %v297_v30, %v1636_v2  ;;  %v314_v28 = vmax.f32 %v225_v0, 0.0 }
  0xe7   :  { %v417_v32 = vadd.f32 %v416_v31, %v1636_v2  ;;  %v310_v7 = vmax.f32 %v296_v49, 0.0  ;;  %v315_v31 = vmax.f32 %v227_v1, 0.0 }
  0xe8   :  { %v579_v34 = vmax.f32 %v415_v29, 0.0  ;;  %v301_v41 = vpop.f32.mrb[6].mxu0  ;;  %v311_v11 = vmax.f32 %v298_v55, 0.0 }
  0xe9   :  { %v580_v40 = vmax.f32 %v417_v32, 0.0  ;;  %v420_v42 = vpop.f32.mrb[6].mxu1  ;;  %v303_v45 = vpop.f32.mrb[7].mxu0  ;;  %v302_v8 = vadd.f32 %v301_v41, %v1638_v25 }
  0xea   :  { %v1648_v43 = vmax.f32 %v306_v33, %v579_v34  ;;  %v421_v44 = vadd.f32 %v420_v42, %v1638_v25  ;;  %v422_v46 = vpop.f32.mrb[7].mxu1  ;;  %v304_v12 = vadd.f32 %v303_v45, %v1638_v25 }
  0xeb   :  { %v1651_v47 = vmax.f32 %v307_v37, %v580_v40  ;;  %v423_v48 = vadd.f32 %v422_v46, %v1638_v25  ;;  %v316_v27 = vmax.f32 %v302_v8, 0.0 }
  0xec   :  { %v585_v51 = vmax.f32 %v421_v44, 0.0  ;;  %v491_v57 = vpop.f32.mrb[8].mxu0  ;;  %v317_v32 = vmax.f32 %v304_v12, 0.0 }
  0xed   :  { %v586_v56 = vmax.f32 %v423_v48, 0.0  ;;  %v568_v58 = vpop.f32.mrb[8].mxu1  ;;  %v492_v60 = vadd.f32 %v491_v57, %v1636_v2  ;;  %v493_v62 = vpop.f32.mrb[9].mxu0 }
  0xee   :  { %v1656_v59 = vmax.f32 %v312_v50, %v585_v51  ;;  %v569_v61 = vadd.f32 %v568_v58, %v1636_v2  ;;  %v570_v63 = vpop.f32.mrb[9].mxu1  ;;  %v494_v5 = vadd.f32 %v493_v62, %v1636_v2 }
  0xef   :  { %v1662_v4 = vmax.f32 %v313_v54, %v586_v56  ;;  %v571_v6 = vadd.f32 %v570_v63, %v1636_v2  ;;  %v581_v9 = vmax.f32 %v492_v60, 0.0 }
  0xf0   :  { %v583_v10 = vmax.f32 %v569_v61, 0.0  ;;  %v582_v13 = vmax.f32 %v494_v5, 0.0  ;;  %v497_v16 = vpop.f32.mrb[10].mxu0 }
  0xf1   :  { %v584_v14 = vmax.f32 %v571_v6, 0.0  ;;  %v574_v17 = vpop.f32.mrb[10].mxu1  ;;  %v1668_v18 = vmax.f32 %v308_v52, %v581_v9  ;;  %v498_v20 = vadd.f32 %v497_v16, %v1638_v25  ;;  %v499_v22 = vpop.f32.mrb[11].mxu0 }
  0xf2   :  { %v1670_v19 = vmax.f32 %v310_v7, %v583_v10  ;;  %v575_v21 = vadd.f32 %v574_v17, %v1638_v25  ;;  %v576_v23 = vpop.f32.mrb[11].mxu1  ;;  %v1674_v24 = vmax.f32 %v309_v53, %v582_v13  ;;  %v500_v3 = vadd.f32 %v499_v22, %v1638_v25 }
  0xf3   :  { %v1676_v15 = vmax.f32 %v311_v11, %v584_v14  ;;  %v577_v26 = vadd.f32 %v576_v23, %v1638_v25  ;;  %v587_v29 = vmax.f32 %v498_v20, 0.0 }
  0xf4   :  { %v589_v30 = vmax.f32 %v575_v21, 0.0  ;;  %v588_v33 = vmax.f32 %v500_v3, 0.0  ;;  %v699_v35 = vpop.f32.mrb[12].mxu0 }
  0xf5   :  { %v590_v34 = vmax.f32 %v577_v26, 0.0  ;;  %v776_v36 = vpop.f32.mrb[12].mxu1  ;;  %v1680_v37 = vmax.f32 %v314_v28, %v587_v29  ;;  %v701_v39 = vpop.f32.mrb[13].mxu0  ;;  %v700_v49 = vadd.f32 %v699_v35, %v1636_v2 }
  0xf6   :  { %v1682_v38 = vmax.f32 %v316_v27, %v589_v30  ;;  %v778_v40 = vpop.f32.mrb[13].mxu1  ;;  %v1684_v41 = vmax.f32 %v315_v31, %v588_v33  ;;  %v1690_v50 = vadd.f32 %v776_v36, %v1636_v2  ;;  %v702_v51 = vadd.f32 %v701_v39, %v1636_v2 }
  0xf7   :  { %v1686_v42 = vmax.f32 %v317_v32, %v590_v34  ;;  %v1694_v52 = vadd.f32 %v778_v40, %v1636_v2  ;;  %v864_v62 = vmax.f32 %v700_v49, 0.0 }
  0xf8   :  { %v705_v44 = vpop.f32.mrb[14].mxu0  ;;  %v866_v63 = vmax.f32 %v1690_v50, 0.0  ;;  %v865_v5 = vmax.f32 %v702_v51, 0.0 }
  0xf9   :  { %v782_v45 = vpop.f32.mrb[14].mxu1  ;;  %v707_v46 = vpop.f32.mrb[15].mxu0  ;;  %v706_v55 = vadd.f32 %v705_v44, %v1638_v25  ;;  %v867_v6 = vmax.f32 %v1694_v52, 0.0 }
  0xfa   :  { %v784_v48 = vpop.f32.mrb[15].mxu1  ;;  %v1699_v60 = vadd.f32 %v782_v45, %v1638_v25  ;;  %v708_v0 = vadd.f32 %v707_v46, %v1638_v25 }
  0xfb   :  { %v1706_v7 = vadd.f32 %v784_v48, %v1638_v25  ;;  %v870_v11 = vmax.f32 %v706_v55, 0.0 }
  0xfc   :  { %v853_v53 = vpop.f32.mrb[16].mxu0  ;;  %v872_v20 = vmax.f32 %v1699_v60, 0.0  ;;  %v871_v3 = vmax.f32 %v708_v0, 0.0 }
  0xfd   :  { %v972_v54 = vpop.f32.mrb[16].mxu1  ;;  %v855_v57 = vpop.f32.mrb[17].mxu0  ;;  %v854_v12 = vadd.f32 %v853_v53, %v1636_v2  ;;  %v873_v29 = vmax.f32 %v1706_v7, 0.0 }
  0xfe   :  { %v973_v56 = vadd.f32 %v972_v54, %v1636_v2  ;;  %v974_v58 = vpop.f32.mrb[17].mxu1  ;;  %v856_v21 = vadd.f32 %v855_v57, %v1636_v2 }
  0xff   :  { %v975_v61 = vadd.f32 %v974_v58, %v1636_v2  ;;  %v868_v35 = vmax.f32 %v854_v12, 0.0 }
 0x100   :  { %v1137_v1 = vmax.f32 %v973_v56, 0.0  ;;  %v859_v9 = vpop.f32.mrb[18].mxu0  ;;  %v869_v45 = vmax.f32 %v856_v21, 0.0 }
 0x101   :  { %v1138_v8 = vmax.f32 %v975_v61, 0.0  ;;  %v978_v10 = vpop.f32.mrb[18].mxu1  ;;  %v861_v16 = vpop.f32.mrb[19].mxu0  ;;  %v860_v27 = vadd.f32 %v859_v9, %v1638_v25 }
 0x102   :  { %v1149_v13 = vmax.f32 %v864_v62, %v1137_v1  ;;  %v979_v14 = vadd.f32 %v978_v10, %v1638_v25  ;;  %v980_v17 = vpop.f32.mrb[19].mxu1  ;;  %v862_v31 = vadd.f32 %v861_v16, %v1638_v25 }
 0x103   :  { %v1150_v22 = vmax.f32 %v865_v5, %v1138_v8  ;;  %v981_v23 = vadd.f32 %v980_v17, %v1638_v25  ;;  %v874_v49 = vmax.f32 %v860_v27, 0.0 }
 0x104   :  { %v1161_v26 = vmax.f32 %v1648_v43, %v1149_v13  ;;  %v1143_v28 = vmax.f32 %v979_v14, 0.0  ;;  %v1049_v33 = vpop.f32.mrb[20].mxu0  ;;  %v875_v53 = vmax.f32 %v862_v31, 0.0 }
 0x105   :  { %v1162_v30 = vmax.f32 %v1651_v47, %v1150_v22  ;;  %v1144_v32 = vmax.f32 %v981_v23, 0.0  ;;  %v1126_v34 = vpop.f32.mrb[20].mxu1  ;;  %v1050_v43 = vadd.f32 %v1049_v33, %v1636_v2  ;;  %v1051_v40 = vpop.f32.mrb[21].mxu0 }
 0x106   :  { %1173 = vst [vmem:[%s1780_s6] sm:$0xff] %v1161_v26  ;;  %v1155_v36 = vmax.f32 %v870_v11, %v1143_v28  ;;  %v1127_v39 = vadd.f32 %v1126_v34, %v1636_v2  ;;  %v1128_v44 = vpop.f32.mrb[21].mxu1  ;;  %v1052_v46 = vadd.f32 %v1051_v40, %v1636_v2 }
 0x107   :  { %1174 = vst [vmem:[%s1780_s6 + $0x8] sm:$0xff] %v1162_v30  ;;  %v1156_v47 = vmax.f32 %v871_v3, %v1144_v32  ;;  %v1129_v48 = vadd.f32 %v1128_v44, %v1636_v2  ;;  %v1139_v51 = vmax.f32 %v1050_v43, 0.0 }
 0x108   :  { %v1167_v50 = vmax.f32 %v1656_v59, %v1155_v36  ;;  %v1141_v52 = vmax.f32 %v1127_v39, 0.0  ;;  %v1140_v55 = vmax.f32 %v1052_v46, 0.0  ;;  %v1055_v57 = vpop.f32.mrb[22].mxu0 }
 0x109   :  { %v1168_v54 = vmax.f32 %v1662_v4, %v1156_v47  ;;  %v1142_v56 = vmax.f32 %v1129_v48, 0.0  ;;  %v1132_v58 = vpop.f32.mrb[22].mxu1  ;;  %v1151_v60 = vmax.f32 %v866_v63, %v1139_v51  ;;  %v1056_v2 = vadd.f32 %v1055_v57, %v1638_v25  ;;  %v1057_v59 = vpop.f32.mrb[23].mxu0 }
 0x10a   :  { %1180 = vst [vmem:[%s1780_s6 + $0x30] sm:$0xff] %v1167_v50  ;;  %v1153_v61 = vmax.f32 %v868_v35, %v1141_v52  ;;  %v1133_v62 = vadd.f32 %v1132_v58, %v1638_v25  ;;  %v1134_v0 = vpop.f32.mrb[23].mxu1  ;;  %v1152_v4 = vmax.f32 %v867_v6, %v1140_v55  ;;  %v1058_v5 = vadd.f32 %v1057_v59, %v1638_v25 }
 0x10b   :  { %1181 = vst [vmem:[%s1780_s6 + $0x38] sm:$0xff] %v1168_v54  ;;  %v1154_v1 = vmax.f32 %v869_v45, %v1142_v56  ;;  %v1135_v7 = vadd.f32 %v1134_v0, %v1638_v25  ;;  %v1163_v8 = vmax.f32 %v1668_v18, %v1151_v60  ;;  %v1145_v9 = vmax.f32 %v1056_v2, 0.0 }
 0x10c   :  { %v1165_v63 = vmax.f32 %v1670_v19, %v1153_v61  ;;  %v1147_v10 = vmax.f32 %v1133_v62, 0.0  ;;  %v1164_v11 = vmax.f32 %v1674_v24, %v1152_v4  ;;  %v1146_v13 = vmax.f32 %v1058_v5, 0.0 }
 0x10d   :  { %v1166_v12 = vmax.f32 %v1676_v15, %v1154_v1  ;;  %v1148_v14 = vmax.f32 %v1135_v7, 0.0  ;;  %1175 = vst [vmem:[%s1780_s6 + $0x10] sm:$0xff] %v1163_v8  ;;  %v1157_v25 = vmax.f32 %v872_v20, %v1145_v9 }
 0x10e   :  { %1177 = vst [vmem:[%s1780_s6 + $0x20] sm:$0xff] %v1165_v63  ;;  %v1159_v18 = vmax.f32 %v874_v49, %v1147_v10  ;;  %1176 = vst [vmem:[%s1780_s6 + $0x18] sm:$0xff] %v1164_v11  ;;  %v1158_v19 = vmax.f32 %v873_v29, %v1146_v13 }
 0x10f   :  { %1179 = vst.msk [vmem:[%s1780_s6 + $0x28] sm:$0xff] %vm1178_vm4, %v1166_v12  ;;  %v1160_v24 = vmax.f32 %v875_v53, %v1148_v14  ;;  %v1169_v15 = vmax.f32 %v1680_v37, %v1157_v25 }
 0x110   :  { %v1171_v6 = vmax.f32 %v1682_v38, %v1159_v18  ;;  %v1170_v16 = vmax.f32 %v1684_v41, %v1158_v19 }
 0x111   :  { %v1172_v17 = vmax.f32 %v1686_v42, %v1160_v24  ;;  %1182 = vst [vmem:[%s1780_s6 + $0x40] sm:$0xff] %v1169_v15 }
 0x112   :  { %1184 = vst [vmem:[%s1780_s6 + $0x50] sm:$0xff] %v1171_v6  ;;  %1183 = vst [vmem:[%s1780_s6 + $0x48] sm:$0xff] %v1170_v16 }
 0x113   :  { %1185 = vst.msk [vmem:[%s1780_s6 + $0x58] sm:$0xff] %vm1178_vm4, %v1172_v17 }

// kernel: forward.5
= control target key start
LH: loop header
LB: loop body
LE: loop exit
PB: predicated region body
PF: predicated region fallthrough
CT: control target
= control target key end

     0   :  { %v737_v0 = vmov 0.0|0.0   ;;  %vm60_vm0 = vcmask 130048   ;;  %vm591_vm1 = vcmask 261120   ;;  %vm597_vm2 = vcmask 254976   ;;  %s1155_s4 = inlined_call_operand.vmem [shape: f32[144,32], index: 4, kind: input, shape index: {}]   ;;  %s1156_s0 = inlined_call_operand.vmem [shape: f32[42,144], index: 0, kind: input, shape index: {}]   ;;  %s1157_s1 = inlined_call_operand.vmem [shape: f32[42,144], index: 1, kind: input, shape index: {}]   ;;  %s1158_s2 = inlined_call_operand.vmem [shape: f32[42,144], index: 2, kind: input, shape index: {}]   ;;  %s1159_s3 = inlined_call_operand.vmem [shape: f32[42,144], index: 3, kind: input, shape index: {}]   ;;  %s1160_s5 = inlined_call_operand.vmem [shape: f32[1,32], index: 5, kind: input, shape index: {}]   ;;  %s1161_s6 = inlined_call_operand.vmem [shape: f32[42,32], index: 6, kind: output, shape index: {}]  }
   0x1   :  { %628 = vmatprep.subr.bf16.mxu0 %v737_v0  ;;  %655 = vmatprep.subr.bf16.mxu1 %v737_v0  ;;  %v23_v1 = vld [vmem:[%s1155_s4] sm:$0xff]  ;;  %v24_v2 = vld [vmem:[%s1155_s4 + $0x8] sm:$0xff]  ;;  %v25_v3 = vld [vmem:[%s1155_s4 + $0x10] sm:$0xff] }
   0x2   :  { %v784_v4 = vpack.c.bf16 %v24_v2, %v23_v1  ;;  %v26_v5 = vld [vmem:[%s1155_s4 + $0x18] sm:$0xff]  ;;  %v27_v7 = vld [vmem:[%s1155_s4 + $0x20] sm:$0xff]  ;;  %v28_v8 = vld [vmem:[%s1155_s4 + $0x28] sm:$0xff] }
   0x3   :  { %v791_v6 = vpack.c.bf16 %v26_v5, %v25_v3  ;;  %v43_v9 = vld [vmem:[%s1156_s0 + $0x8] sm:$0xff]  ;;  %v809_v11 = vpack.c.bf16 %v28_v8, %v27_v7  ;;  %v29_v12 = vld [vmem:[%s1155_s4 + $0x30] sm:$0xff]  ;;  %v30_v13 = vld [vmem:[%s1155_s4 + $0x38] sm:$0xff] }
   0x4   :  { %630 = vmatpush1.bf16.msra.mxu0 %v784_v4  ;;  %657 = vmatpush1.bf16.msra.mxu1 %v784_v4  ;;  %v181_v10 = vld [vmem:[%s1157_s1 + $0x8] sm:$0xff]  ;;  %v823_v14 = vpack.c.bf16 %v30_v13, %v29_v12  ;;  %v31_v15 = vld [vmem:[%s1155_s4 + $0x40] sm:$0xff]  ;;  %v33_v18 = vld [vmem:[%s1155_s4 + $0x50] sm:$0xff] }
   0x5   :  { %631 = vmatprep.subr.bf16.mxu0 %v737_v0  ;;  %658 = vmatprep.subr.bf16.mxu1 %v737_v0  ;;  %v32_v16 = vld [vmem:[%s1155_s4 + $0x48] sm:$0xff]  ;;  %v34_v19 = vld [vmem:[%s1155_s4 + $0x58] sm:$0xff]  ;;  %v35_v21 = vld [vmem:[%s1155_s4 + $0x60] sm:$0xff] }
   0x6   :  { %604 = vmatprep.mubr.msk.f32.mxu0 %vm60_vm0, %v43_v9  ;;  %610 = vmatprep.mubr.msk.f32.mxu1 %vm60_vm0, %v181_v10  ;;  %v835_v17 = vpack.c.bf16 %v32_v16, %v31_v15  ;;  %v847_v20 = vpack.c.bf16 %v34_v19, %v33_v18  ;;  %v36_v22 = vld [vmem:[%s1155_s4 + $0x68] sm:$0xff]  ;;  %v37_v24 = vld [vmem:[%s1155_s4 + $0x70] sm:$0xff]  ;;  %v38_v25 = vld [vmem:[%s1155_s4 + $0x78] sm:$0xff] }
   0x7   :  { %v859_v23 = vpack.c.bf16 %v36_v22, %v35_v21  ;;  %v871_v26 = vpack.c.bf16 %v38_v25, %v37_v24  ;;  %v39_v27 = vld [vmem:[%s1155_s4 + $0x80] sm:$0xff]  ;;  %v40_v28 = vld [vmem:[%s1155_s4 + $0x88] sm:$0xff]  ;;  %v45_v32 = vld [vmem:[%s1156_s0 + $0x18] sm:$0xff] }
   0x8   :  { %633 = vmatpush1.bf16.msra.mxu0 %v791_v6  ;;  %660 = vmatpush1.bf16.msra.mxu1 %v791_v6  ;;  %v883_v29 = vpack.c.bf16 %v40_v28, %v39_v27  ;;  %v42_v30 = vld [vmem:[%s1156_s0] sm:$0xff]  ;;  %v183_v33 = vld [vmem:[%s1157_s1 + $0x18] sm:$0xff]  ;;  %v44_v34 = vld [vmem:[%s1156_s0 + $0x10] sm:$0xff] }
   0x9   :  { %634 = vmatprep.subr.bf16.mxu0 %v737_v0  ;;  %661 = vmatprep.subr.bf16.mxu1 %v737_v0  ;;  %v180_v31 = vld [vmem:[%s1157_s1] sm:$0xff]  ;;  %v182_v35 = vld [vmem:[%s1157_s1 + $0x10] sm:$0xff]  ;;  %v47_v36 = vld [vmem:[%s1156_s0 + $0x28] sm:$0xff] }
   0xa   :  { %v185_v37 = vld [vmem:[%s1157_s1 + $0x28] sm:$0xff]  ;;  %v46_v38 = vld [vmem:[%s1156_s0 + $0x20] sm:$0xff]  ;;  %v49_v40 = vld [vmem:[%s1156_s0 + $0x38] sm:$0xff] }
   0xb   :  { %v184_v39 = vld [vmem:[%s1157_s1 + $0x20] sm:$0xff]  ;;  %v187_v41 = vld [vmem:[%s1157_s1 + $0x38] sm:$0xff]  ;;  %v48_v42 = vld [vmem:[%s1156_s0 + $0x30] sm:$0xff] }
   0xc   :  { %636 = vmatpush1.bf16.msra.mxu0 %v809_v11  ;;  %663 = vmatpush1.bf16.msra.mxu1 %v809_v11  ;;  %v186_v43 = vld [vmem:[%s1157_s1 + $0x30] sm:$0xff]  ;;  %v51_v44 = vld [vmem:[%s1156_s0 + $0x48] sm:$0xff]  ;;  %v50_v46 = vld [vmem:[%s1156_s0 + $0x40] sm:$0xff] }
   0xd   :  { %637 = vmatprep.subr.bf16.mxu0 %v737_v0  ;;  %664 = vmatprep.subr.bf16.mxu1 %v737_v0  ;;  %v189_v45 = vld [vmem:[%s1157_s1 + $0x48] sm:$0xff]  ;;  %v188_v47 = vld [vmem:[%s1157_s1 + $0x40] sm:$0xff]  ;;  %v53_v48 = vld [vmem:[%s1156_s0 + $0x58] sm:$0x3] }
   0xe   :  { %v191_v49 = vld [vmem:[%s1157_s1 + $0x58] sm:$0x3]  ;;  %v52_v50 = vld [vmem:[%s1156_s0 + $0x50] sm:$0x3]  ;;  %v318_v52 = vld [vmem:[%s1158_s2 + $0x8] sm:$0xff] }
   0xf   :  { %v190_v51 = vld [vmem:[%s1157_s1 + $0x50] sm:$0x3]  ;;  %v449_v53 = vld [vmem:[%s1159_s3 + $0x8] sm:$0xff]  ;;  %v317_v54 = vld [vmem:[%s1158_s2] sm:$0xff] }
  0x10   :  { %639 = vmatpush1.bf16.msra.mxu0 %v823_v14  ;;  %666 = vmatpush1.bf16.msra.mxu1 %v823_v14  ;;  %v448_v55 = vld [vmem:[%s1159_s3] sm:$0xff]  ;;  %v320_v56 = vld [vmem:[%s1158_s2 + $0x18] sm:$0xff]  ;;  %v319_v58 = vld [vmem:[%s1158_s2 + $0x10] sm:$0xff] }
  0x11   :  { %640 = vmatprep.subr.bf16.mxu0 %v737_v0  ;;  %667 = vmatprep.subr.bf16.mxu1 %v737_v0  ;;  %v451_v57 = vld [vmem:[%s1159_s3 + $0x18] sm:$0xff]  ;;  %v450_v59 = vld [vmem:[%s1159_s3 + $0x10] sm:$0xff]  ;;  %v322_v60 = vld [vmem:[%s1158_s2 + $0x28] sm:$0xff] }
  0x12   :  { %v453_v61 = vld [vmem:[%s1159_s3 + $0x28] sm:$0xff]  ;;  %v321_v62 = vld [vmem:[%s1158_s2 + $0x20] sm:$0xff]  ;;  %v455_v1 = vld [vmem:[%s1159_s3 + $0x38] sm:$0xff] }
  0x13   :  { %v452_v63 = vld [vmem:[%s1159_s3 + $0x20] sm:$0xff]  ;;  %v323_v2 = vld [vmem:[%s1158_s2 + $0x30] sm:$0xff]  ;;  %v457_v5 = vld [vmem:[%s1159_s3 + $0x48] sm:$0xff] }
  0x14   :  { %642 = vmatpush1.bf16.msra.mxu0 %v835_v17  ;;  %669 = vmatpush1.bf16.msra.mxu1 %v835_v17  ;;  %v454_v3 = vld [vmem:[%s1159_s3 + $0x30] sm:$0xff]  ;;  %v456_v7 = vld [vmem:[%s1159_s3 + $0x40] sm:$0xff]  ;;  %v328_v8 = vld [vmem:[%s1158_s2 + $0x58] sm:$0x3] }
  0x15   :  { %643 = vmatprep.subr.bf16.mxu0 %v737_v0  ;;  %670 = vmatprep.subr.bf16.mxu1 %v737_v0  ;;  %v459_v9 = vld [vmem:[%s1159_s3 + $0x58] sm:$0x3]  ;;  %v327_v10 = vld [vmem:[%s1158_s2 + $0x50] sm:$0x3]  ;;  %v1088_v12 = vld [vmem:[%s1160_s5] ss:$0 sm:$0xff] }
  0x18   :  { %645 = vmatpush1.bf16.msra.mxu0 %v847_v20  ;;  %672 = vmatpush1.bf16.msra.mxu1 %v847_v20 }
  0x19   :  { %646 = vmatprep.subr.bf16.mxu0 %v737_v0  ;;  %673 = vmatprep.subr.bf16.mxu1 %v737_v0 }
  0x1c   :  { %648 = vmatpush1.bf16.msra.mxu0 %v859_v23  ;;  %675 = vmatpush1.bf16.msra.mxu1 %v859_v23 }
  0x1d   :  { %649 = vmatprep.subr.bf16.mxu0 %v737_v0  ;;  %676 = vmatprep.subr.bf16.mxu1 %v737_v0 }
  0x20   :  { %651 = vmatpush1.bf16.msra.mxu0 %v871_v26  ;;  %678 = vmatpush1.bf16.msra.mxu1 %v871_v26 }
  0x21   :  { %652 = vmatprep.subr.bf16.mxu0 %v737_v0  ;;  %679 = vmatprep.subr.bf16.mxu1 %v737_v0 }
  0x24   :  { %654 = vmatpush1.bf16.msra.mxu0 %v883_v29  ;;  %681 = vmatpush1.bf16.msra.mxu1 %v883_v29 }
  0x25   :  { %682 = vmatprep.subr.bf16.mxu0 %v737_v0  ;;  %709 = vmatprep.subr.bf16.mxu1 %v737_v0 }
  0x27   :  { %144 = vmatmul.mubr.f32.vlgmr.msra.gmra.mrb[0].mxu0 %v42_v30  ;;  %275 = vmatmul.mubr.f32.vlgmr.msra.gmra.mrb[0].mxu1 %v180_v31 }
  0x28   :  { %684 = vmatpush1.bf16.msra.mxu0 %v784_v4  ;;  %711 = vmatpush1.bf16.msra.mxu1 %v784_v4  ;;  %v326_v4 = vld [vmem:[%s1158_s2 + $0x48] sm:$0xff] }
  0x29   :  { %685 = vmatprep.subr.bf16.mxu0 %v737_v0  ;;  %712 = vmatprep.subr.bf16.mxu1 %v737_v0 }
  0x2a   :  { %605 = vmatprep.mubr.msk.f32.mxu0 %vm60_vm0, %v45_v32  ;;  %611 = vmatprep.mubr.msk.f32.mxu1 %vm60_vm0, %v183_v33 }
  0x2b   :  { %149 = vmatmul.mubr.f32.gmra.mrb[2].mxu0 %v44_v34  ;;  %280 = vmatmul.mubr.f32.gmra.mrb[2].mxu1 %v182_v35 }
  0x2c   :  { %687 = vmatpush1.bf16.msra.mxu0 %v791_v6  ;;  %714 = vmatpush1.bf16.msra.mxu1 %v791_v6  ;;  %v325_v6 = vld [vmem:[%s1158_s2 + $0x40] sm:$0xff] }
  0x2d   :  { %688 = vmatprep.subr.bf16.mxu0 %v737_v0  ;;  %715 = vmatprep.subr.bf16.mxu1 %v737_v0 }
  0x2e   :  { %606 = vmatprep.mubr.msk.f32.mxu0 %vm60_vm0, %v47_v36  ;;  %612 = vmatprep.mubr.msk.f32.mxu1 %vm60_vm0, %v185_v37 }
  0x2f   :  { %154 = vmatmul.mubr.f32.gmra.mrb[4].mxu0 %v46_v38  ;;  %285 = vmatmul.mubr.f32.gmra.mrb[4].mxu1 %v184_v39 }
  0x30   :  { %690 = vmatpush1.bf16.msra.mxu0 %v809_v11  ;;  %717 = vmatpush1.bf16.msra.mxu1 %v809_v11  ;;  %v458_v11 = vld [vmem:[%s1159_s3 + $0x50] sm:$0x3] }
  0x31   :  { %691 = vmatprep.subr.bf16.mxu0 %v737_v0  ;;  %718 = vmatprep.subr.bf16.mxu1 %v737_v0 }
  0x32   :  { %607 = vmatprep.mubr.msk.f32.mxu0 %vm60_vm0, %v49_v40  ;;  %613 = vmatprep.mubr.msk.f32.mxu1 %vm60_vm0, %v187_v41 }
  0x33   :  { %159 = vmatmul.mubr.f32.gmra.mrb[6].mxu0 %v48_v42  ;;  %290 = vmatmul.mubr.f32.gmra.mrb[6].mxu1 %v186_v43 }
  0x34   :  { %693 = vmatpush1.bf16.msra.mxu0 %v823_v14  ;;  %720 = vmatpush1.bf16.msra.mxu1 %v823_v14 }
  0x35   :  { %694 = vmatprep.subr.bf16.mxu0 %v737_v0  ;;  %721 = vmatprep.subr.bf16.mxu1 %v737_v0 }
  0x36   :  { %608 = vmatprep.mubr.msk.f32.mxu0 %vm60_vm0, %v51_v44  ;;  %614 = vmatprep.mubr.msk.f32.mxu1 %vm60_vm0, %v189_v45 }
  0x37   :  { %164 = vmatmul.mubr.f32.gmra.mrb[8].mxu0 %v50_v46  ;;  %295 = vmatmul.mubr.f32.gmra.mrb[8].mxu1 %v188_v47 }
  0x38   :  { %696 = vmatpush1.bf16.msra.mxu0 %v835_v17  ;;  %723 = vmatpush1.bf16.msra.mxu1 %v835_v17 }
  0x39   :  { %697 = vmatprep.subr.bf16.mxu0 %v737_v0  ;;  %724 = vmatprep.subr.bf16.mxu1 %v737_v0 }
  0x3a   :  { %609 = vmatprep.mubr.msk.f32.mxu0 %vm60_vm0, %v53_v48  ;;  %615 = vmatprep.mubr.msk.f32.mxu1 %vm60_vm0, %v191_v49 }
  0x3b   :  { %169 = vmatmul.mubr.f32.gmra.mrb[10].mxu0 %v52_v50  ;;  %300 = vmatmul.mubr.f32.gmra.mrb[10].mxu1 %v190_v51 }
  0x3c   :  { %699 = vmatpush1.bf16.msra.mxu0 %v847_v20  ;;  %726 = vmatpush1.bf16.msra.mxu1 %v847_v20 }
  0x3d   :  { %700 = vmatprep.subr.bf16.mxu0 %v737_v0  ;;  %727 = vmatprep.subr.bf16.mxu1 %v737_v0 }
  0x3e   :  { %616 = vmatprep.mubr.msk.f32.mxu0 %vm60_vm0, %v318_v52  ;;  %622 = vmatprep.mubr.msk.f32.mxu1 %vm60_vm0, %v449_v53 }
  0x40   :  { %702 = vmatpush1.bf16.msra.mxu0 %v859_v23  ;;  %729 = vmatpush1.bf16.msra.mxu1 %v859_v23 }
  0x41   :  { %703 = vmatprep.subr.bf16.mxu0 %v737_v0  ;;  %730 = vmatprep.subr.bf16.mxu1 %v737_v0 }
  0x44   :  { %705 = vmatpush1.bf16.msra.mxu0 %v871_v26  ;;  %732 = vmatpush1.bf16.msra.mxu1 %v871_v26 }
  0x45   :  { %706 = vmatprep.subr.bf16.mxu0 %v737_v0  ;;  %733 = vmatprep.subr.bf16.mxu1 %v737_v0  ;;  %v324_v0 = vld [vmem:[%s1158_s2 + $0x38] sm:$0xff] }
  0x48   :  { %708 = vmatpush1.bf16.msra.mxu0 %v883_v29  ;;  %735 = vmatpush1.bf16.msra.mxu1 %v883_v29 }
  0x4b   :  { %412 = vmatmul.mubr.f32.vlgmr.msra.gmra.mrb[12].mxu0 %v317_v54  ;;  %543 = vmatmul.mubr.f32.vlgmr.msra.gmra.mrb[12].mxu1 %v448_v55 }
  0x4c   :  { %617 = vmatprep.mubr.msk.f32.mxu0 %vm60_vm0, %v320_v56  ;;  %623 = vmatprep.mubr.msk.f32.mxu1 %vm60_vm0, %v451_v57 }
  0x4f   :  { %417 = vmatmul.mubr.f32.gmra.mrb[14].mxu0 %v319_v58  ;;  %548 = vmatmul.mubr.f32.gmra.mrb[14].mxu1 %v450_v59 }
  0x50   :  { %618 = vmatprep.mubr.msk.f32.mxu0 %vm60_vm0, %v322_v60  ;;  %624 = vmatprep.mubr.msk.f32.mxu1 %vm60_vm0, %v453_v61 }
  0x53   :  { %422 = vmatmul.mubr.f32.gmra.mrb[16].mxu0 %v321_v62  ;;  %553 = vmatmul.mubr.f32.gmra.mrb[16].mxu1 %v452_v63 }
  0x54   :  { %619 = vmatprep.mubr.msk.f32.mxu0 %vm60_vm0, %v324_v0  ;;  %625 = vmatprep.mubr.msk.f32.mxu1 %vm60_vm0, %v455_v1 }
  0x57   :  { %427 = vmatmul.mubr.f32.gmra.mrb[18].mxu0 %v323_v2  ;;  %558 = vmatmul.mubr.f32.gmra.mrb[18].mxu1 %v454_v3 }
  0x58   :  { %620 = vmatprep.mubr.msk.f32.mxu0 %vm60_vm0, %v326_v4  ;;  %626 = vmatprep.mubr.msk.f32.mxu1 %vm60_vm0, %v457_v5 }
  0x5b   :  { %432 = vmatmul.mubr.f32.gmra.mrb[20].mxu0 %v325_v6  ;;  %563 = vmatmul.mubr.f32.gmra.mrb[20].mxu1 %v456_v7 }
  0x5c   :  { %621 = vmatprep.mubr.msk.f32.mxu0 %vm60_vm0, %v328_v8  ;;  %627 = vmatprep.mubr.msk.f32.mxu1 %vm60_vm0, %v459_v9 }
  0x5f   :  { %437 = vmatmul.mubr.f32.gmra.mrb[22].mxu0 %v327_v10  ;;  %568 = vmatmul.mubr.f32.gmra.mrb[22].mxu1 %v458_v11 }
  0xfa   :  { %v145_v13 = vpop.f32.mrb[0].mxu0  ;;  %v276_v14 = vpop.f32.mrb[0].mxu1 }
  0xfb   :  { %v146_v15 = vadd.f32 %v1088_v12, %v145_v13  ;;  %v277_v16 = vadd.f32 %v1088_v12, %v276_v14  ;;  %v147_v17 = vpop.f32.mrb[1].mxu0  ;;  %v278_v18 = vpop.f32.mrb[1].mxu1 }
  0xfd   :  { %v174_v19 = vmax.f32 %v146_v15, 0.0  ;;  %v305_v20 = vmax.f32 %v277_v16, 0.0 }
  0xfe   :  { %v150_v21 = vpop.f32.mrb[2].mxu0  ;;  %v281_v22 = vpop.f32.mrb[2].mxu1 }
  0xff   :  { %v1092_v23 = vmax.f32 %v174_v19, %v305_v20  ;;  %v151_v24 = vadd.f32 %v1088_v12, %v150_v21  ;;  %v282_v25 = vadd.f32 %v1088_v12, %v281_v22  ;;  %v152_v26 = vpop.f32.mrb[3].mxu0  ;;  %v283_v27 = vpop.f32.mrb[3].mxu1 }
 0x101   :  { %v175_v28 = vmax.f32 %v151_v24, 0.0  ;;  %v306_v29 = vmax.f32 %v282_v25, 0.0 }
 0x102   :  { %v155_v30 = vpop.f32.mrb[4].mxu0  ;;  %v286_v31 = vpop.f32.mrb[4].mxu1 }
 0x103   :  { %v1096_v32 = vmax.f32 %v175_v28, %v306_v29  ;;  %v156_v33 = vadd.f32 %v1088_v12, %v155_v30  ;;  %v287_v34 = vadd.f32 %v1088_v12, %v286_v31  ;;  %v157_v35 = vpop.f32.mrb[5].mxu0  ;;  %v288_v36 = vpop.f32.mrb[5].mxu1 }
 0x105   :  { %v176_v37 = vmax.f32 %v156_v33, 0.0  ;;  %v307_v38 = vmax.f32 %v287_v34, 0.0 }
 0x106   :  { %v160_v39 = vpop.f32.mrb[6].mxu0  ;;  %v291_v40 = vpop.f32.mrb[6].mxu1 }
 0x107   :  { %v1100_v41 = vmax.f32 %v176_v37, %v307_v38  ;;  %v161_v42 = vadd.f32 %v1088_v12, %v160_v39  ;;  %v292_v43 = vadd.f32 %v1088_v12, %v291_v40  ;;  %v162_v44 = vpop.f32.mrb[7].mxu0  ;;  %v293_v45 = vpop.f32.mrb[7].mxu1 }
 0x109   :  { %v177_v46 = vmax.f32 %v161_v42, 0.0  ;;  %v308_v47 = vmax.f32 %v292_v43, 0.0 }
 0x10a   :  { %v165_v48 = vpop.f32.mrb[8].mxu0  ;;  %v296_v49 = vpop.f32.mrb[8].mxu1 }
 0x10b   :  { %v1104_v50 = vmax.f32 %v177_v46, %v308_v47  ;;  %v166_v51 = vadd.f32 %v1088_v12, %v165_v48  ;;  %v297_v52 = vadd.f32 %v1088_v12, %v296_v49  ;;  %v167_v53 = vpop.f32.mrb[9].mxu0  ;;  %v298_v54 = vpop.f32.mrb[9].mxu1 }
 0x10d   :  { %v178_v55 = vmax.f32 %v166_v51, 0.0  ;;  %v309_v56 = vmax.f32 %v297_v52, 0.0 }
 0x10e   :  { %v170_v57 = vpop.f32.mrb[10].mxu0  ;;  %v301_v58 = vpop.f32.mrb[10].mxu1 }
 0x10f   :  { %v1108_v59 = vmax.f32 %v178_v55, %v309_v56  ;;  %v171_v60 = vadd.f32 %v1088_v12, %v170_v57  ;;  %v302_v61 = vadd.f32 %v1088_v12, %v301_v58  ;;  %v172_v62 = vpop.f32.mrb[11].mxu0  ;;  %v303_v63 = vpop.f32.mrb[11].mxu1 }
 0x111   :  { %v179_v0 = vmax.f32 %v171_v60, 0.0  ;;  %v310_v1 = vmax.f32 %v302_v61, 0.0 }
 0x113   :  { %v1112_v2 = vmax.f32 %v179_v0, %v310_v1 }
 0x11e   :  { %v413_v3 = vpop.f32.mrb[12].mxu0  ;;  %v544_v4 = vpop.f32.mrb[12].mxu1 }
 0x11f   :  { %v414_v5 = vadd.f32 %v1088_v12, %v413_v3  ;;  %v545_v6 = vadd.f32 %v1088_v12, %v544_v4  ;;  %v415_v7 = vpop.f32.mrb[13].mxu0  ;;  %v546_v8 = vpop.f32.mrb[13].mxu1 }
 0x121   :  { %v442_v9 = vmax.f32 %v414_v5, 0.0  ;;  %v573_v10 = vmax.f32 %v545_v6, 0.0 }
 0x122   :  { %v418_v11 = vpop.f32.mrb[14].mxu0  ;;  %v549_v13 = vpop.f32.mrb[14].mxu1 }
 0x123   :  { %v579_v14 = vmax.f32 %v442_v9, %v573_v10  ;;  %v419_v15 = vadd.f32 %v1088_v12, %v418_v11  ;;  %v550_v16 = vadd.f32 %v1088_v12, %v549_v13  ;;  %v420_v17 = vpop.f32.mrb[15].mxu0  ;;  %v551_v18 = vpop.f32.mrb[15].mxu1 }
 0x125   :  { %v585_v19 = vmax.f32 %v1092_v23, %v579_v14  ;;  %v443_v20 = vmax.f32 %v419_v15, 0.0  ;;  %v574_v21 = vmax.f32 %v550_v16, 0.0 }
 0x126   :  { %v423_v22 = vpop.f32.mrb[16].mxu0  ;;  %v554_v24 = vpop.f32.mrb[16].mxu1 }
 0x127   :  { %592 = vst.msk [vmem:[%s1161_s6] sm:$0xff] %vm591_vm1, %v585_v19  ;;  %v580_v25 = vmax.f32 %v443_v20, %v574_v21  ;;  %v424_v26 = vadd.f32 %v1088_v12, %v423_v22  ;;  %v555_v27 = vadd.f32 %v1088_v12, %v554_v24  ;;  %v425_v28 = vpop.f32.mrb[17].mxu0  ;;  %v556_v29 = vpop.f32.mrb[17].mxu1 }
 0x129   :  { %v586_v30 = vmax.f32 %v1096_v32, %v580_v25  ;;  %v444_v31 = vmax.f32 %v424_v26, 0.0  ;;  %v575_v23 = vmax.f32 %v555_v27, 0.0 }
 0x12a   :  { %v428_v33 = vpop.f32.mrb[18].mxu0  ;;  %v559_v34 = vpop.f32.mrb[18].mxu1 }
 0x12b   :  { %593 = vst.msk [vmem:[%s1161_s6 + $0x8] sm:$0xff] %vm591_vm1, %v586_v30  ;;  %v581_v35 = vmax.f32 %v444_v31, %v575_v23  ;;  %v429_v36 = vadd.f32 %v1088_v12, %v428_v33  ;;  %v560_v37 = vadd.f32 %v1088_v12, %v559_v34  ;;  %v430_v38 = vpop.f32.mrb[19].mxu0  ;;  %v561_v39 = vpop.f32.mrb[19].mxu1 }
 0x12d   :  { %v587_v40 = vmax.f32 %v1100_v41, %v581_v35  ;;  %v445_v42 = vmax.f32 %v429_v36, 0.0  ;;  %v576_v32 = vmax.f32 %v560_v37, 0.0 }
 0x12e   :  { %v433_v43 = vpop.f32.mrb[20].mxu0  ;;  %v564_v44 = vpop.f32.mrb[20].mxu1 }
 0x12f   :  { %594 = vst.msk [vmem:[%s1161_s6 + $0x10] sm:$0xff] %vm591_vm1, %v587_v40  ;;  %v582_v45 = vmax.f32 %v445_v42, %v576_v32  ;;  %v434_v46 = vadd.f32 %v1088_v12, %v433_v43  ;;  %v565_v47 = vadd.f32 %v1088_v12, %v564_v44  ;;  %v435_v48 = vpop.f32.mrb[21].mxu0  ;;  %v566_v49 = vpop.f32.mrb[21].mxu1 }
 0x131   :  { %v588_v51 = vmax.f32 %v1104_v50, %v582_v45  ;;  %v446_v52 = vmax.f32 %v434_v46, 0.0  ;;  %v577_v41 = vmax.f32 %v565_v47, 0.0 }
 0x132   :  { %v438_v53 = vpop.f32.mrb[22].mxu0  ;;  %v569_v54 = vpop.f32.mrb[22].mxu1 }
 0x133   :  { %595 = vst.msk [vmem:[%s1161_s6 + $0x18] sm:$0xff] %vm591_vm1, %v588_v51  ;;  %v583_v55 = vmax.f32 %v446_v52, %v577_v41  ;;  %v439_v56 = vadd.f32 %v1088_v12, %v438_v53  ;;  %v570_v57 = vadd.f32 %v1088_v12, %v569_v54  ;;  %v440_v58 = vpop.f32.mrb[23].mxu0  ;;  %v571_v60 = vpop.f32.mrb[23].mxu1 }
 0x135   :  { %v589_v61 = vmax.f32 %v1108_v59, %v583_v55  ;;  %v447_v62 = vmax.f32 %v439_v56, 0.0  ;;  %v578_v50 = vmax.f32 %v570_v57, 0.0 }
 0x137   :  { %596 = vst.msk [vmem:[%s1161_s6 + $0x20] sm:$0xff] %vm591_vm1, %v589_v61  ;;  %v584_v63 = vmax.f32 %v447_v62, %v578_v50 }
 0x139   :  { %v590_v0 = vmax.f32 %v1112_v2, %v584_v63 }
 0x13b   :  { %598 = vst.msk [vmem:[%s1161_s6 + $0x28] sm:$0x3] %vm597_vm2, %v590_v0 }

// kernel: forward.6
= control target key start
LH: loop header
LB: loop body
LE: loop exit
PB: predicated region body
PF: predicated region fallthrough
CT: control target
= control target key end

     0   :  { %v1040_v0 = vmov 0.0|0.0   ;;  %vm1041_vm0 = vmmov 0   ;;  %v1042_v4 = vmov 0.0   ;;  %vm72_vm1 = vcmask 261120   ;;  %s1349_s4 = inlined_call_operand.vmem [shape: f32[288,64], index: 4, kind: input, shape index: {}]   ;;  %s1350_s0 = inlined_call_operand.vmem [shape: f32[4,288], index: 0, kind: input, shape index: {}]   ;;  %s1351_s1 = inlined_call_operand.vmem [shape: f32[4,288], index: 1, kind: input, shape index: {}]   ;;  %s1352_s2 = inlined_call_operand.vmem [shape: f32[4,288], index: 2, kind: input, shape index: {}]   ;;  %s1353_s3 = inlined_call_operand.vmem [shape: f32[4,288], index: 3, kind: input, shape index: {}]   ;;  %s1354_s5 = inlined_call_operand.vmem [shape: f32[1,64], index: 5, kind: input, shape index: {}]   ;;  %s1355_s6 = inlined_call_operand.vmem [shape: f32[4,64], index: 6, kind: output, shape index: {}]  }
   0x1   :  { %913 = vmatprep.subr.bf16.mxu1 %v1040_v0  ;;  %v39_v1 = vld [vmem:[%s1349_s4 + $0x80] sm:$0xff]  ;;  %v40_v2 = vld [vmem:[%s1349_s4 + $0x88] sm:$0xff]  ;;  %845 = vmatprep.mubr.msk.f32.mxu1 %vm1041_vm0, %v1042_v4  ;;  %v41_v11 = vld [vmem:[%s1349_s4 + $0x90] sm:$0xff]  ;;  %vm666_vm2 = vcmask 519168  }
   0x2   :  { %v55_v3 = vld [vmem:[%s1349_s4 + $0x100] sm:$0xff]  ;;  %v1090_v5 = vpack.c.bf16 %v40_v2, %v39_v1  ;;  %v56_v6 = vld [vmem:[%s1349_s4 + $0x108] sm:$0xff]  ;;  %v42_v12 = vld [vmem:[%s1349_s4 + $0x98] sm:$0xff] }
   0x3   :  { %v23_v7 = vld [vmem:[%s1349_s4] sm:$0xff]  ;;  %v24_v8 = vld [vmem:[%s1349_s4 + $0x8] sm:$0xff]  ;;  %v1101_v9 = vpack.c.bf16 %v56_v6, %v55_v3  ;;  %v57_v13 = vld [vmem:[%s1349_s4 + $0x110] sm:$0xff]  ;;  %v1115_v14 = vpack.c.bf16 %v42_v12, %v41_v11 }
   0x4   :  { %v1103_v10 = vpack.c.bf16 %v24_v8, %v23_v7  ;;  %882 = vmatprep.subr.bf16.mxu0 %v1090_v5  ;;  %v58_v15 = vld [vmem:[%s1349_s4 + $0x118] sm:$0xff]  ;;  %v25_v16 = vld [vmem:[%s1349_s4 + $0x10] sm:$0xff]  ;;  %v43_v20 = vld [vmem:[%s1349_s4 + $0xa0] sm:$0xff] }
   0x5   :  { %v26_v17 = vld [vmem:[%s1349_s4 + $0x18] sm:$0xff]  ;;  %915 = vmatpush3.bf16.msra.mxu1 %v1101_v9  ;;  %v1128_v18 = vpack.c.bf16 %v58_v15, %v57_v13  ;;  %v44_v21 = vld [vmem:[%s1349_s4 + $0xa8] sm:$0xff]  ;;  %v27_v23 = vld [vmem:[%s1349_s4 + $0x20] sm:$0xff] }
   0x6   :  { %884 = vmatpush3.bf16.msra.mxu0 %v1103_v10  ;;  %v1130_v19 = vpack.c.bf16 %v26_v17, %v25_v16  ;;  %916 = vmatprep.subr.bf16.mxu1 %v1040_v0  ;;  %v1140_v22 = vpack.c.bf16 %v44_v21, %v43_v20  ;;  %v28_v24 = vld [vmem:[%s1349_s4 + $0x28] sm:$0xff]  ;;  %v45_v25 = vld [vmem:[%s1349_s4 + $0xb0] sm:$0xff]  ;;  %v46_v26 = vld [vmem:[%s1349_s4 + $0xb8] sm:$0xff] }
   0x7   :  { %886 = vmatprep.subr.bf16.mxu0 %v1115_v14  ;;  %v61_v27 = vld [vmem:[%s1350_s0 + $0x8] sm:$0xf]  ;;  %v1159_v28 = vpack.c.bf16 %v28_v24, %v27_v23  ;;  %v1163_v29 = vpack.c.bf16 %v46_v26, %v45_v25  ;;  %v29_v30 = vld [vmem:[%s1349_s4 + $0x30] sm:$0xff]  ;;  %v30_v31 = vld [vmem:[%s1349_s4 + $0x38] sm:$0xff] }
   0x8   :  { %v47_v32 = vld [vmem:[%s1349_s4 + $0xc0] sm:$0xff]  ;;  %v48_v33 = vld [vmem:[%s1349_s4 + $0xc8] sm:$0xff]  ;;  %v1180_v34 = vpack.c.bf16 %v30_v31, %v29_v30  ;;  %v49_v42 = vld [vmem:[%s1349_s4 + $0xd0] sm:$0xff] }
   0x9   :  { %918 = vmatpush3.bf16.msra.mxu1 %v1128_v18  ;;  %v60_v35 = vld [vmem:[%s1350_s0] sm:$0xff]  ;;  %v1192_v37 = vpack.c.bf16 %v48_v33, %v47_v32  ;;  %v32_v39 = vld [vmem:[%s1349_s4 + $0x48] sm:$0xff]  ;;  %v50_v43 = vld [vmem:[%s1349_s4 + $0xd8] sm:$0xff] }
   0xa   :  { %888 = vmatpush3.bf16.msra.mxu0 %v1130_v19  ;;  %920 = vmatprep.subr.bf16.mxu1 %v1090_v5  ;;  %v1188_v36 = vld [vmem:[%s1351_s1] sm:$0xff]  ;;  %v70_v40 = vcombine.high %v60_v35, %v60_v35  ;;  %v1214_v45 = vpack.c.bf16 %v50_v43, %v49_v42  ;;  %v33_v46 = vld [vmem:[%s1349_s4 + $0x50] sm:$0xff]  ;;  %v34_v47 = vld [vmem:[%s1349_s4 + $0x58] sm:$0xff] }
   0xb   :  { %890 = vmatprep.subr.bf16.mxu0 %v1140_v22  ;;  %v31_v38 = vld [vmem:[%s1349_s4 + $0x40] sm:$0xff]  ;;  %v220_v41 = vcombine.high %v1188_v36, %v1188_v36  ;;  %v52_v49 = vld [vmem:[%s1349_s4 + $0xe8] sm:$0xff]  ;;  %v1230_v50 = vpack.c.bf16 %v34_v47, %v33_v46  ;;  %v53_v54 = vld [vmem:[%s1349_s4 + $0xf0] sm:$0xff] }
   0xc   :  { %846 = vmatmul.mubr.msk.f32.vlgmr.msra.gmra.mrb[0].mxu1 %vm72_vm1, %v61_v27  ;;  %139 = vmatprep.mubr.f32.mxu0 %v70_v40  ;;  %v1210_v44 = vpack.c.bf16 %v32_v39, %v31_v38  ;;  %v51_v48 = vld [vmem:[%s1349_s4 + $0xe0] sm:$0xff]  ;;  %v36_v53 = vld [vmem:[%s1349_s4 + $0x68] sm:$0xff]  ;;  %v54_v55 = vld [vmem:[%s1349_s4 + $0xf8] sm:$0xff] }
   0xd   :  { %922 = vmatpush3.bf16.msra.mxu1 %v1103_v10  ;;  %288 = vmatprep.mubr.f32.mxu1 %v220_v41  ;;  %v1234_v51 = vpack.c.bf16 %v52_v49, %v51_v48  ;;  %v35_v52 = vld [vmem:[%s1349_s4 + $0x60] sm:$0xff]  ;;  %v1254_v57 = vpack.c.bf16 %v54_v55, %v53_v54  ;;  %v37_v58 = vld [vmem:[%s1349_s4 + $0x70] sm:$0xff]  ;;  %v38_v59 = vld [vmem:[%s1349_s4 + $0x78] sm:$0xff] }
   0xe   :  { %892 = vmatpush3.bf16.msra.mxu0 %v1159_v28  ;;  %924 = vmatprep.subr.bf16.mxu1 %v1115_v14  ;;  %v1250_v56 = vpack.c.bf16 %v36_v53, %v35_v52  ;;  %v1264_v60 = vpack.c.bf16 %v38_v59, %v37_v58  ;;  %v366_v61 = vld [vmem:[%s1352_s2] sm:$0xff]  ;;  %v217_v62 = vld [vmem:[%s1351_s1 + $0x8] sm:$0xf] }
   0xf   :  { %894 = vmatprep.subr.bf16.mxu0 %v1163_v29  ;;  %v370_v63 = vcombine.high %v366_v61, %v366_v61  ;;  %v515_v1 = vld [vmem:[%s1353_s3] sm:$0xff]  ;;  %v367_v2 = vld [vmem:[%s1352_s2 + $0x8] sm:$0xf] }
  0x10   :  { %v519_v3 = vcombine.high %v515_v1, %v515_v1 }
  0x11   :  { %926 = vmatpush3.bf16.msra.mxu1 %v1130_v19 }
  0x12   :  { %896 = vmatpush3.bf16.msra.mxu0 %v1180_v34  ;;  %928 = vmatprep.subr.bf16.mxu1 %v1140_v22 }
  0x13   :  { %898 = vmatprep.subr.bf16.mxu0 %v1192_v37 }
  0x15   :  { %930 = vmatpush3.bf16.msra.mxu1 %v1159_v28 }
  0x16   :  { %900 = vmatpush3.bf16.msra.mxu0 %v1210_v44  ;;  %932 = vmatprep.subr.bf16.mxu1 %v1163_v29 }
  0x17   :  { %902 = vmatprep.subr.bf16.mxu0 %v1214_v45 }
  0x19   :  { %934 = vmatpush3.bf16.msra.mxu1 %v1180_v34 }
  0x1a   :  { %904 = vmatpush3.bf16.msra.mxu0 %v1230_v50  ;;  %936 = vmatprep.subr.bf16.mxu1 %v1192_v37 }
  0x1b   :  { %906 = vmatprep.subr.bf16.mxu0 %v1234_v51 }
  0x1d   :  { %938 = vmatpush3.bf16.msra.mxu1 %v1210_v44 }
  0x1e   :  { %908 = vmatpush3.bf16.msra.mxu0 %v1250_v56  ;;  %940 = vmatprep.subr.bf16.mxu1 %v1214_v45 }
  0x1f   :  { %910 = vmatprep.subr.bf16.mxu0 %v1254_v57 }
  0x21   :  { %942 = vmatpush3.bf16.msra.mxu1 %v1230_v50 }
  0x22   :  { %912 = vmatpush3.bf16.msra.mxu0 %v1264_v60  ;;  %944 = vmatprep.subr.bf16.mxu1 %v1234_v51 }
  0x23   :  { %951 = vmatprep.subr.bf16.mxu0 %v1040_v0 }
  0x25   :  { %140 = vmatmul.mubr.f32.vlgmr.msra.gmra.mrb[0].mxu0 %v60_v35  ;;  %946 = vmatpush3.bf16.msra.mxu1 %v1250_v56 }
  0x26   :  { %953 = vmatpush3.bf16.msra.mxu0 %v1101_v9  ;;  %948 = vmatprep.subr.bf16.mxu1 %v1254_v57 }
  0x27   :  { %954 = vmatprep.subr.bf16.mxu0 %v1040_v0  ;;  %856 = vmatprep.mubr.msk.f32.mxu0 %vm1041_vm0, %v1042_v4 }
  0x29   :  { %950 = vmatpush3.bf16.msra.mxu1 %v1264_v60 }
  0x2a   :  { %956 = vmatpush3.bf16.msra.mxu0 %v1128_v18  ;;  %989 = vmatprep.subr.bf16.mxu1 %v1040_v0 }
  0x2b   :  { %958 = vmatprep.subr.bf16.mxu0 %v1090_v5 }
  0x2c   :  { %289 = vmatmul.mubr.f32.vlgmr.msra.gmra.mrb[2].mxu1 %v1188_v36 }
  0x2d   :  { %857 = vmatmul.mubr.msk.f32.vlgmr.msra.gmra.mrb[2].mxu0 %vm72_vm1, %v217_v62  ;;  %991 = vmatpush3.bf16.msra.mxu1 %v1101_v9 }
  0x2e   :  { %960 = vmatpush3.bf16.msra.mxu0 %v1103_v10  ;;  %992 = vmatprep.subr.bf16.mxu1 %v1040_v0 }
  0x2f   :  { %962 = vmatprep.subr.bf16.mxu0 %v1115_v14  ;;  %867 = vmatprep.mubr.msk.f32.mxu1 %vm1041_vm0, %v1042_v4 }
  0x30   :  { %438 = vmatprep.mubr.f32.mxu0 %v370_v63 }
  0x31   :  { %994 = vmatpush3.bf16.msra.mxu1 %v1128_v18 }
  0x32   :  { %964 = vmatpush3.bf16.msra.mxu0 %v1130_v19  ;;  %996 = vmatprep.subr.bf16.mxu1 %v1090_v5  ;;  %v516_v5 = vld [vmem:[%s1353_s3 + $0x8] sm:$0xf] }
  0x33   :  { %966 = vmatprep.subr.bf16.mxu0 %v1140_v22 }
  0x34   :  { %868 = vmatmul.mubr.msk.f32.vlgmr.msra.gmra.mrb[4].mxu1 %vm72_vm1, %v367_v2 }
  0x35   :  { %998 = vmatpush3.bf16.msra.mxu1 %v1103_v10  ;;  %587 = vmatprep.mubr.f32.mxu1 %v519_v3 }
  0x36   :  { %968 = vmatpush3.bf16.msra.mxu0 %v1159_v28  ;;  %1000 = vmatprep.subr.bf16.mxu1 %v1115_v14 }
  0x37   :  { %970 = vmatprep.subr.bf16.mxu0 %v1163_v29 }
  0x39   :  { %1002 = vmatpush3.bf16.msra.mxu1 %v1130_v19 }
  0x3a   :  { %972 = vmatpush3.bf16.msra.mxu0 %v1180_v34  ;;  %1004 = vmatprep.subr.bf16.mxu1 %v1140_v22 }
  0x3b   :  { %974 = vmatprep.subr.bf16.mxu0 %v1192_v37 }
  0x3d   :  { %1006 = vmatpush3.bf16.msra.mxu1 %v1159_v28 }
  0x3e   :  { %976 = vmatpush3.bf16.msra.mxu0 %v1210_v44  ;;  %1008 = vmatprep.subr.bf16.mxu1 %v1163_v29 }
  0x3f   :  { %978 = vmatprep.subr.bf16.mxu0 %v1214_v45 }
  0x41   :  { %1010 = vmatpush3.bf16.msra.mxu1 %v1180_v34 }
  0x42   :  { %980 = vmatpush3.bf16.msra.mxu0 %v1230_v50  ;;  %1012 = vmatprep.subr.bf16.mxu1 %v1192_v37 }
  0x43   :  { %982 = vmatprep.subr.bf16.mxu0 %v1234_v51 }
  0x45   :  { %1014 = vmatpush3.bf16.msra.mxu1 %v1210_v44 }
  0x46   :  { %984 = vmatpush3.bf16.msra.mxu0 %v1250_v56  ;;  %1016 = vmatprep.subr.bf16.mxu1 %v1214_v45 }
  0x47   :  { %986 = vmatprep.subr.bf16.mxu0 %v1254_v57 }
  0x49   :  { %1018 = vmatpush3.bf16.msra.mxu1 %v1230_v50 }
  0x4a   :  { %988 = vmatpush3.bf16.msra.mxu0 %v1264_v60  ;;  %1020 = vmatprep.subr.bf16.mxu1 %v1234_v51 }
  0x4b   :  { %1027 = vmatprep.subr.bf16.mxu0 %v1040_v0 }
  0x4d   :  { %439 = vmatmul.mubr.f32.vlgmr.msra.gmra.mrb[4].mxu0 %v366_v61  ;;  %1022 = vmatpush3.bf16.msra.mxu1 %v1250_v56 }
  0x4e   :  { %1029 = vmatpush3.bf16.msra.mxu0 %v1101_v9  ;;  %1024 = vmatprep.subr.bf16.mxu1 %v1254_v57 }
  0x4f   :  { %1030 = vmatprep.subr.bf16.mxu0 %v1040_v0  ;;  %878 = vmatprep.mubr.msk.f32.mxu0 %vm1041_vm0, %v1042_v4  ;;  %v672_v0 = vld [vmem:[%s1354_s5] ss:$0 sm:$0xff] }
  0x51   :  { %1026 = vmatpush3.bf16.msra.mxu1 %v1264_v60 }
  0x52   :  { %1032 = vmatpush3.bf16.msra.mxu0 %v1128_v18 }
  0x54   :  { %588 = vmatmul.mubr.f32.vlgmr.msra.gmra.mrb[6].mxu1 %v515_v1 }
  0x55   :  { %879 = vmatmul.mubr.msk.f32.vlgmr.msra.gmra.mrb[6].mxu0 %vm72_vm1, %v516_v5 }
  0xdf   :  { %v211_v6 = vpop.f32.mrb[0].mxu1 }
  0xe0   :  { %v847_v7 = vpop.f32.mrb[1].mxu1 }
  0xf8   :  { %v709_v8 = vpop.f32.mrb[0].mxu0 }
  0xf9   :  { %v710_v9 = vpop.f32.mrb[1].mxu0 }
  0xfa   :  { %v711_v4 = vadd.f32 %v710_v9, %v709_v8 }
  0xfc   :  { %v142_v10 = vadd.f32 %v711_v4, %v672_v0 }
  0xfe   :  { %v212_v11 = vadd.f32 %v211_v6, %v142_v10 }
  0xff   :  { %v749_v12 = vpop.f32.mrb[2].mxu1 }
 0x100   :  { %v360_v13 = vpop.f32.mrb[2].mxu0  ;;  %v750_v14 = vpop.f32.mrb[3].mxu1  ;;  %v215_v19 = vmax.f32 %v212_v11, 0.0 }
 0x101   :  { %v858_v15 = vpop.f32.mrb[3].mxu0  ;;  %v751_v16 = vadd.f32 %v750_v14, %v749_v12 }
 0x103   :  { %v291_v17 = vadd.f32 %v751_v16, %v672_v0 }
 0x105   :  { %v361_v18 = vadd.f32 %v360_v13, %v291_v17 }
 0x107   :  { %v364_v20 = vmax.f32 %v361_v18, 0.0  ;;  %v510_v21 = vpop.f32.mrb[4].mxu1 }
 0x108   :  { %v869_v22 = vpop.f32.mrb[5].mxu1 }
 0x109   :  { %v365_v23 = vmax.f32 %v215_v19, %v364_v20 }
 0x120   :  { %v789_v24 = vpop.f32.mrb[4].mxu0 }
 0x121   :  { %v790_v25 = vpop.f32.mrb[5].mxu0 }
 0x122   :  { %v791_v26 = vadd.f32 %v790_v25, %v789_v24 }
 0x124   :  { %v441_v27 = vadd.f32 %v791_v26, %v672_v0 }
 0x126   :  { %v511_v28 = vadd.f32 %v510_v21, %v441_v27 }
 0x127   :  { %v829_v29 = vpop.f32.mrb[6].mxu1 }
 0x128   :  { %v659_v30 = vpop.f32.mrb[6].mxu0  ;;  %v830_v31 = vpop.f32.mrb[7].mxu1  ;;  %v514_v36 = vmax.f32 %v511_v28, 0.0 }
 0x129   :  { %v880_v32 = vpop.f32.mrb[7].mxu0  ;;  %v831_v33 = vadd.f32 %v830_v31, %v829_v29 }
 0x12b   :  { %v590_v34 = vadd.f32 %v831_v33, %v672_v0 }
 0x12d   :  { %v660_v35 = vadd.f32 %v659_v30, %v590_v34 }
 0x12f   :  { %v663_v37 = vmax.f32 %v660_v35, 0.0 }
 0x131   :  { %v664_v38 = vmax.f32 %v514_v36, %v663_v37 }
 0x133   :  { %v665_v39 = vmax.f32 %v365_v23, %v664_v38 }
 0x135   :  { %667 = vst.msk [vmem:[%s1355_s6] sm:$0xf] %vm666_vm2, %v665_v39 }

// kernel: forward.7
= control target key start
LH: loop header
LB: loop body
LE: loop exit
PB: predicated region body
PF: predicated region fallthrough
CT: control target
= control target key end

     0   :  { %18 = vsyncpa [#allocation4], 0  ;;  %v3714_v7 = vmov 0.0   ;;  %s3701_s0 = inlined_call_operand.vmem [shape: f32[2,128], index: 0, kind: input, shape index: {}]   ;;  %s3702_s1 = inlined_call_operand.vmem [shape: f32[128,1024], index: 1, kind: input, shape index: {}]   ;;  %s3703_s2 = inlined_call_operand.vmem [shape: f32[1,1024], index: 2, kind: input, shape index: {}]   ;;  %s3704_s3 = inlined_call_operand.vmem [shape: f32[128,512], index: 3, kind: input, shape index: {}]   ;;  %s3705_s4 = inlined_call_operand.vmem [shape: f32[128,512], index: 4, kind: input, shape index: {}]   ;;  %s3706_s5 = inlined_call_operand.vmem [shape: f32[256,32], index: 5, kind: input, shape index: {}]   ;;  %s3707_s6 = inlined_call_operand.vmem [shape: f32[1,32], index: 6, kind: input, shape index: {}]   ;;  %s3708_s7 = inlined_call_operand.vmem [shape: f32[32,4], index: 7, kind: input, shape index: {}]   ;;  %s3709_s8 = inlined_call_operand.vmem [shape: f32[1,4], index: 8, kind: input, shape index: {}]   ;;  %s3710_s9 = inlined_call_operand.hbm [shape: f32[2,256], index: 9, kind: output, shape index: {0}]   ;;  %s3711_s10 = inlined_call_operand.vmem [shape: f32[2,32], index: 10, kind: output, shape index: {1}]   ;;  %s3712_s11 = inlined_call_operand.hbm [shape: f32[2,4], index: 11, kind: output, shape index: {2}]   ;;  %s3713_s12 = inlined_call_operand.hbm [shape: f32[2,4], index: 12, kind: output, shape index: {3}]  }
   0x1   :  { %v40_v0 = vld [vmem:[%s3702_s1 + $0x8] sm:$0xff]  ;;  %v42_v2 = vld [vmem:[%s3702_s1 + $0x18] sm:$0xff]  ;;  %v39_v5 = vld [vmem:[%s3702_s1] sm:$0xff]  ;;  %273 = vmatprep.mubr.f32.mxu0 %v3714_v7  ;;  %344 = vmatprep.mubr.f32.mxu1 %v3714_v7 }
   0x2   :  { %v48_v1 = vld [vmem:[%s3702_s1 + $0x48] sm:$0xff]  ;;  %v50_v4 = vld [vmem:[%s3702_s1 + $0x58] sm:$0xff]  ;;  %v47_v6 = vld [vmem:[%s3702_s1 + $0x40] sm:$0xff] }
   0x3   :  { %v1828_v3 = vpack.c.bf16 %v48_v1, %v40_v0  ;;  %v1860_v8 = vpack.c.bf16 %v50_v4, %v42_v2  ;;  %v1830_v9 = vpack.c.bf16 %v47_v6, %v39_v5  ;;  %v41_v10 = vld [vmem:[%s3702_s1 + $0x10] sm:$0xff]  ;;  %v56_v12 = vld [vmem:[%s3702_s1 + $0x88] sm:$0xff]  ;;  %v58_v15 = vld [vmem:[%s3702_s1 + $0x98] sm:$0xff] }
   0x4   :  { %v49_v11 = vld [vmem:[%s3702_s1 + $0x50] sm:$0xff]  ;;  %v64_v14 = vld [vmem:[%s3702_s1 + $0xc8] sm:$0xff]  ;;  %v66_v16 = vld [vmem:[%s3702_s1 + $0xd8] sm:$0xff] }
   0x5   :  { %1829 = vmatprep.subr.bf16.mxu0 %v1828_v3  ;;  %v1862_v13 = vpack.c.bf16 %v49_v11, %v41_v10  ;;  %1861 = vmatprep.subr.bf16.mxu1 %v1860_v8  ;;  %v1832_v17 = vpack.c.bf16 %v64_v14, %v56_v12  ;;  %v1864_v18 = vpack.c.bf16 %v66_v16, %v58_v15  ;;  %v55_v19 = vld [vmem:[%s3702_s1 + $0x80] sm:$0xff]  ;;  %v57_v21 = vld [vmem:[%s3702_s1 + $0x90] sm:$0xff]  ;;  %v72_v24 = vld [vmem:[%s3702_s1 + $0x108] sm:$0xff] }
   0x6   :  { %1831 = vmatpush1.bf16.msra.mxu0 %v1830_v9  ;;  %v63_v20 = vld [vmem:[%s3702_s1 + $0xc0] sm:$0xff]  ;;  %v65_v23 = vld [vmem:[%s3702_s1 + $0xd0] sm:$0xff]  ;;  %v80_v25 = vld [vmem:[%s3702_s1 + $0x148] sm:$0xff] }
   0x7   :  { %1863 = vmatpush1.bf16.msra.mxu1 %v1862_v13  ;;  %v1834_v22 = vpack.c.bf16 %v63_v20, %v55_v19  ;;  %1833 = vmatprep.subr.bf16.mxu0 %v1832_v17  ;;  %v1866_v26 = vpack.c.bf16 %v65_v23, %v57_v21  ;;  %v1836_v27 = vpack.c.bf16 %v80_v25, %v72_v24  ;;  %v74_v28 = vld [vmem:[%s3702_s1 + $0x118] sm:$0xff]  ;;  %v71_v30 = vld [vmem:[%s3702_s1 + $0x100] sm:$0xff]  ;;  %v73_v33 = vld [vmem:[%s3702_s1 + $0x110] sm:$0xff] }
   0x8   :  { %1865 = vmatprep.subr.bf16.mxu1 %v1864_v18  ;;  %v82_v29 = vld [vmem:[%s3702_s1 + $0x158] sm:$0xff]  ;;  %v79_v32 = vld [vmem:[%s3702_s1 + $0x140] sm:$0xff]  ;;  %v81_v34 = vld [vmem:[%s3702_s1 + $0x150] sm:$0xff] }
   0x9   :  { %v1868_v31 = vpack.c.bf16 %v82_v29, %v74_v28  ;;  %v1838_v35 = vpack.c.bf16 %v79_v32, %v71_v30  ;;  %v88_v36 = vld [vmem:[%s3702_s1 + $0x188] sm:$0xff]  ;;  %v90_v38 = vld [vmem:[%s3702_s1 + $0x198] sm:$0xff]  ;;  %v1870_v39 = vpack.c.bf16 %v81_v34, %v73_v33  ;;  %v87_v42 = vld [vmem:[%s3702_s1 + $0x180] sm:$0xff] }
   0xa   :  { %1835 = vmatpush1.bf16.msra.mxu0 %v1834_v22  ;;  %v96_v37 = vld [vmem:[%s3702_s1 + $0x1c8] sm:$0xff]  ;;  %v98_v41 = vld [vmem:[%s3702_s1 + $0x1d8] sm:$0xff]  ;;  %v95_v43 = vld [vmem:[%s3702_s1 + $0x1c0] sm:$0xff] }
   0xb   :  { %1867 = vmatpush1.bf16.msra.mxu1 %v1866_v26  ;;  %1837 = vmatprep.subr.bf16.mxu0 %v1836_v27  ;;  %v1840_v40 = vpack.c.bf16 %v96_v37, %v88_v36  ;;  %v1872_v44 = vpack.c.bf16 %v98_v41, %v90_v38  ;;  %v89_v45 = vld [vmem:[%s3702_s1 + $0x190] sm:$0xff]  ;;  %v104_v47 = vld [vmem:[%s3702_s1 + $0x208] sm:$0xff]  ;;  %v106_v49 = vld [vmem:[%s3702_s1 + $0x218] sm:$0xff]  ;;  %v1842_v51 = vpack.c.bf16 %v95_v43, %v87_v42 }
   0xc   :  { %1869 = vmatprep.subr.bf16.mxu1 %v1868_v31  ;;  %v97_v46 = vld [vmem:[%s3702_s1 + $0x1d0] sm:$0xff]  ;;  %v112_v48 = vld [vmem:[%s3702_s1 + $0x248] sm:$0xff]  ;;  %v114_v50 = vld [vmem:[%s3702_s1 + $0x258] sm:$0xff] }
   0xd   :  { %v1874_v52 = vpack.c.bf16 %v97_v46, %v89_v45  ;;  %v1844_v53 = vpack.c.bf16 %v112_v48, %v104_v47  ;;  %v103_v54 = vld [vmem:[%s3702_s1 + $0x200] sm:$0xff]  ;;  %v105_v56 = vld [vmem:[%s3702_s1 + $0x210] sm:$0xff]  ;;  %v1876_v57 = vpack.c.bf16 %v114_v50, %v106_v49  ;;  %v120_v59 = vld [vmem:[%s3702_s1 + $0x288] sm:$0xff] }
   0xe   :  { %1839 = vmatpush1.bf16.msra.mxu0 %v1838_v35  ;;  %v111_v55 = vld [vmem:[%s3702_s1 + $0x240] sm:$0xff]  ;;  %v113_v58 = vld [vmem:[%s3702_s1 + $0x250] sm:$0xff]  ;;  %v128_v60 = vld [vmem:[%s3702_s1 + $0x2c8] sm:$0xff] }
   0xf   :  { %1871 = vmatpush1.bf16.msra.mxu1 %v1870_v39  ;;  %1841 = vmatprep.subr.bf16.mxu0 %v1840_v40  ;;  %v122_v61 = vld [vmem:[%s3702_s1 + $0x298] sm:$0xff]  ;;  %v1846_v63 = vpack.c.bf16 %v111_v55, %v103_v54  ;;  %v1878_v0 = vpack.c.bf16 %v113_v58, %v105_v56  ;;  %v1848_v1 = vpack.c.bf16 %v128_v60, %v120_v59  ;;  %v119_v2 = vld [vmem:[%s3702_s1 + $0x280] sm:$0xff]  ;;  %v121_v4 = vld [vmem:[%s3702_s1 + $0x290] sm:$0xff] }
  0x10   :  { %1873 = vmatprep.subr.bf16.mxu1 %v1872_v44  ;;  %v130_v62 = vld [vmem:[%s3702_s1 + $0x2d8] sm:$0xff]  ;;  %v127_v3 = vld [vmem:[%s3702_s1 + $0x2c0] sm:$0xff]  ;;  %v129_v6 = vld [vmem:[%s3702_s1 + $0x2d0] sm:$0xff] }
  0x11   :  { %v1880_v5 = vpack.c.bf16 %v130_v62, %v122_v61  ;;  %v136_v8 = vld [vmem:[%s3702_s1 + $0x308] sm:$0xff]  ;;  %v138_v10 = vld [vmem:[%s3702_s1 + $0x318] sm:$0xff]  ;;  %v1850_v12 = vpack.c.bf16 %v127_v3, %v119_v2  ;;  %v1882_v13 = vpack.c.bf16 %v129_v6, %v121_v4  ;;  %v135_v15 = vld [vmem:[%s3702_s1 + $0x300] sm:$0xff] }
  0x12   :  { %1843 = vmatpush1.bf16.msra.mxu0 %v1842_v51  ;;  %v144_v9 = vld [vmem:[%s3702_s1 + $0x348] sm:$0xff]  ;;  %v146_v11 = vld [vmem:[%s3702_s1 + $0x358] sm:$0xff]  ;;  %v143_v16 = vld [vmem:[%s3702_s1 + $0x340] sm:$0xff] }
  0x13   :  { %1875 = vmatpush1.bf16.msra.mxu1 %v1874_v52  ;;  %1845 = vmatprep.subr.bf16.mxu0 %v1844_v53  ;;  %v1852_v14 = vpack.c.bf16 %v144_v9, %v136_v8  ;;  %v137_v17 = vld [vmem:[%s3702_s1 + $0x310] sm:$0xff]  ;;  %v1884_v18 = vpack.c.bf16 %v146_v11, %v138_v10  ;;  %v152_v20 = vld [vmem:[%s3702_s1 + $0x388] sm:$0xff]  ;;  %v154_v22 = vld [vmem:[%s3702_s1 + $0x398] sm:$0xff]  ;;  %v1854_v24 = vpack.c.bf16 %v143_v16, %v135_v15 }
  0x14   :  { %1877 = vmatprep.subr.bf16.mxu1 %v1876_v57  ;;  %v145_v19 = vld [vmem:[%s3702_s1 + $0x350] sm:$0xff]  ;;  %v160_v21 = vld [vmem:[%s3702_s1 + $0x3c8] sm:$0xff]  ;;  %v162_v23 = vld [vmem:[%s3702_s1 + $0x3d8] sm:$0xff] }
  0x15   :  { %v1886_v25 = vpack.c.bf16 %v145_v19, %v137_v17  ;;  %v1856_v26 = vpack.c.bf16 %v160_v21, %v152_v20  ;;  %v151_v27 = vld [vmem:[%s3702_s1 + $0x380] sm:$0xff]  ;;  %v153_v29 = vld [vmem:[%s3702_s1 + $0x390] sm:$0xff]  ;;  %v1888_v30 = vpack.c.bf16 %v162_v23, %v154_v22  ;;  %v44_v32 = vld [vmem:[%s3702_s1 + $0x28] sm:$0xff] }
  0x16   :  { %1847 = vmatpush1.bf16.msra.mxu0 %v1846_v63  ;;  %v159_v28 = vld [vmem:[%s3702_s1 + $0x3c0] sm:$0xff]  ;;  %v161_v31 = vld [vmem:[%s3702_s1 + $0x3d0] sm:$0xff]  ;;  %v52_v33 = vld [vmem:[%s3702_s1 + $0x68] sm:$0xff] }
  0x17   :  { %1879 = vmatpush1.bf16.msra.mxu1 %v1878_v0  ;;  %1849 = vmatprep.subr.bf16.mxu0 %v1848_v1  ;;  %v46_v34 = vld [vmem:[%s3702_s1 + $0x38] sm:$0xff]  ;;  %v1858_v36 = vpack.c.bf16 %v159_v28, %v151_v27  ;;  %v1890_v37 = vpack.c.bf16 %v161_v31, %v153_v29  ;;  %v1892_v38 = vpack.c.bf16 %v52_v33, %v44_v32  ;;  %v43_v39 = vld [vmem:[%s3702_s1 + $0x20] sm:$0xff]  ;;  %v45_v41 = vld [vmem:[%s3702_s1 + $0x30] sm:$0xff] }
  0x18   :  { %1881 = vmatprep.subr.bf16.mxu1 %v1880_v5  ;;  %v54_v35 = vld [vmem:[%s3702_s1 + $0x78] sm:$0xff]  ;;  %v51_v40 = vld [vmem:[%s3702_s1 + $0x60] sm:$0xff]  ;;  %v53_v43 = vld [vmem:[%s3702_s1 + $0x70] sm:$0xff] }
  0x19   :  { %v1924_v42 = vpack.c.bf16 %v54_v35, %v46_v34  ;;  %v60_v44 = vld [vmem:[%s3702_s1 + $0xa8] sm:$0xff]  ;;  %v62_v46 = vld [vmem:[%s3702_s1 + $0xb8] sm:$0xff]  ;;  %v2702_v48 = vld [vmem:[%s3701_s0] sm:$0x3]  ;;  %v1894_v49 = vpack.c.bf16 %v51_v40, %v43_v39  ;;  %v1926_v50 = vpack.c.bf16 %v53_v43, %v45_v41 }
  0x1a   :  { %1851 = vmatpush1.bf16.msra.mxu0 %v1850_v12  ;;  %v68_v45 = vld [vmem:[%s3702_s1 + $0xe8] sm:$0xff]  ;;  %v70_v47 = vld [vmem:[%s3702_s1 + $0xf8] sm:$0xff]  ;;  %v59_v52 = vld [vmem:[%s3702_s1 + $0xa0] sm:$0xff] }
  0x1b   :  { %1883 = vmatpush1.bf16.msra.mxu1 %v1882_v13  ;;  %1853 = vmatprep.subr.bf16.mxu0 %v1852_v14  ;;  %v1896_v51 = vpack.c.bf16 %v68_v45, %v60_v44  ;;  %v67_v53 = vld [vmem:[%s3702_s1 + $0xe0] sm:$0xff]  ;;  %v61_v54 = vld [vmem:[%s3702_s1 + $0xb0] sm:$0xff]  ;;  %v1928_v55 = vpack.c.bf16 %v70_v47, %v62_v46  ;;  %v76_v57 = vld [vmem:[%s3702_s1 + $0x128] sm:$0xff] }
  0x1c   :  { %1885 = vmatprep.subr.bf16.mxu1 %v1884_v18  ;;  %v69_v56 = vld [vmem:[%s3702_s1 + $0xf0] sm:$0xff]  ;;  %v84_v58 = vld [vmem:[%s3702_s1 + $0x168] sm:$0xff]  ;;  %v78_v59 = vld [vmem:[%s3702_s1 + $0x138] sm:$0xff]  ;;  %v1898_v61 = vpack.c.bf16 %v67_v53, %v59_v52 }
  0x1d   :  { %v86_v60 = vld [vmem:[%s3702_s1 + $0x178] sm:$0xff]  ;;  %v1930_v62 = vpack.c.bf16 %v69_v56, %v61_v54  ;;  %v1900_v63 = vpack.c.bf16 %v84_v58, %v76_v57  ;;  %v75_v0 = vld [vmem:[%s3702_s1 + $0x120] sm:$0xff]  ;;  %v77_v2 = vld [vmem:[%s3702_s1 + $0x130] sm:$0xff] }
  0x1e   :  { %1855 = vmatpush1.bf16.msra.mxu0 %v1854_v24  ;;  %v83_v1 = vld [vmem:[%s3702_s1 + $0x160] sm:$0xff]  ;;  %v1932_v3 = vpack.c.bf16 %v86_v60, %v78_v59  ;;  %v85_v4 = vld [vmem:[%s3702_s1 + $0x170] sm:$0xff]  ;;  %v92_v5 = vld [vmem:[%s3702_s1 + $0x1a8] sm:$0xff] }
  0x1f   :  { %1887 = vmatpush1.bf16.msra.mxu1 %v1886_v25  ;;  %1857 = vmatprep.subr.bf16.mxu0 %v1856_v26  ;;  %v100_v6 = vld [vmem:[%s3702_s1 + $0x1e8] sm:$0xff]  ;;  %v94_v8 = vld [vmem:[%s3702_s1 + $0x1b8] sm:$0xff]  ;;  %v1902_v10 = vpack.c.bf16 %v83_v1, %v75_v0  ;;  %v1934_v11 = vpack.c.bf16 %v85_v4, %v77_v2  ;;  %v91_v13 = vld [vmem:[%s3702_s1 + $0x1a0] sm:$0xff] }
  0x20   :  { %1889 = vmatprep.subr.bf16.mxu1 %v1888_v30  ;;  %v102_v9 = vld [vmem:[%s3702_s1 + $0x1f8] sm:$0xff]  ;;  %v1904_v12 = vpack.c.bf16 %v100_v6, %v92_v5  ;;  %v99_v14 = vld [vmem:[%s3702_s1 + $0x1e0] sm:$0xff]  ;;  %v93_v15 = vld [vmem:[%s3702_s1 + $0x1b0] sm:$0xff] }
  0x21   :  { %v1936_v16 = vpack.c.bf16 %v102_v9, %v94_v8  ;;  %v101_v17 = vld [vmem:[%s3702_s1 + $0x1f0] sm:$0xff]  ;;  %v108_v18 = vld [vmem:[%s3702_s1 + $0x228] sm:$0xff]  ;;  %v110_v20 = vld [vmem:[%s3702_s1 + $0x238] sm:$0xff]  ;;  %v1906_v22 = vpack.c.bf16 %v99_v14, %v91_v13 }
  0x22   :  { %1859 = vmatpush1.bf16.msra.mxu0 %v1858_v36  ;;  %v116_v19 = vld [vmem:[%s3702_s1 + $0x268] sm:$0xff]  ;;  %v118_v21 = vld [vmem:[%s3702_s1 + $0x278] sm:$0xff]  ;;  %v1938_v23 = vpack.c.bf16 %v101_v17, %v93_v15  ;;  %v107_v25 = vld [vmem:[%s3702_s1 + $0x220] sm:$0xff] }
  0x23   :  { %1891 = vmatpush1.bf16.msra.mxu1 %v1890_v37  ;;  %1893 = vmatprep.subr.bf16.mxu0 %v1892_v38  ;;  %v1908_v24 = vpack.c.bf16 %v116_v19, %v108_v18  ;;  %v115_v26 = vld [vmem:[%s3702_s1 + $0x260] sm:$0xff]  ;;  %v109_v27 = vld [vmem:[%s3702_s1 + $0x230] sm:$0xff]  ;;  %v1940_v28 = vpack.c.bf16 %v118_v21, %v110_v20  ;;  %v124_v30 = vld [vmem:[%s3702_s1 + $0x2a8] sm:$0xff] }
  0x24   :  { %1925 = vmatprep.subr.bf16.mxu1 %v1924_v42  ;;  %v117_v29 = vld [vmem:[%s3702_s1 + $0x270] sm:$0xff]  ;;  %v132_v31 = vld [vmem:[%s3702_s1 + $0x2e8] sm:$0xff]  ;;  %v126_v32 = vld [vmem:[%s3702_s1 + $0x2b8] sm:$0xff]  ;;  %v1910_v34 = vpack.c.bf16 %v115_v26, %v107_v25 }
  0x25   :  { %274 = vmatmul.mubr.f32.vlgmr.msra.gmra.mrb[0].mxu0 %v2702_v48  ;;  %v134_v33 = vld [vmem:[%s3702_s1 + $0x2f8] sm:$0xff]  ;;  %v1942_v35 = vpack.c.bf16 %v117_v29, %v109_v27  ;;  %v1912_v36 = vpack.c.bf16 %v132_v31, %v124_v30  ;;  %v123_v37 = vld [vmem:[%s3702_s1 + $0x2a0] sm:$0xff]  ;;  %v125_v39 = vld [vmem:[%s3702_s1 + $0x2b0] sm:$0xff] }
  0x26   :  { %345 = vmatmul.mubr.f32.vlgmr.msra.gmra.mrb[0].mxu1 %v2702_v48  ;;  %1895 = vmatpush1.bf16.msra.mxu0 %v1894_v49  ;;  %v131_v38 = vld [vmem:[%s3702_s1 + $0x2e0] sm:$0xff]  ;;  %v1944_v40 = vpack.c.bf16 %v134_v33, %v126_v32  ;;  %v133_v41 = vld [vmem:[%s3702_s1 + $0x2f0] sm:$0xff]  ;;  %v140_v42 = vld [vmem:[%s3702_s1 + $0x328] sm:$0xff] }
  0x27   :  { %1927 = vmatpush1.bf16.msra.mxu1 %v1926_v50  ;;  %1897 = vmatprep.subr.bf16.mxu0 %v1896_v51  ;;  %v148_v43 = vld [vmem:[%s3702_s1 + $0x368] sm:$0xff]  ;;  %v142_v44 = vld [vmem:[%s3702_s1 + $0x338] sm:$0xff]  ;;  %v1914_v46 = vpack.c.bf16 %v131_v38, %v123_v37  ;;  %v1946_v47 = vpack.c.bf16 %v133_v41, %v125_v39  ;;  %v139_v50 = vld [vmem:[%s3702_s1 + $0x320] sm:$0xff] }
  0x28   :  { %1929 = vmatprep.subr.bf16.mxu1 %v1928_v55  ;;  %415 = vmatprep.mubr.f32.mxu0 %v3714_v7  ;;  %v150_v45 = vld [vmem:[%s3702_s1 + $0x378] sm:$0xff]  ;;  %v1916_v49 = vpack.c.bf16 %v148_v43, %v140_v42  ;;  %v147_v51 = vld [vmem:[%s3702_s1 + $0x360] sm:$0xff]  ;;  %v141_v52 = vld [vmem:[%s3702_s1 + $0x330] sm:$0xff] }
  0x29   :  { %486 = vmatprep.mubr.f32.mxu1 %v3714_v7  ;;  %v1948_v53 = vpack.c.bf16 %v150_v45, %v142_v44  ;;  %v149_v54 = vld [vmem:[%s3702_s1 + $0x370] sm:$0xff]  ;;  %v156_v55 = vld [vmem:[%s3702_s1 + $0x3a8] sm:$0xff]  ;;  %v158_v57 = vld [vmem:[%s3702_s1 + $0x3b8] sm:$0xff]  ;;  %v1918_v59 = vpack.c.bf16 %v147_v51, %v139_v50 }
  0x2a   :  { %1899 = vmatpush1.bf16.msra.mxu0 %v1898_v61  ;;  %v164_v56 = vld [vmem:[%s3702_s1 + $0x3e8] sm:$0xff]  ;;  %v166_v58 = vld [vmem:[%s3702_s1 + $0x3f8] sm:$0xff]  ;;  %v1950_v60 = vpack.c.bf16 %v149_v54, %v141_v52  ;;  %v157_v0 = vld [vmem:[%s3702_s1 + $0x3b0] sm:$0xff] }
  0x2b   :  { %1931 = vmatpush1.bf16.msra.mxu1 %v1930_v62  ;;  %1901 = vmatprep.subr.bf16.mxu0 %v1900_v63  ;;  %v1920_v61 = vpack.c.bf16 %v164_v56, %v156_v55  ;;  %v155_v62 = vld [vmem:[%s3702_s1 + $0x3a0] sm:$0xff]  ;;  %v1952_v1 = vpack.c.bf16 %v166_v58, %v158_v57  ;;  %v165_v2 = vld [vmem:[%s3702_s1 + $0x3f0] sm:$0xff]  ;;  %v544_v4 = vld [vmem:[%s3704_s3 + $0x28] sm:$0xff] }
  0x2c   :  { %1933 = vmatprep.subr.bf16.mxu1 %v1932_v3  ;;  %v163_v63 = vld [vmem:[%s3702_s1 + $0x3e0] sm:$0xff]  ;;  %v540_v3 = vld [vmem:[%s3704_s3 + $0x8] sm:$0xff]  ;;  %v542_v5 = vld [vmem:[%s3704_s3 + $0x18] sm:$0xff]  ;;  %v1954_v9 = vpack.c.bf16 %v165_v2, %v157_v0 }
  0x2d   :  { %v546_v6 = vld [vmem:[%s3704_s3 + $0x38] sm:$0xff]  ;;  %v1922_v8 = vpack.c.bf16 %v163_v63, %v155_v62  ;;  %v541_v13 = vld [vmem:[%s3704_s3 + $0x10] sm:$0xff]  ;;  %v552_v17 = vld [vmem:[%s3704_s3 + $0x68] sm:$0xff] }
  0x2e   :  { %1903 = vmatpush1.bf16.msra.mxu0 %v1902_v10  ;;  %v2876_v10 = vpack.c.bf16 %v544_v4, %v540_v3  ;;  %v2887_v14 = vpack.c.bf16 %v546_v6, %v542_v5  ;;  %v545_v15 = vld [vmem:[%s3704_s3 + $0x30] sm:$0xff]  ;;  %v550_v18 = vld [vmem:[%s3704_s3 + $0x58] sm:$0xff]  ;;  %v560_v29 = vld [vmem:[%s3704_s3 + $0xa8] sm:$0xff] }
  0x2f   :  { %1935 = vmatpush1.bf16.msra.mxu1 %v1934_v11  ;;  %1905 = vmatprep.subr.bf16.mxu0 %v1904_v12  ;;  %v539_v11 = vld [vmem:[%s3704_s3] sm:$0xff]  ;;  %v554_v19 = vld [vmem:[%s3704_s3 + $0x78] sm:$0xff]  ;;  %v2907_v21 = vpack.c.bf16 %v545_v15, %v541_v13  ;;  %v549_v25 = vld [vmem:[%s3704_s3 + $0x50] sm:$0xff] }
  0x30   :  { %1937 = vmatprep.subr.bf16.mxu1 %v1936_v16  ;;  %v543_v12 = vld [vmem:[%s3704_s3 + $0x20] sm:$0xff]  ;;  %v548_v16 = vld [vmem:[%s3704_s3 + $0x48] sm:$0xff]  ;;  %v2921_v26 = vpack.c.bf16 %v554_v19, %v550_v18  ;;  %v553_v27 = vld [vmem:[%s3704_s3 + $0x70] sm:$0xff] }
  0x31   :  { %v2904_v20 = vpack.c.bf16 %v543_v12, %v539_v11  ;;  %v558_v30 = vld [vmem:[%s3704_s3 + $0x98] sm:$0xff]  ;;  %v2945_v33 = vpack.c.bf16 %v553_v27, %v549_v25  ;;  %v561_v38 = vld [vmem:[%s3704_s3 + $0xb0] sm:$0xff]  ;;  %v564_v39 = vld [vmem:[%s3704_s3 + $0xc8] sm:$0xff] }
  0x32   :  { %1907 = vmatpush1.bf16.msra.mxu0 %v1906_v22  ;;  %v2909_v22 = vpack.c.bf16 %v552_v17, %v548_v16  ;;  %v562_v31 = vld [vmem:[%s3704_s3 + $0xb8] sm:$0xff]  ;;  %v569_v51 = vld [vmem:[%s3704_s3 + $0xf0] sm:$0xff]  ;;  %v572_v52 = vld [vmem:[%s3704_s3 + $0x108] sm:$0xff] }
  0x33   :  { %1939 = vmatpush1.bf16.msra.mxu1 %v1938_v23  ;;  %1909 = vmatprep.subr.bf16.mxu0 %v1908_v24  ;;  %v547_v23 = vld [vmem:[%s3704_s3 + $0x40] sm:$0xff]  ;;  %v2959_v37 = vpack.c.bf16 %v562_v31, %v558_v30  ;;  %v566_v41 = vld [vmem:[%s3704_s3 + $0xd8] sm:$0xff]  ;;  %v577_v63 = vld [vmem:[%s3704_s3 + $0x130] sm:$0xff] }
  0x34   :  { %1941 = vmatprep.subr.bf16.mxu1 %v1940_v28  ;;  %v551_v24 = vld [vmem:[%s3704_s3 + $0x60] sm:$0xff]  ;;  %v556_v28 = vld [vmem:[%s3704_s3 + $0x88] sm:$0xff]  ;;  %v570_v42 = vld [vmem:[%s3704_s3 + $0xf8] sm:$0xff] }
  0x35   :  { %v2941_v32 = vpack.c.bf16 %v551_v24, %v547_v23  ;;  %v2997_v50 = vpack.c.bf16 %v570_v42, %v566_v41  ;;  %v574_v54 = vld [vmem:[%s3704_s3 + $0x118] sm:$0xff]  ;;  %v580_v0 = vld [vmem:[%s3704_s3 + $0x148] sm:$0xff]  ;;  %v581_v11 = vld [vmem:[%s3704_s3 + $0x150] sm:$0xff] }
  0x36   :  { %1911 = vmatpush1.bf16.msra.mxu0 %v1910_v34  ;;  %v2947_v34 = vpack.c.bf16 %v560_v29, %v556_v28  ;;  %v578_v55 = vld [vmem:[%s3704_s3 + $0x138] sm:$0xff]  ;;  %v585_v13 = vld [vmem:[%s3704_s3 + $0x170] sm:$0xff]  ;;  %v588_v15 = vld [vmem:[%s3704_s3 + $0x188] sm:$0xff] }
  0x37   :  { %1943 = vmatpush1.bf16.msra.mxu1 %v1942_v35  ;;  %1913 = vmatprep.subr.bf16.mxu0 %v1912_v36  ;;  %v555_v35 = vld [vmem:[%s3704_s3 + $0x80] sm:$0xff]  ;;  %v557_v36 = vld [vmem:[%s3704_s3 + $0x90] sm:$0xff]  ;;  %v3033_v62 = vpack.c.bf16 %v578_v55, %v574_v54  ;;  %v582_v2 = vld [vmem:[%s3704_s3 + $0x158] sm:$0xff]  ;;  %v3094_v24 = vpack.c.bf16 %v585_v13, %v581_v11 }
  0x38   :  { %1945 = vmatprep.subr.bf16.mxu1 %v1944_v40  ;;  %v568_v40 = vld [vmem:[%s3704_s3 + $0xe8] sm:$0xff]  ;;  %v2983_v44 = vpack.c.bf16 %v561_v38, %v557_v36  ;;  %v586_v3 = vld [vmem:[%s3704_s3 + $0x178] sm:$0xff]  ;;  %v587_v23 = vld [vmem:[%s3704_s3 + $0x180] sm:$0xff] }
  0x39   :  { %v2985_v45 = vpack.c.bf16 %v568_v40, %v564_v39  ;;  %v3069_v12 = vpack.c.bf16 %v586_v3, %v582_v2  ;;  %v592_v16 = vld [vmem:[%s3704_s3 + $0x1a8] sm:$0xff]  ;;  %v590_v17 = vld [vmem:[%s3704_s3 + $0x198] sm:$0xff]  ;;  %v591_v27 = vld [vmem:[%s3704_s3 + $0x1a0] sm:$0xff] }
  0x3a   :  { %1915 = vmatpush1.bf16.msra.mxu0 %v1914_v46  ;;  %v563_v46 = vld [vmem:[%s3704_s3 + $0xc0] sm:$0xff]  ;;  %v594_v18 = vld [vmem:[%s3704_s3 + $0x1b8] sm:$0xff]  ;;  %v3096_v25 = vpack.c.bf16 %v592_v16, %v588_v15  ;;  %v589_v28 = vld [vmem:[%s3704_s3 + $0x190] sm:$0xff] }
  0x3b   :  { %1947 = vmatpush1.bf16.msra.mxu1 %v1946_v47  ;;  %1917 = vmatprep.subr.bf16.mxu0 %v1916_v49  ;;  %v567_v47 = vld [vmem:[%s3704_s3 + $0xe0] sm:$0xff]  ;;  %v565_v49 = vld [vmem:[%s3704_s3 + $0xd0] sm:$0xff]  ;;  %v3108_v30 = vpack.c.bf16 %v594_v18, %v590_v17  ;;  %v596_v31 = vld [vmem:[%s3704_s3 + $0x1c8] sm:$0xff] }
  0x3c   :  { %1949 = vmatprep.subr.bf16.mxu1 %v1948_v53  ;;  %v576_v53 = vld [vmem:[%s3704_s3 + $0x128] sm:$0xff]  ;;  %v3015_v56 = vpack.c.bf16 %v567_v47, %v563_v46  ;;  %v3019_v57 = vpack.c.bf16 %v569_v51, %v565_v49  ;;  %v593_v29 = vld [vmem:[%s3704_s3 + $0x1b0] sm:$0xff] }
  0x3d   :  { %v3021_v58 = vpack.c.bf16 %v576_v53, %v572_v52 }
  0x3e   :  { %1919 = vmatpush1.bf16.msra.mxu0 %v1918_v59  ;;  %v571_v59 = vld [vmem:[%s3704_s3 + $0x100] sm:$0xff] }
  0x3f   :  { %1951 = vmatpush1.bf16.msra.mxu1 %v1950_v60  ;;  %1921 = vmatprep.subr.bf16.mxu0 %v1920_v61  ;;  %v575_v60 = vld [vmem:[%s3704_s3 + $0x120] sm:$0xff]  ;;  %v573_v61 = vld [vmem:[%s3704_s3 + $0x110] sm:$0xff] }
  0x40   :  { %1953 = vmatprep.subr.bf16.mxu1 %v1952_v1  ;;  %v584_v1 = vld [vmem:[%s3704_s3 + $0x168] sm:$0xff]  ;;  %v3051_v4 = vpack.c.bf16 %v575_v60, %v571_v59  ;;  %v3055_v5 = vpack.c.bf16 %v577_v63, %v573_v61 }
  0x41   :  { %v3057_v6 = vpack.c.bf16 %v584_v1, %v580_v0 }
  0x42   :  { %1923 = vmatpush1.bf16.msra.mxu0 %v1922_v8  ;;  %v579_v8 = vld [vmem:[%s3704_s3 + $0x140] sm:$0xff] }
  0x43   :  { %1955 = vmatpush1.bf16.msra.mxu1 %v1954_v9  ;;  %1957 = vmatprep.subr.bf16.mxu0 %v2876_v10  ;;  %v583_v9 = vld [vmem:[%s3704_s3 + $0x160] sm:$0xff] }
  0x44   :  { %1989 = vmatprep.subr.bf16.mxu1 %v2887_v14  ;;  %v3087_v19 = vpack.c.bf16 %v583_v9, %v579_v8 }
  0x45   :  { %416 = vmatmul.mubr.f32.vlgmr.msra.gmra.mrb[2].mxu0 %v2702_v48 }
  0x46   :  { %487 = vmatmul.mubr.f32.vlgmr.msra.gmra.mrb[2].mxu1 %v2702_v48  ;;  %1959 = vmatpush1.bf16.msra.mxu0 %v2904_v20  ;;  %v559_v48 = vld [vmem:[%s3704_s3 + $0xa0] sm:$0xff] }
  0x47   :  { %1991 = vmatpush1.bf16.msra.mxu1 %v2907_v21  ;;  %1961 = vmatprep.subr.bf16.mxu0 %v2909_v22  ;;  %v2979_v43 = vpack.c.bf16 %v559_v48, %v555_v35  ;;  %v600_v35 = vld [vmem:[%s3704_s3 + $0x1e8] sm:$0xff] }
  0x48   :  { %1993 = vmatprep.subr.bf16.mxu1 %v2921_v26  ;;  %732 = vmatprep.mubr.f32.mxu0 %v3714_v7 }
  0x49   :  { %803 = vmatprep.mubr.f32.mxu1 %v3714_v7 }
  0x4a   :  { %1963 = vmatpush1.bf16.msra.mxu0 %v2941_v32 }
  0x4b   :  { %1995 = vmatpush1.bf16.msra.mxu1 %v2945_v33  ;;  %1965 = vmatprep.subr.bf16.mxu0 %v2947_v34 }
  0x4c   :  { %1997 = vmatprep.subr.bf16.mxu1 %v2959_v37 }
  0x4e   :  { %1967 = vmatpush1.bf16.msra.mxu0 %v2979_v43 }
  0x4f   :  { %1999 = vmatpush1.bf16.msra.mxu1 %v2983_v44  ;;  %1969 = vmatprep.subr.bf16.mxu0 %v2985_v45 }
  0x50   :  { %2001 = vmatprep.subr.bf16.mxu1 %v2997_v50 }
  0x52   :  { %1971 = vmatpush1.bf16.msra.mxu0 %v3015_v56 }
  0x53   :  { %2003 = vmatpush1.bf16.msra.mxu1 %v3019_v57  ;;  %1973 = vmatprep.subr.bf16.mxu0 %v3021_v58 }
  0x54   :  { %2005 = vmatprep.subr.bf16.mxu1 %v3033_v62 }
  0x56   :  { %1975 = vmatpush1.bf16.msra.mxu0 %v3051_v4 }
  0x57   :  { %2007 = vmatpush1.bf16.msra.mxu1 %v3055_v5  ;;  %1977 = vmatprep.subr.bf16.mxu0 %v3057_v6 }
  0x58   :  { %2009 = vmatprep.subr.bf16.mxu1 %v3069_v12 }
  0x59   :  { %19 = vsyncpa [#allocation6], 0  ;;  %v598_v48 = vld [vmem:[%s3704_s3 + $0x1d8] sm:$0xff]  ;;  %v3123_v38 = vpack.c.bf16 %v591_v27, %v587_v23  ;;  %v3127_v39 = vpack.c.bf16 %v593_v29, %v589_v28  ;;  %v3129_v40 = vpack.c.bf16 %v600_v35, %v596_v31  ;;  %v595_v41 = vld [vmem:[%s3704_s3 + $0x1c0] sm:$0xff]  ;;  %vm2400_vm0 = vmmov 0  }
  0x5a   :  { %v602_v36 = vld [vmem:[%s3704_s3 + $0x1f8] sm:$0xff]  ;;  %1979 = vmatpush1.bf16.msra.mxu0 %v3087_v19  ;;  %v599_v42 = vld [vmem:[%s3704_s3 + $0x1e0] sm:$0xff]  ;;  %v597_v46 = vld [vmem:[%s3704_s3 + $0x1d0] sm:$0xff]  ;;  %vm1615_vm1 = vcmask 254976   ;;  %vm1628_vm2 = vcmask 261120   ;;  %vm1702_vm3 = vcmask 25600  }
  0x5b   :  { %2011 = vmatpush1.bf16.msra.mxu1 %v3094_v24  ;;  %1981 = vmatprep.subr.bf16.mxu0 %v3096_v25  ;;  %v3141_v47 = vpack.c.bf16 %v602_v36, %v598_v48  ;;  %v601_v49 = vld [vmem:[%s3704_s3 + $0x1f0] sm:$0xff]  ;;  %v604_v51 = vld [vmem:[%s3705_s4 + $0x8] sm:$0xff]  ;;  %v606_v53 = vld [vmem:[%s3705_s4 + $0x18] sm:$0xff]  ;;  %v3159_v55 = vpack.c.bf16 %v599_v42, %v595_v41 }
  0x5c   :  { %2013 = vmatprep.subr.bf16.mxu1 %v3108_v30  ;;  %v608_v52 = vld [vmem:[%s3705_s4 + $0x28] sm:$0xff]  ;;  %v610_v54 = vld [vmem:[%s3705_s4 + $0x38] sm:$0xff]  ;;  %v3163_v59 = vpack.c.bf16 %v601_v49, %v597_v46  ;;  %v603_v61 = vld [vmem:[%s3705_s4] sm:$0xff] }
  0x5d   :  { %v3165_v60 = vpack.c.bf16 %v608_v52, %v604_v51  ;;  %v607_v63 = vld [vmem:[%s3705_s4 + $0x20] sm:$0xff]  ;;  %v605_v0 = vld [vmem:[%s3705_s4 + $0x10] sm:$0xff]  ;;  %v3177_v1 = vpack.c.bf16 %v610_v54, %v606_v53  ;;  %v612_v3 = vld [vmem:[%s3705_s4 + $0x48] sm:$0xff] }
  0x5e   :  { %1983 = vmatpush1.bf16.msra.mxu0 %v3123_v38  ;;  %v609_v2 = vld [vmem:[%s3705_s4 + $0x30] sm:$0xff]  ;;  %v616_v8 = vld [vmem:[%s3705_s4 + $0x68] sm:$0xff]  ;;  %v614_v9 = vld [vmem:[%s3705_s4 + $0x58] sm:$0xff]  ;;  %v3195_v13 = vpack.c.bf16 %v607_v63, %v603_v61 }
  0x5f   :  { %2015 = vmatpush1.bf16.msra.mxu1 %v3127_v39  ;;  %1985 = vmatprep.subr.bf16.mxu0 %v3129_v40  ;;  %v618_v11 = vld [vmem:[%s3705_s4 + $0x78] sm:$0xff]  ;;  %v3199_v15 = vpack.c.bf16 %v609_v2, %v605_v0  ;;  %v3201_v16 = vpack.c.bf16 %v616_v8, %v612_v3  ;;  %v611_v17 = vld [vmem:[%s3705_s4 + $0x40] sm:$0xff]  ;;  %v613_v23 = vld [vmem:[%s3705_s4 + $0x50] sm:$0xff] }
  0x60   :  { %2017 = vmatprep.subr.bf16.mxu1 %v3141_v47  ;;  %v615_v18 = vld [vmem:[%s3705_s4 + $0x60] sm:$0xff]  ;;  %v3213_v27 = vpack.c.bf16 %v618_v11, %v614_v9  ;;  %v617_v28 = vld [vmem:[%s3705_s4 + $0x70] sm:$0xff]  ;;  %v620_v29 = vld [vmem:[%s3705_s4 + $0x88] sm:$0xff] }
  0x61   :  { %v624_v31 = vld [vmem:[%s3705_s4 + $0xa8] sm:$0xff]  ;;  %v622_v35 = vld [vmem:[%s3705_s4 + $0x98] sm:$0xff]  ;;  %v3233_v36 = vpack.c.bf16 %v615_v18, %v611_v17  ;;  %v3237_v41 = vpack.c.bf16 %v617_v28, %v613_v23  ;;  %v619_v46 = vld [vmem:[%s3705_s4 + $0x80] sm:$0xff] }
  0x62   :  { %1987 = vmatpush1.bf16.msra.mxu0 %v3159_v55  ;;  %v626_v48 = vld [vmem:[%s3705_s4 + $0xb8] sm:$0xff]  ;;  %v3239_v42 = vpack.c.bf16 %v624_v31, %v620_v29  ;;  %v623_v49 = vld [vmem:[%s3705_s4 + $0xa0] sm:$0xff]  ;;  %v621_v51 = vld [vmem:[%s3705_s4 + $0x90] sm:$0xff] }
  0x63   :  { %2019 = vmatpush1.bf16.msra.mxu1 %v3163_v59  ;;  %2021 = vmatprep.subr.bf16.mxu0 %v3165_v60  ;;  %v3251_v52 = vpack.c.bf16 %v626_v48, %v622_v35  ;;  %v625_v53 = vld [vmem:[%s3705_s4 + $0xb0] sm:$0xff]  ;;  %v628_v54 = vld [vmem:[%s3705_s4 + $0xc8] sm:$0xff]  ;;  %v630_v63 = vld [vmem:[%s3705_s4 + $0xd8] sm:$0xff]  ;;  %v3271_v2 = vpack.c.bf16 %v623_v49, %v619_v46 }
  0x64   :  { %2053 = vmatprep.subr.bf16.mxu1 %v3177_v1  ;;  %v632_v61 = vld [vmem:[%s3705_s4 + $0xe8] sm:$0xff]  ;;  %v634_v0 = vld [vmem:[%s3705_s4 + $0xf8] sm:$0xff]  ;;  %v3275_v3 = vpack.c.bf16 %v625_v53, %v621_v51  ;;  %v627_v9 = vld [vmem:[%s3705_s4 + $0xc0] sm:$0xff] }
  0x65   :  { %733 = vmatmul.mubr.f32.vlgmr.msra.gmra.mrb[4].mxu0 %v3714_v7  ;;  %v3277_v8 = vpack.c.bf16 %v632_v61, %v628_v54  ;;  %v631_v11 = vld [vmem:[%s3705_s4 + $0xe0] sm:$0xff]  ;;  %v629_v17 = vld [vmem:[%s3705_s4 + $0xd0] sm:$0xff]  ;;  %v3289_v18 = vpack.c.bf16 %v634_v0, %v630_v63  ;;  %v636_v28 = vld [vmem:[%s3705_s4 + $0x108] sm:$0xff] }
  0x66   :  { %804 = vmatmul.mubr.f32.vlgmr.msra.gmra.mrb[4].mxu1 %v3714_v7  ;;  %2023 = vmatpush1.bf16.msra.mxu0 %v3195_v13  ;;  %v633_v23 = vld [vmem:[%s3705_s4 + $0xf0] sm:$0xff]  ;;  %v640_v29 = vld [vmem:[%s3705_s4 + $0x128] sm:$0xff]  ;;  %v638_v31 = vld [vmem:[%s3705_s4 + $0x118] sm:$0xff]  ;;  %v3307_v48 = vpack.c.bf16 %v631_v11, %v627_v9 }
  0x67   :  { %2055 = vmatpush1.bf16.msra.mxu1 %v3199_v15  ;;  %2025 = vmatprep.subr.bf16.mxu0 %v3201_v16  ;;  %v642_v35 = vld [vmem:[%s3705_s4 + $0x138] sm:$0xff]  ;;  %v3311_v46 = vpack.c.bf16 %v633_v23, %v629_v17  ;;  %v3313_v49 = vpack.c.bf16 %v640_v29, %v636_v28  ;;  %v635_v51 = vld [vmem:[%s3705_s4 + $0x100] sm:$0xff]  ;;  %v637_v54 = vld [vmem:[%s3705_s4 + $0x110] sm:$0xff] }
  0x68   :  { %2057 = vmatprep.subr.bf16.mxu1 %v3213_v27  ;;  %938 = vmatprep.mubr.f32.mxu0 %v3714_v7  ;;  %v639_v53 = vld [vmem:[%s3705_s4 + $0x120] sm:$0xff]  ;;  %v3325_v61 = vpack.c.bf16 %v642_v35, %v638_v31  ;;  %v641_v63 = vld [vmem:[%s3705_s4 + $0x130] sm:$0xff]  ;;  %v644_v0 = vld [vmem:[%s3705_s4 + $0x148] sm:$0xff] }
  0x69   :  { %1009 = vmatprep.mubr.f32.mxu1 %v3714_v7  ;;  %3723 = vst [vmem:[#allocation10_spill] sm:$0xff] %v3311_v46  ;;  %3724 = vst [vmem:[#allocation11_spill] sm:$0xff] %v3313_v49  ;;  %v648_v9 = vld [vmem:[%s3705_s4 + $0x168] sm:$0xff]  ;;  %v646_v11 = vld [vmem:[%s3705_s4 + $0x158] sm:$0xff]  ;;  %v3343_v23 = vpack.c.bf16 %v639_v53, %v635_v51  ;;  %v3347_v28 = vpack.c.bf16 %v641_v63, %v637_v54 }
  0x6a   :  { %2027 = vmatpush1.bf16.msra.mxu0 %v3233_v36  ;;  %3725 = vst [vmem:[#allocation12_spill] sm:$0xff] %v3325_v61  ;;  %v650_v17 = vld [vmem:[%s3705_s4 + $0x178] sm:$0xff]  ;;  %v3349_v29 = vpack.c.bf16 %v648_v9, %v644_v0  ;;  %v643_v31 = vld [vmem:[%s3705_s4 + $0x140] sm:$0xff]  ;;  %v645_v51 = vld [vmem:[%s3705_s4 + $0x150] sm:$0xff] }
  0x6b   :  { %2059 = vmatpush1.bf16.msra.mxu1 %v3237_v41  ;;  %2029 = vmatprep.subr.bf16.mxu0 %v3239_v42  ;;  %3726 = vst [vmem:[#allocation13_spill] sm:$0xff] %v3343_v23  ;;  %3727 = vst [vmem:[#allocation14_spill] sm:$0xff] %v3347_v28  ;;  %v647_v35 = vld [vmem:[%s3705_s4 + $0x160] sm:$0xff]  ;;  %v3361_v53 = vpack.c.bf16 %v650_v17, %v646_v11  ;;  %v649_v54 = vld [vmem:[%s3705_s4 + $0x170] sm:$0xff] }
  0x6c   :  { %2061 = vmatprep.subr.bf16.mxu1 %v3251_v52  ;;  %3728 = vst [vmem:[#allocation15_spill] sm:$0xff] %v3349_v29  ;;  %v652_v63 = vld [vmem:[%s3705_s4 + $0x188] sm:$0xff]  ;;  %v654_v9 = vld [vmem:[%s3705_s4 + $0x198] sm:$0xff]  ;;  %v3379_v17 = vpack.c.bf16 %v647_v35, %v643_v31  ;;  %v3383_v7 = vpack.c.bf16 %v649_v54, %v645_v51  ;;  %v653_v31 = vld [vmem:[%s3705_s4 + $0x190] sm:$0xff] }
  0x6d   :  { %3729 = vst [vmem:[#allocation16_spill] sm:$0xff] %v3361_v53  ;;  %v656_v0 = vld [vmem:[%s3705_s4 + $0x1a8] sm:$0xff]  ;;  %v658_v11 = vld [vmem:[%s3705_s4 + $0x1b8] sm:$0xff]  ;;  %v657_v51 = vld [vmem:[%s3705_s4 + $0x1b0] sm:$0xff] }
  0x6e   :  { %2031 = vmatpush1.bf16.msra.mxu0 %v3271_v2  ;;  %v3397_v35 = vpack.c.bf16 %v658_v11, %v654_v9  ;;  %v660_v54 = vld [vmem:[%s3705_s4 + $0x1c8] sm:$0xff]  ;;  %v666_v9 = vld [vmem:[%s3705_s4 + $0x1f8] sm:$0xff] }
  0x6f   :  { %2063 = vmatpush1.bf16.msra.mxu1 %v3275_v3  ;;  %2033 = vmatprep.subr.bf16.mxu0 %v3277_v8 }
  0x70   :  { %2065 = vmatprep.subr.bf16.mxu1 %v3289_v18 }
  0x72   :  { %2035 = vmatpush1.bf16.msra.mxu0 %v3307_v48 }
  0x73   :  { %2067 = vmatpush1.bf16.msra.mxu1 %v3311_v46  ;;  %2037 = vmatprep.subr.bf16.mxu0 %v3313_v49  ;;  %v651_v49 = vld [vmem:[%s3705_s4 + $0x180] sm:$0xff] }
  0x74   :  { %2069 = vmatprep.subr.bf16.mxu1 %v3325_v61  ;;  %v3385_v61 = vpack.c.bf16 %v656_v0, %v652_v63  ;;  %v655_v46 = vld [vmem:[%s3705_s4 + $0x1a0] sm:$0xff]  ;;  %v664_v63 = vld [vmem:[%s3705_s4 + $0x1e8] sm:$0xff]  ;;  %v662_v0 = vld [vmem:[%s3705_s4 + $0x1d8] sm:$0xff] }
  0x75   :  { %v3415_v11 = vpack.c.bf16 %v655_v46, %v651_v49  ;;  %v3430_v46 = vpack.c.bf16 %v666_v9, %v662_v0  ;;  %v661_v49 = vld [vmem:[%s3705_s4 + $0x1d0] sm:$0xff] }
  0x76   :  { %2039 = vmatpush1.bf16.msra.mxu0 %v3343_v23  ;;  %v663_v23 = vld [vmem:[%s3705_s4 + $0x1e0] sm:$0xff] }
  0x77   :  { %2071 = vmatpush1.bf16.msra.mxu1 %v3347_v28  ;;  %2041 = vmatprep.subr.bf16.mxu0 %v3349_v29  ;;  %v3421_v29 = vpack.c.bf16 %v664_v63, %v660_v54  ;;  %v659_v28 = vld [vmem:[%s3705_s4 + $0x1c0] sm:$0xff]  ;;  %v3730_v63 = vmov 0.0  }
  0x78   :  { %2073 = vmatprep.subr.bf16.mxu1 %v3361_v53  ;;  %v3419_v53 = vpack.c.bf16 %v657_v51, %v653_v31  ;;  %v665_v31 = vld [vmem:[%s3705_s4 + $0x1f0] sm:$0xff]  ;;  %v3439_v51 = vpack.c.bf16 %v663_v23, %v659_v28 }
  0x79   :  { %v3443_v54 = vpack.c.bf16 %v665_v31, %v661_v49 }
  0x7a   :  { %2043 = vmatpush1.bf16.msra.mxu0 %v3379_v17 }
  0x7b   :  { %2075 = vmatpush1.bf16.msra.mxu1 %v3383_v7  ;;  %2045 = vmatprep.subr.bf16.mxu0 %v3385_v61 }
  0x7c   :  { %2077 = vmatprep.subr.bf16.mxu1 %v3397_v35 }
  0x7e   :  { %2047 = vmatpush1.bf16.msra.mxu0 %v3415_v11 }
  0x7f   :  { %2079 = vmatpush1.bf16.msra.mxu1 %v3419_v53  ;;  %2049 = vmatprep.subr.bf16.mxu0 %v3421_v29 }
  0x80   :  { %2081 = vmatprep.subr.bf16.mxu1 %v3430_v46 }
  0x82   :  { %2051 = vmatpush1.bf16.msra.mxu0 %v3439_v51 }
  0x83   :  { %2083 = vmatpush1.bf16.msra.mxu1 %v3443_v54  ;;  %2085 = vmatprep.subr.bf16.mxu0 %v2876_v10  ;;  %v169_v10 = vlaneseq }
  0x84   :  { %2117 = vmatprep.subr.bf16.mxu1 %v2887_v14 }
  0x85   :  { %939 = vmatmul.mubr.f32.vlgmr.msra.gmra.mrb[6].mxu0 %v3730_v63  ;;  %v170_v14 = vshrl.u32 %v169_v10, 7 }
  0x86   :  { %1010 = vmatmul.mubr.f32.vlgmr.msra.gmra.mrb[6].mxu1 %v3730_v63  ;;  %2087 = vmatpush1.bf16.msra.mxu0 %v2904_v20 }
  0x87   :  { %2119 = vmatpush1.bf16.msra.mxu1 %v2907_v21  ;;  %2089 = vmatprep.subr.bf16.mxu0 %v2909_v22  ;;  %v171_v20 = vsub.s32 0, %v170_v14  ;;  %v167_v21 = vld [vmem:[%s3703_s2] sm:$0xff]  ;;  %v179_v22 = vsub.s32 2, %v170_v14 }
  0x88   :  { %2121 = vmatprep.subr.bf16.mxu1 %v2921_v26  ;;  %1146 = vmatprep.mubr.f32.mxu0 %v3730_v63  ;;  %v175_v26 = vsub.s32 1, %v170_v14 }
  0x89   :  { %1217 = vmatprep.mubr.f32.mxu1 %v3730_v63 }
  0x8a   :  { %2091 = vmatpush1.bf16.msra.mxu0 %v2941_v32  ;;  %v2397_v32 = vmov 1983009808  }
  0x8b   :  { %2123 = vmatpush1.bf16.msra.mxu1 %v2945_v33  ;;  %2093 = vmatprep.subr.bf16.mxu0 %v2947_v34  ;;  %v504_v33 = vunpack.c.l.s4 %v2397_v32  ;;  %v183_v34 = vsub.s32 3, %v170_v14 }
  0x8c   :  { %2125 = vmatprep.subr.bf16.mxu1 %v2959_v37  ;;  %v172_v37 = vrot.slane %v167_v21, %v171_v20 }
  0x8e   :  { %2095 = vmatpush1.bf16.msra.mxu0 %v2979_v43  ;;  %v180_v43 = vrot.slane %v167_v21, %v179_v22 }
  0x8f   :  { %2127 = vmatpush1.bf16.msra.mxu1 %v2983_v44  ;;  %2097 = vmatprep.subr.bf16.mxu0 %v2985_v45  ;;  %v176_v44 = vrot.slane %v167_v21, %v175_v26  ;;  %v505_v45 = vunpack.c.0.s8 %v504_v33 }
  0x90   :  { %2129 = vmatprep.subr.bf16.mxu1 %v2997_v50  ;;  %v184_v50 = vrot.slane %v167_v21, %v183_v34 }
  0x92   :  { %2099 = vmatpush1.bf16.msra.mxu0 %v3015_v56 }
  0x93   :  { %2131 = vmatpush1.bf16.msra.mxu1 %v3019_v57  ;;  %2101 = vmatprep.subr.bf16.mxu0 %v3021_v58 }
  0x94   :  { %2133 = vmatprep.subr.bf16.mxu1 %v3033_v62 }
  0x96   :  { %2103 = vmatpush1.bf16.msra.mxu0 %v3051_v4 }
  0x97   :  { %2135 = vmatpush1.bf16.msra.mxu1 %v3055_v5  ;;  %2105 = vmatprep.subr.bf16.mxu0 %v3057_v6  ;;  %v508_v6 = vsub.s32 %v505_v45, %v170_v14 }
  0x98   :  { %2137 = vmatprep.subr.bf16.mxu1 %v3069_v12 }
  0x9a   :  { %2107 = vmatpush1.bf16.msra.mxu0 %v3087_v19 }
  0x9b   :  { %2139 = vmatpush1.bf16.msra.mxu1 %v3094_v24  ;;  %2109 = vmatprep.subr.bf16.mxu0 %v3096_v25 }
  0x9c   :  { %2141 = vmatprep.subr.bf16.mxu1 %v3108_v30 }
  0x9e   :  { %2111 = vmatpush1.bf16.msra.mxu0 %v3123_v38 }
  0x9f   :  { %2143 = vmatpush1.bf16.msra.mxu1 %v3127_v39  ;;  %2113 = vmatprep.subr.bf16.mxu0 %v3129_v40  ;;  %v187_v40 = vsub.s32 4, %v170_v14 }
  0xa0   :  { %2145 = vmatprep.subr.bf16.mxu1 %v3141_v47  ;;  %v195_v47 = vsub.s32 6, %v170_v14 }
  0xa2   :  { %2115 = vmatpush1.bf16.msra.mxu0 %v3159_v55  ;;  %v191_v55 = vsub.s32 5, %v170_v14 }
  0xa3   :  { %2147 = vmatpush1.bf16.msra.mxu1 %v3163_v59  ;;  %2149 = vmatprep.subr.bf16.mxu0 %v3165_v60  ;;  %v199_v59 = vsub.s32 7, %v170_v14  ;;  %v188_v60 = vrot.slane %v167_v21, %v187_v40 }
  0xa4   :  { %2181 = vmatprep.subr.bf16.mxu1 %v3177_v1  ;;  %v196_v1 = vrot.slane %v167_v21, %v195_v47  ;;  %v192_v23 = vrot.slane %v167_v21, %v191_v55 }
  0xa5   :  { %v200_v28 = vrot.slane %v167_v21, %v199_v59 }
  0xf8   :  { %v275_v56 = vpop.f32.mrb[0].mxu0 }
  0xf9   :  { %v276_v57 = vadd.f32 %v275_v56, %v172_v37  ;;  %v346_v58 = vpop.f32.mrb[0].mxu1  ;;  %v277_v62 = vpop.f32.mrb[1].mxu0 }
  0xfa   :  { %v347_v4 = vadd.f32 %v346_v58, %v180_v43  ;;  %v278_v5 = vadd.f32 %v277_v62, %v176_v44  ;;  %v348_v12 = vpop.f32.mrb[1].mxu1  ;;  %v2398_v44 = vmov 1966171168  }
  0xfb   :  { %v349_v19 = vadd.f32 %v348_v12, %v184_v50  ;;  %v817_v45 = vunpack.c.l.s4 %v2398_v44 }
  0xfc   :  { %v501_v24 = vcombine.low %v276_v57, %v278_v5 }
  0xfd   :  { %v502_v25 = vcombine.low %v347_v4, %v349_v19  ;;  %v818_v50 = vunpack.c.0.s8 %v817_v45 }
  0xfe   :  { %v509_v30 = vrot.slane %v501_v24, %v508_v6 }
  0xff   :  { %v516_v38 = vrot.slane %v502_v25, %v508_v6  ;;  %v3489_v57 = vsub.s32 %v818_v50, %v170_v14 }
 0x101   :  { %v517_v39 = vcombine.low %v509_v30, %v516_v38 }
 0x103   :  { %537 = vst [vmem:[#allocation2] sm:$0xff] %v517_v39 }
 0x118   :  { %v417_v0 = vpop.f32.mrb[2].mxu0 }
 0x119   :  { %v418_v9 = vadd.f32 %v417_v0, %v188_v60  ;;  %v488_v49 = vpop.f32.mrb[2].mxu1  ;;  %v419_v31 = vpop.f32.mrb[3].mxu0 }
 0x11a   :  { %v489_v10 = vadd.f32 %v488_v49, %v196_v1  ;;  %v420_v20 = vadd.f32 %v419_v31, %v192_v23  ;;  %v490_v22 = vpop.f32.mrb[3].mxu1 }
 0x11b   :  { %v491_v26 = vadd.f32 %v490_v22, %v200_v28 }
 0x11c   :  { %v518_v32 = vcombine.low %v418_v9, %v420_v20 }
 0x11d   :  { %v519_v33 = vcombine.low %v489_v10, %v491_v26 }
 0x11e   :  { %v526_v34 = vrot.slane %v518_v32, %v508_v6 }
 0x11f   :  { %v533_v37 = vrot.slane %v519_v33, %v508_v6 }
 0x121   :  { %v534_v43 = vcombine.low %v526_v34, %v533_v37 }
 0x123   :  { %538 = vst [vmem:[#allocation2 + $0x8] sm:$0xff] %v534_v43 }
 0x12a   :  { %v667_v25 = vld [vmem:[#allocation2] ss:$2 sm:$0xff]  ;;  %v873_v26 = vld [vmem:[#allocation2 + $0x1] ss:$2 sm:$0xff] }
 0x12b   :  { %v1017_v44 = vrot.slane %v873_v26, 4  ;;  %v1517_v26 = vld [vmem:[%s3706_s5 + $0xb0] sm:$0xff] }
 0x138   :  { %v734_v56 = vpop.f32.mrb[4].mxu0 }
 0x139   :  { %v805_v21 = vpop.f32.mrb[4].mxu1  ;;  %v736_v58 = vpop.f32.mrb[5].mxu0 }
 0x13a   :  { %v814_v62 = vcombine.low %v734_v56, %v736_v58  ;;  %v807_v4 = vpop.f32.mrb[5].mxu1 }
 0x13b   :  { %v815_v5 = vcombine.low %v805_v21, %v807_v4 }
 0x13c   :  { %v822_v12 = vrot.slane %v814_v62, %v3489_v57 }
 0x13d   :  { %v829_v19 = vrot.slane %v815_v5, %v3489_v57 }
 0x13f   :  { %v830_v24 = vcombine.low %v822_v12, %v829_v19 }
 0x141   :  { %v837_v6 = vrot.slane %v830_v24, %v3489_v57 }
 0x143   :  { %v839_v30 = vadd.f32 %v837_v6, %v667_v25 }
 0x145   :  { %v1761_v38 = vmul.f32 -1.442695, %v839_v30  ;;  %v847_v39 = vrot.slane %v839_v30, 1  ;;  %v858_v14 = vrot.slane %v839_v30, 3  ;;  %v855_v59 = vrot.slane %v839_v30, 2 }
 0x147   :  { %2258 = vpow2.f32 %v1761_v38  ;;  %v1762_v40 = vmul.f32 -1.442695, %v847_v39  ;;  %v1763_v47 = vmul.f32 -1.442695, %v858_v14 }
 0x149   :  { %2260 = vpow2.f32 %v1762_v40 }
 0x14a   :  { %2262 = vpow2.f32 %v1763_v47 }
 0x151   :  { %v2259_v55 = vpop.eup %2258 }
 0x152   :  { %v843_v60 = vadd.f32 1.0, %v2259_v55 }
 0x153   :  { %v2261_v1 = vpop.eup %2260 }
 0x154   :  { %2264 = vrcp.f32 %v843_v60  ;;  %v852_v23 = vadd.f32 1.0, %v2261_v1  ;;  %v2263_v22 = vpop.eup %2262  ;;  %v3737_v60 = vld [vmem:[#allocation16_spill] sm:$0xff] }
 0x155   :  { %2266 = vtanh.f32 %v855_v59  ;;  %v863_v50 = vadd.f32 1.0, %v2263_v22  ;;  %v3734_v59 = vld [vmem:[#allocation13_spill] sm:$0xff] }
 0x156   :  { %2268 = vrcp.f32 %v852_v23  ;;  %v1497_v23 = vld [vmem:[%s3706_s5 + $0x10] sm:$0xff] }
 0x157   :  { %2270 = vrcp.f32 %v863_v50 }
 0x158   :  { %v940_v28 = vpop.f32.mrb[6].mxu0 }
 0x159   :  { %v1011_v0 = vpop.f32.mrb[6].mxu1  ;;  %v942_v9 = vpop.f32.mrb[7].mxu0 }
 0x15a   :  { %v1023_v49 = vcombine.low %v940_v28, %v942_v9  ;;  %v1013_v31 = vpop.f32.mrb[7].mxu1  ;;  %v1498_v28 = vld [vmem:[%s3706_s5 + $0x18] sm:$0xff]  ;;  %v1515_v9 = vld [vmem:[%s3706_s5 + $0xa0] sm:$0xff] }
 0x15b   :  { %v1024_v10 = vcombine.low %v1011_v0, %v1013_v31  ;;  %v2218_v0 = vpack.c.bf16 %v1498_v28, %v1497_v23 }
 0x15c   :  { %v1031_v20 = vrot.slane %v1023_v49, %v3489_v57  ;;  %v1516_v49 = vld [vmem:[%s3706_s5 + $0xa8] sm:$0xff] }
 0x15d   :  { %v1038_v32 = vrot.slane %v1024_v10, %v3489_v57  ;;  %v2220_v31 = vpack.c.bf16 %v1516_v49, %v1515_v9  ;;  %v1499_v10 = vld [vmem:[%s3706_s5 + $0x20] sm:$0xff] }
 0x15e   :  { %v2265_v33 = vpop.eup %2264 }
 0x15f   :  { %v2267_v34 = vpop.eup %2266  ;;  %v1039_v37 = vcombine.low %v1031_v20, %v1038_v32  ;;  %v1500_v20 = vld [vmem:[%s3706_s5 + $0x28] sm:$0xff]  ;;  %v1518_v32 = vld [vmem:[%s3706_s5 + $0xb8] sm:$0xff] }
 0x160   :  { %v2269_v43 = vpop.eup %2268  ;;  %v867_v21 = vmul.f32 %v2267_v34, %v2265_v33  ;;  %v2222_v22 = vpack.c.bf16 %v1500_v20, %v1499_v10  ;;  %v2224_v33 = vpack.c.bf16 %v1518_v32, %v1517_v26  ;;  %v1501_v34 = vld [vmem:[%s3706_s5 + $0x30] sm:$0xff] }
 0x161   :  { %v1046_v45 = vrot.slane %v1039_v37, %v3489_v57  ;;  %v866_v56 = vmul.f32 0.0, %v2269_v43  ;;  %v2271_v24 = vpop.eup %2270  ;;  %v1502_v37 = vld [vmem:[%s3706_s5 + $0x38] sm:$0xff] }
 0x162   :  { %v2226_v43 = vpack.c.bf16 %v1502_v37, %v1501_v34 }
 0x163   :  { %v1048_v58 = vadd.f32 %v1046_v45, %v1017_v44  ;;  %v3497_v62 = vadd.f32 %v867_v21, %v866_v56  ;;  %v1519_v44 = vld [vmem:[%s3706_s5 + $0xc0] sm:$0xff]  ;;  %v1520_v45 = vld [vmem:[%s3706_s5 + $0xc8] sm:$0xff] }
 0x164   :  { %v2228_v50 = vpack.c.bf16 %v1520_v45, %v1519_v44  ;;  %v1503_v56 = vld [vmem:[%s3706_s5 + $0x40] sm:$0xff]  ;;  %v1504_v21 = vld [vmem:[%s3706_s5 + $0x48] sm:$0xff] }
 0x165   :  { %v1764_v4 = vmul.f32 -1.442695, %v1048_v58  ;;  %v1056_v5 = vrot.slane %v1048_v58, 1  ;;  %2272 = vtanh.f32 %v3497_v62  ;;  %v1067_v19 = vrot.slane %v1048_v58, 3  ;;  %v1286_v44 = vld [vmem:[#allocation2] ss:$2 sm:$0xff] }
 0x166   :  { %v1064_v38 = vrot.slane %v1048_v58, 2  ;;  %v2230_v58 = vpack.c.bf16 %v1504_v21, %v1503_v56 }
 0x167   :  { %2274 = vpow2.f32 %v1764_v4  ;;  %v1765_v12 = vmul.f32 -1.442695, %v1056_v5  ;;  %v1766_v6 = vmul.f32 -1.442695, %v1067_v19  ;;  %v1521_v4 = vld [vmem:[%s3706_s5 + $0xd0] sm:$0xff]  ;;  %v1522_v5 = vld [vmem:[%s3706_s5 + $0xd8] sm:$0xff] }
 0x168   :  { %v1505_v19 = vld [vmem:[%s3706_s5 + $0x50] sm:$0xff] }
 0x169   :  { %2276 = vpow2.f32 %v1765_v12  ;;  %v2232_v12 = vpack.c.bf16 %v1522_v5, %v1521_v4  ;;  %v1430_v5 = vrot.slane %v1286_v44, 4 }
 0x16a   :  { %2278 = vpow2.f32 %v1766_v6 }
 0x16f   :  { %v2273_v25 = vpop.eup %2272 }
 0x170   :  { %v870_v39 = vmul.f32 %v2273_v25, %v2271_v24  ;;  %v1506_v24 = vld [vmem:[%s3706_s5 + $0x58] sm:$0xff]  ;;  %v1523_v25 = vld [vmem:[%s3706_s5 + $0xe0] sm:$0xff] }
 0x171   :  { %v2275_v30 = vpop.eup %2274  ;;  %v2234_v6 = vpack.c.bf16 %v1506_v24, %v1505_v19 }
 0x172   :  { %v1052_v40 = vadd.f32 1.0, %v2275_v30  ;;  %871 = vst [vmem:[#allocation3] sm:$0x1] %v870_v39  ;;  %1147 = vmatmul.mubr.f32.vlgmr.msra.gmra.mrb[8].mxu0 %v870_v39  ;;  %1218 = vmatmul.mubr.f32.vlgmr.msra.gmra.mrb[8].mxu1 %v870_v39  ;;  %v1524_v30 = vld [vmem:[%s3706_s5 + $0xe8] sm:$0xff] }
 0x173   :  { %v2277_v14 = vpop.eup %2276  ;;  %2151 = vmatpush1.bf16.msra.mxu0 %v3195_v13  ;;  %2183 = vmatpush1.bf16.msra.mxu1 %v3199_v15  ;;  %v2236_v39 = vpack.c.bf16 %v1524_v30, %v1523_v25 }
 0x174   :  { %2280 = vrcp.f32 %v1052_v40  ;;  %v1061_v47 = vadd.f32 1.0, %v2277_v14  ;;  %2153 = vmatprep.subr.bf16.mxu0 %v3201_v16  ;;  %2185 = vmatprep.subr.bf16.mxu1 %v3213_v27  ;;  %v2279_v13 = vpop.eup %2278  ;;  %v1508_v40 = vld [vmem:[%s3706_s5 + $0x68] sm:$0xff]  ;;  %v1525_v14 = vld [vmem:[%s3706_s5 + $0xf0] sm:$0xff] }
 0x175   :  { %2282 = vtanh.f32 %v1064_v38  ;;  %1351 = vmatprep.mubr.f32.mxu0 %v3730_v63  ;;  %1422 = vmatprep.mubr.f32.mxu1 %v3730_v63  ;;  %v1507_v38 = vld [vmem:[%s3706_s5 + $0x60] sm:$0xff] }
 0x176   :  { %2284 = vrcp.f32 %v1061_v47  ;;  %v1526_v47 = vld [vmem:[%s3706_s5 + $0xf8] sm:$0xff] }
 0x177   :  { %2155 = vmatpush1.bf16.msra.mxu0 %v3233_v36  ;;  %2187 = vmatpush1.bf16.msra.mxu1 %v3237_v41  ;;  %v3731_v36 = vld [vmem:[#allocation10_spill] sm:$0xff]  ;;  %v1072_v41 = vadd.f32 1.0, %v2279_v13  ;;  %v2238_v13 = vpack.c.bf16 %v1508_v40, %v1507_v38 }
 0x178   :  { %2157 = vmatprep.subr.bf16.mxu0 %v3239_v42  ;;  %2189 = vmatprep.subr.bf16.mxu1 %v3251_v52  ;;  %v3732_v42 = vld [vmem:[#allocation11_spill] sm:$0xff]  ;;  %v3733_v52 = vld [vmem:[#allocation12_spill] sm:$0xff] }
 0x179   :  { %2286 = vrcp.f32 %v1072_v41  ;;  %v1617_v41 = vld [vmem:[%s3708_s7] sm:$0xff] }
 0x17b   :  { %2159 = vmatpush1.bf16.msra.mxu0 %v3271_v2  ;;  %2191 = vmatpush1.bf16.msra.mxu1 %v3275_v3 }
 0x17c   :  { %2161 = vmatprep.subr.bf16.mxu0 %v3277_v8  ;;  %2193 = vmatprep.subr.bf16.mxu1 %v3289_v18  ;;  %v3735_v8 = vld [vmem:[#allocation14_spill] sm:$0xff]  ;;  %v3736_v18 = vld [vmem:[#allocation15_spill] sm:$0xff] }
 0x17e   :  { %v2281_v15 = vpop.eup %2280 }
 0x17f   :  { %v2283_v16 = vpop.eup %2282  ;;  %2163 = vmatpush1.bf16.msra.mxu0 %v3307_v48  ;;  %2195 = vmatpush1.bf16.msra.mxu1 %v3731_v36 }
 0x180   :  { %v2285_v27 = vpop.eup %2284  ;;  %2165 = vmatprep.subr.bf16.mxu0 %v3732_v42  ;;  %2197 = vmatprep.subr.bf16.mxu1 %v3733_v52  ;;  %v1076_v55 = vmul.f32 %v2283_v16, %v2281_v15  ;;  %v2240_v15 = vpack.c.bf16 %v1526_v47, %v1525_v14  ;;  %v1509_v16 = vld [vmem:[%s3706_s5 + $0x70] sm:$0xff]  ;;  %v1618_v42 = vld [vmem:[%s3708_s7 + $0x8] sm:$0xff]  ;;  %v2399_v52 = vmov 0.0|0.0  }
 0x181   :  { %v1075_v2 = vmul.f32 0.0, %v2285_v27  ;;  %v1510_v27 = vld [vmem:[%s3706_s5 + $0x78] sm:$0xff] }
 0x182   :  { %v2242_v36 = vpack.c.bf16 %v1510_v27, %v1509_v16 }
 0x183   :  { %v3518_v3 = vadd.f32 %v1076_v55, %v1075_v2  ;;  %2167 = vmatpush1.bf16.msra.mxu0 %v3734_v59  ;;  %2199 = vmatpush1.bf16.msra.mxu1 %v3735_v8  ;;  %v2287_v48 = vpop.eup %2286  ;;  %v2245_v2 = vpack.c.bf16 %v1618_v42, %v1617_v41 }
 0x184   :  { %2169 = vmatprep.subr.bf16.mxu0 %v3736_v18  ;;  %2201 = vmatprep.subr.bf16.mxu1 %v3737_v60 }
 0x185   :  { %2288 = vtanh.f32 %v3518_v3 }
 0x187   :  { %2171 = vmatpush1.bf16.msra.mxu0 %v3379_v17  ;;  %2203 = vmatpush1.bf16.msra.mxu1 %v3383_v7  ;;  %v1511_v7 = vld [vmem:[%s3706_s5 + $0x80] sm:$0xff] }
 0x188   :  { %2173 = vmatprep.subr.bf16.mxu0 %v3385_v61  ;;  %2205 = vmatprep.subr.bf16.mxu1 %v3397_v35  ;;  %v1512_v61 = vld [vmem:[%s3706_s5 + $0x88] sm:$0xff] }
 0x189   :  { %v1496_v35 = vld [vmem:[%s3706_s5 + $0x8] sm:$0xff] }
 0x18b   :  { %2175 = vmatpush1.bf16.msra.mxu0 %v3415_v11  ;;  %2207 = vmatpush1.bf16.msra.mxu1 %v3419_v53  ;;  %v1495_v53 = vld [vmem:[%s3706_s5] sm:$0xff] }
 0x18c   :  { %2177 = vmatprep.subr.bf16.mxu0 %v3421_v29  ;;  %2209 = vmatprep.subr.bf16.mxu1 %v3430_v46  ;;  %v2212_v29 = vpack.c.bf16 %v1512_v61, %v1511_v7  ;;  %v2214_v11 = vpack.c.bf16 %v1496_v35, %v1495_v53  ;;  %v1513_v46 = vld [vmem:[%s3706_s5 + $0x90] sm:$0xff] }
 0x18f   :  { %v2289_v1 = vpop.eup %2288  ;;  %2179 = vmatpush1.bf16.msra.mxu0 %v3439_v51  ;;  %2211 = vmatpush1.bf16.msra.mxu1 %v3443_v54  ;;  %v1514_v51 = vld [vmem:[%s3706_s5 + $0x98] sm:$0xff] }
 0x190   :  { %v1079_v17 = vmul.f32 %v2289_v1, %v2287_v48  ;;  %2213 = vmatprep.subr.bf16.mxu0 %v2212_v29  ;;  %v2216_v54 = vpack.c.bf16 %v1514_v51, %v1513_v46  ;;  %2244 = vmatprep.subr.bf16.mxu1 %v2399_v52  ;;  %v1081_v29 = vld [vmem:[#allocation2 + $0x1] ss:$2 sm:$0xff] }
 0x192   :  { %1080 = vst [vmem:[#allocation3 + $0x3] sm:$0x1] %v1079_v17  ;;  %1352 = vmatmul.mubr.f32.vlgmr.msra.gmra.mrb[10].mxu0 %v1079_v17  ;;  %1423 = vmatmul.mubr.f32.vlgmr.msra.gmra.mrb[10].mxu1 %v1079_v17 }
 0x193   :  { %2215 = vmatpush3.bf16.msra.mxu0 %v2214_v11  ;;  %2246 = vmatpush3.bf16.msra.mxu1 %v2245_v2 }
 0x194   :  { %2217 = vmatprep.subr.bf16.mxu0 %v2216_v54  ;;  %2247 = vmatprep.subr.bf16.mxu1 %v2399_v52 }
 0x195   :  { %1825 = vmatprep.mubr.msk.f32.mxu1 %vm2400_vm0, %v3730_v63 }
 0x197   :  { %2219 = vmatpush3.bf16.msra.mxu0 %v2218_v0 }
 0x198   :  { %2221 = vmatprep.subr.bf16.mxu0 %v2220_v31 }
 0x19b   :  { %2223 = vmatpush3.bf16.msra.mxu0 %v2222_v22 }
 0x19c   :  { %2225 = vmatprep.subr.bf16.mxu0 %v2224_v33 }
 0x19f   :  { %2227 = vmatpush3.bf16.msra.mxu0 %v2226_v43 }
 0x1a0   :  { %2229 = vmatprep.subr.bf16.mxu0 %v2228_v50 }
 0x1a3   :  { %2231 = vmatpush3.bf16.msra.mxu0 %v2230_v58 }
 0x1a4   :  { %2233 = vmatprep.subr.bf16.mxu0 %v2232_v12 }
 0x1a7   :  { %2235 = vmatpush3.bf16.msra.mxu0 %v2234_v6 }
 0x1a8   :  { %2237 = vmatprep.subr.bf16.mxu0 %v2236_v39 }
 0x1ab   :  { %2239 = vmatpush3.bf16.msra.mxu0 %v2238_v13 }
 0x1ac   :  { %2241 = vmatprep.subr.bf16.mxu0 %v2240_v15 }
 0x1af   :  { %2243 = vmatpush3.bf16.msra.mxu0 %v2242_v36 }
 0x245   :  { %v1148_v55 = vpop.f32.mrb[8].mxu0  ;;  %v1219_v59 = vpop.f32.mrb[8].mxu1 }
 0x246   :  { %v1150_v8 = vpop.f32.mrb[9].mxu0  ;;  %v1221_v18 = vpop.f32.mrb[9].mxu1 }
 0x247   :  { %v1228_v60 = vcombine.low %v1148_v55, %v1150_v8  ;;  %v1229_v48 = vcombine.low %v1219_v59, %v1221_v18 }
 0x249   :  { %v1236_v1 = vrot.slane %v1228_v60, %v3489_v57  ;;  %v1243_v17 = vrot.slane %v1229_v48, %v3489_v57 }
 0x24b   :  { %v1244_v7 = vcombine.low %v1236_v1, %v1243_v17  ;;  %v1619_v17 = vld [vmem:[%s3708_s7 + $0x10] sm:$0xff] }
 0x24d   :  { %v1251_v61 = vrot.slane %v1244_v7, %v3489_v57 }
 0x24f   :  { %v1253_v53 = vadd.f32 %v1251_v61, %v1081_v29  ;;  %v1773_v29 = vld [vmem:[%s3707_s6] ss:$0 sm:$0xff]  ;;  %s2401_s6 = smov [#allocation5]  }
 0x251   :  { %v1767_v35 = vmul.f32 -1.442695, %v1253_v53  ;;  %v1261_v11 = vrot.slane %v1253_v53, 1  ;;  %v1272_v51 = vrot.slane %v1253_v53, 3  ;;  %v1269_v28 = vrot.slane %v1253_v53, 2 }
 0x253   :  { %2290 = vpow2.f32 %v1767_v35  ;;  %v1768_v46 = vmul.f32 -1.442695, %v1261_v11  ;;  %v1769_v54 = vmul.f32 -1.442695, %v1272_v51 }
 0x255   :  { %2292 = vpow2.f32 %v1768_v46  ;;  %v1775_v46 = vld [vmem:[%s3709_s8] ss:$0 sm:$0xff]  ;;  %s2402_s8 = smov [#allocation3]  }
 0x256   :  { %2294 = vpow2.f32 %v1769_v54  ;;  %s1722_s18 = sshll.u32 %s2402_s8, 4  ;;  %s1723_s18 = int_to_ptr.vmem [resolvable:$true] %s1722_s18 }
 0x25d   :  { %v2291_v23 = vpop.eup %2290 }
 0x25e   :  { %v1257_v0 = vadd.f32 1.0, %v2291_v23 }
 0x25f   :  { %v2293_v9 = vpop.eup %2292 }
 0x260   :  { %2296 = vrcp.f32 %v1257_v0  ;;  %v1266_v49 = vadd.f32 1.0, %v2293_v9  ;;  %v2295_v33 = vpop.eup %2294 }
 0x261   :  { %2298 = vtanh.f32 %v1269_v28  ;;  %v1277_v21 = vadd.f32 1.0, %v2295_v33 }
 0x262   :  { %2300 = vrcp.f32 %v1266_v49 }
 0x263   :  { %2302 = vrcp.f32 %v1277_v21 }
 0x265   :  { %v1353_v31 = vpop.f32.mrb[10].mxu0  ;;  %v1424_v10 = vpop.f32.mrb[10].mxu1 }
 0x266   :  { %v1355_v20 = vpop.f32.mrb[11].mxu0  ;;  %v1426_v22 = vpop.f32.mrb[11].mxu1 }
 0x267   :  { %v1436_v26 = vcombine.low %v1353_v31, %v1355_v20  ;;  %v1437_v32 = vcombine.low %v1424_v10, %v1426_v22 }
 0x269   :  { %v1444_v34 = vrot.slane %v1436_v26, %v3489_v57  ;;  %v1451_v37 = vrot.slane %v1437_v32, %v3489_v57 }
 0x26a   :  { %v2297_v43 = vpop.eup %2296 }
 0x26b   :  { %v2299_v45 = vpop.eup %2298  ;;  %v1452_v50 = vcombine.low %v1444_v34, %v1451_v37 }
 0x26c   :  { %v2301_v56 = vpop.eup %2300  ;;  %v1281_v4 = vmul.f32 %v2299_v45, %v2297_v43 }
 0x26d   :  { %v1280_v58 = vmul.f32 %v2301_v56, %v3497_v62  ;;  %v1459_v12 = vrot.slane %v1452_v50, %v3489_v57  ;;  %v2303_v39 = vpop.eup %2302 }
 0x26f   :  { %v1282_v19 = vadd.f32 %v1281_v4, %v1280_v58  ;;  %v1461_v24 = vadd.f32 %v1459_v12, %v1430_v5 }
 0x271   :  { %2304 = vtanh.f32 %v1282_v19  ;;  %v1770_v6 = vmul.f32 -1.442695, %v1461_v24  ;;  %v1469_v25 = vrot.slane %v1461_v24, 1  ;;  %v1480_v38 = vrot.slane %v1461_v24, 3 }
 0x272   :  { %v1477_v62 = vrot.slane %v1461_v24, 2 }
 0x273   :  { %2306 = vpow2.f32 %v1770_v6  ;;  %v1771_v30 = vmul.f32 -1.442695, %v1469_v25  ;;  %v1772_v14 = vmul.f32 -1.442695, %v1480_v38 }
 0x275   :  { %2308 = vpow2.f32 %v1771_v30 }
 0x276   :  { %2310 = vpow2.f32 %v1772_v14 }
 0x27b   :  { %v2305_v40 = vpop.eup %2304 }
 0x27c   :  { %v1284_v47 = vmul.f32 %v2305_v40, %v2303_v39 }
 0x27d   :  { %v2307_v13 = vpop.eup %2306 }
 0x27e   :  { %1285 = vst [vmem:[#allocation3 + $0x1] sm:$0x1] %v1284_v47  ;;  %v1465_v15 = vadd.f32 1.0, %v2307_v13 }
 0x27f   :  { %v2309_v16 = vpop.eup %2308 }
 0x280   :  { %2312 = vrcp.f32 %v1465_v15  ;;  %v1474_v57 = vadd.f32 1.0, %v2309_v16  ;;  %v2311_v27 = vpop.eup %2310 }
 0x281   :  { %2314 = vtanh.f32 %v1477_v62  ;;  %v1485_v52 = vadd.f32 1.0, %v2311_v27 }
 0x282   :  { %2316 = vrcp.f32 %v1474_v57 }
 0x283   :  { %2318 = vrcp.f32 %v1485_v52 }
 0x28a   :  { %v2313_v36 = vpop.eup %2312 }
 0x28b   :  { %v2315_v41 = vpop.eup %2314 }
 0x28c   :  { %v2317_v42 = vpop.eup %2316  ;;  %v1489_v55 = vmul.f32 %v2315_v41, %v2313_v36 }
 0x28d   :  { %v1488_v2 = vmul.f32 %v2317_v42, %v3518_v3  ;;  %v2319_v8 = vpop.eup %2318  ;;  %v1620_v3 = vld [vmem:[%s3708_s7 + $0x18] sm:$0xff] }
 0x28e   :  { %v2248_v7 = vpack.c.bf16 %v1620_v3, %v1619_v17 }
 0x28f   :  { %v1490_v59 = vadd.f32 %v1489_v55, %v1488_v2 }
 0x290   :  { %2249 = vmatpush3.bf16.msra.mxu1 %v2248_v7 }
 0x291   :  { %2320 = vtanh.f32 %v1490_v59 }
 0x29b   :  { %v2321_v18 = vpop.eup %2320 }
 0x29c   :  { %v1492_v60 = vmul.f32 %v2321_v18, %v2319_v8 }
 0x29e   :  { %1493 = vst [vmem:[#allocation3 + $0x2] sm:$0x1] %v1492_v60 }
 0x2a5   :  { %v1774_v48 = vld.sshfl [vmem:[#allocation3] sm:$0x33 pattern:$0x76325410] }
 0x2a6   :  { %v1542_v1 = vcombine.high %v1774_v48, %v1774_v48 }
 0x2a8   :  { %1609 = vmatprep.mubr.f32.mxu0 %v1542_v1 }
 0x2a9   :  { %1610 = vmatmul.mubr.f32.vlgmr.msra.gmra.mrb[12].mxu0 %v1774_v48 }
 0x37c   :  { %v1809_v61 = vpop.f32.mrb[12].mxu0 }
 0x37d   :  { %v1810_v53 = vpop.f32.mrb[13].mxu0 }
 0x37e   :  { %v1811_v35 = vadd.f32 %v1810_v53, %v1809_v61 }
 0x380   :  { %v1612_v11 = vadd.f32 %v1811_v35, %v1773_v29 }
 0x382   :  { %1616 = vst.msk [vmem:[%s3711_s10] sm:$0x3] %vm1615_vm1, %v1612_v11  ;;  %1826 = vmatmul.mubr.msk.f32.vlgmr.msra.gmra.mrb[12].mxu1 %vm1628_vm2, %v1612_v11  ;;  %s1734_s10 = sshll.u32 %s2401_s6, 4  ;;  %s1735_s10 = int_to_ptr.vmem [resolvable:$true] %s1734_s10 }
 0x383   :  { %s2326_s0 = scalar_lea.vmem %s1735_s10, 32  ;;  %p2331_p1 = scmp.lt.s32.totalorder %s1735_s10, %s1735_s10 }
 0x384   :  { %p2327_p0 = scmp.ne.s32.totalorder %s1735_s10, %s2326_s0  ;;  %p2332_p2 = scmp.lt.s32.totalorder %s2326_s0, %s2326_s0 }
 0x386   :  { %p2333_p3 = por %p2332_p2, %p2331_p1 }
 0x388   :  { %p2334_p4 = pnand %p2333_p3, %p2327_p0 }
 0x455   :  { %v1698_v63 = vpop.f32.mrb[12].mxu1 }
 0x456   :  { %v1699_v51 = vadd.f32 %v1775_v46, %v1698_v63  ;;  %v1827_v54 = vpop.f32.mrb[13].mxu1 }
 0x458   :  { %v1704_v23 = vsel %vm1702_vm3, %v1699_v51, -inf  ;;  %1703 = vst.msk [vmem:[#allocation5] sm:$0x3] %vm1702_vm3, %v1699_v51 }
 0x459   :  { %1705 = vmax.xlane.f32.xlu0 %v1704_v23 }
 0x4e6   :  { %v1706_v28 = vpop.xlane.xlu0 %1705 }
 0x4e7   :  { %v1707_v0 = vsub.f32 %v1699_v51, %v1706_v28 }
 0x4e9   :  { %v1708_v9 = vmul.f32 1.442695, %v1707_v0 }
 0x4eb   :  { %2322 = vpow2.f32 %v1708_v9 }
 0x4f5   :  { %v2323_v49 = vpop.eup %2322 }
 0x4f6   :  { %v1710_v31 = vsel %vm1702_vm3, %v2323_v49, 0.0 }
 0x4f7   :  { %1711 = vadd.xlane.f32.xlu0 %v1710_v31 }
 0x4f8   :  { %2337 = shalt.err (!%p2334_p4)
}
 0x4f9   :  { %s2338_s21 = scalar_lea.hbm %s3712_s11, 32 }
 0x4fa   :  { %p2339_p5 = scmp.ne.s32.totalorder %s3712_s11, %s2338_s21  ;;  %p2342_p6 = scmp.lt.u32.totalorder %s2338_s21, %s3712_s11 }
 0x4fc   :  { %p2344_p7 = pnand %p2342_p6, %p2339_p5 }
 0x4fe   :  { %2347 = shalt.err (!%p2344_p7)
}
 0x4ff   :  { %1737 = dma.vmem_to_hbm [thread:$0]  %s1735_s10, 32, %s3712_s11, [#allocation6]  }
 0x500   :  { %s2348_s28 = scalar_lea.vmem %s1723_s18, 64  ;;  %p2353_p9 = scmp.lt.s32.totalorder %s1723_s18, %s1723_s18 }
 0x501   :  { %p2349_p8 = scmp.ne.s32.totalorder %s1723_s18, %s2348_s28  ;;  %p2354_p10 = scmp.lt.s32.totalorder %s2348_s28, %s2348_s28 }
 0x503   :  { %p2355_p11 = por %p2354_p10, %p2353_p9 }
 0x505   :  { %p2356_p12 = pnand %p2355_p11, %p2349_p8 }
 0x507   :  { %2359 = shalt.err (!%p2356_p12)
}
 0x508   :  { %s2360_s4 = scalar_lea.hbm %s3710_s9, 64 }
 0x509   :  { %p2361_p13 = scmp.ne.s32.totalorder %s3710_s9, %s2360_s4  ;;  %p2364_p0 = scmp.lt.u32.totalorder %s2360_s4, %s3710_s9 }
 0x50b   :  { %p2366_p1 = pnand %p2364_p0, %p2361_p13 }
 0x50d   :  { %2369 = shalt.err (!%p2366_p1)
}
 0x50e   :  { %1725 = dma.vmem_to_hbm [thread:$0]  %s1723_s18, 64, %s3710_s9, [#allocation4]  }
 0x50f   :  { %s2403_s15 = smov [#allocation7]  }
 0x510   :  { %s1744_s16 = sshll.u32 %s2403_s15, 4  ;;  %s1745_s16 = int_to_ptr.vmem [resolvable:$true] %s1744_s16 }
 0x511   :  { %s2370_s17 = scalar_lea.vmem %s1745_s16, 32  ;;  %p2375_p3 = scmp.lt.s32.totalorder %s1745_s16, %s1745_s16 }
 0x512   :  { %p2371_p2 = scmp.ne.s32.totalorder %s1745_s16, %s2370_s17  ;;  %p2376_p4 = scmp.lt.s32.totalorder %s2370_s17, %s2370_s17 }
 0x514   :  { %p2377_p5 = por %p2376_p4, %p2375_p3 }
 0x516   :  { %p2378_p6 = pnand %p2377_p5, %p2371_p2 }
 0x584   :  { %v1712_v10 = vpop.xlane.xlu0 %1711 }
 0x585   :  { %2324 = vrcp.f32 %v1712_v10 }
 0x58f   :  { %v2325_v20 = vpop.eup %2324 }
 0x590   :  { %v1714_v22 = vmul.f32 %v2325_v20, %v2323_v49 }
 0x592   :  { %1715 = vst.msk [vmem:[#allocation7] sm:$0x3] %vm1702_vm3, %v1714_v22 }
 0x593   :  { %2381 = shalt.err (!%p2378_p6)
}
 0x594   :  { %s2382_s9 = scalar_lea.hbm %s3713_s12, 32 }
 0x595   :  { %p2383_p7 = scmp.ne.s32.totalorder %s3713_s12, %s2382_s9  ;;  %p2386_p8 = scmp.lt.u32.totalorder %s2382_s9, %s3713_s12 }
 0x597   :  { %p2388_p9 = pnand %p2386_p8, %p2383_p7 }
 0x599   :  { %2391 = shalt.err (!%p2388_p9)
}
 0x59a   :  { %1747 = dma.vmem_to_hbm [thread:$0]  %s1745_s16, 32, %s3713_s12, [#allocation6]  }
 0x59b   :  { %2392 = dma.done.wait [#allocation4], 64  }
 0x59c   :  { %2393 = vsyncadd [#allocation4], 4294967232 }
 0x59d   :  { %2394 = dma.done.wait [#allocation6], 64  }
 0x59e   :  { %2395 = vsyncadd [#allocation6], 4294967232 }
 0x59f   :  { %1759 = vsyncpa [#allocation4], 1 }
 0x5a0   :  { %1760 = vsyncpa [#allocation6], 1 }

</bundles_post_ra>
